<compile_context>
chip_gen: v6e
topology: v6e:2x2x1
jax: 0.10.0
libtpu: 0.0.40
codegen_flags: <defaults>
</compile_context>

<pallas_src>
import jax
import jax.numpy as jnp
from jax.experimental import pallas as pl
from jax.experimental.pallas import tpu as pltpu

# ----------------------------- model config ---------------------------------
B = 2          # batch
L_IN = 170     # raw audio samples
CONV0 = dict(cin=1, cout=32, k=10, stride=5)    # -> T0 = 33
CONV1 = dict(cin=32, cout=32, k=3, stride=2)    # -> T  = 16
C_FEAT = 32    # conv_dim
H = 32         # hidden_size
NH = 2         # num_attention_heads
DH = H // NH   # head dim
FF = 64        # intermediate_size
NUM_LAYERS = 2
T = 16         # encoder sequence length (derived from convs above)
BT = B * T
POS_K = 4      # num_conv_pos_embeddings (even -> SamePad drops last frame)
POS_G = 2      # num_conv_pos_embedding_groups
EPS = 1e-5

# TODO(synk): HF Wav2Vec2 defaults to exact erf GELU; tanh approximation is
# used here (EUP friendly).  Flip if bit-parity with PyTorch matters.
GELU_APPROX = True


def _gelu(x):
    return jax.nn.gelu(x, approximate=GELU_APPROX)


def _ln(x, g, b):
    """LayerNorm over last dim (g, b broadcast as [1, C])."""
    mean = jnp.mean(x, axis=-1, keepdims=True)
    var = jnp.mean((x - mean) ** 2, axis=-1, keepdims=True)
    return (x - mean) * jax.lax.rsqrt(var + EPS) * g + b


# ----------------------------- Pallas kernels --------------------------------
def _conv0_gn_gelu_kernel(f_ref, w_ref, g_ref, b_ref, o_ref):
    """conv0 (as matmul, no bias) + GroupNorm(groups==channels, over time) + GELU.

    Whole batch in one step; B=2 statically unrolled (GroupNorm stats are per
    batch element so the matmuls stay 2-D).
    f [B, T0, K*Cin], w [K*Cin, C], g/b [1, C], o [B, T0, C].
    """
    w = w_ref[...]
    g = g_ref[...]
    bias = b_ref[...]
    for bi in range(B):                               # static unroll, no grid
        y = jnp.dot(f_ref[bi], w, preferred_element_type=jnp.float32)  # [T0, C]
        mean = jnp.mean(y, axis=0, keepdims=True)
        var = jnp.mean((y - mean) ** 2, axis=0, keepdims=True)
        y = (y - mean) * jax.lax.rsqrt(var + EPS) * g + bias
        o_ref[bi] = _gelu(y)


def conv0_gn_gelu(frames0, w, g, b):
    Bb, T0, _ = frames0.shape
    C = w.shape[1]
    # TODO(synk): frames are only 10 lanes wide; building im2col in-kernel from
    # the raw waveform would be lane-denser but is negligible at this size.
    return pl.pallas_call(
        _conv0_gn_gelu_kernel,
        out_shape=jax.ShapeDtypeStruct((Bb, T0, C), jnp.float32),
    )(frames0, w, g, b)


def _fused_encoder_kernel(frames1_ref, conv1_w_ref, fpg_ref, fpbn_ref,
                          fpw_ref, fpbias_ref, posw_ref, posb_ref,
                          encg_ref, encb_ref,
                          qkvw_ref, qkvb_ref, ow_ref, ob_ref,
                          ln1g_ref, ln1b_ref, fiw_ref, fib_ref,
                          fow_ref, fob_ref, ln2g_ref, ln2b_ref,
                          hs0_ref, hs1_ref, hs2_ref):
    """conv1 + GELU + feat-proj + pos-conv + residual/LN + 2 encoder layers.

    Everything operates on the flat [B*T, *] layout; per-batch / per-head work
    is statically unrolled.  One pallas_call, three hidden-state outputs.
    """
    # ---- conv1 (matmul, no bias) + GELU + feature-projection LN + proj ----
    feats = _gelu(jnp.dot(frames1_ref[...], conv1_w_ref[...],
                          preferred_element_type=jnp.float32))          # [BT, C_FEAT]
    feats = _ln(feats, fpg_ref[...], fpbn_ref[...])
    hidden = jnp.dot(feats, fpw_ref[...],
                     preferred_element_type=jnp.float32) + fpbias_ref[...]  # [BT, H]

    # ---- grouped positional conv via in-kernel sublane rolls (XLU) ----------
    # pos[t] = sum_j x[t + j - POS_K//2] @ W_j  (zero outside each batch elem).
    local_t = jax.lax.broadcasted_iota(jnp.int32, (BT, H), 0) % T
    pos_w = posw_ref[...]                                               # [POS_K*H, H]
    pos = jnp.zeros((BT, H), jnp.float32) + posb_ref[...]
    for j in range(POS_K):
        sh = POS_K // 2 - j                    # +2, +1, 0, -1
        wj = pos_w[j * H:(j + 1) * H, :]       # block-diagonal across groups
        if sh == 0:
            xs = hidden
        else:
            xs = pltpu.roll(hidden, shift=sh % BT, axis=0)   # sublane rotate
            mask = (local_t >= sh) if sh > 0 else (local_t < T + sh)
            xs = jnp.where(mask, xs, 0.0)      # zero-pad + batch-boundary mask
        pos = pos + jnp.dot(xs, wj, preferred_element_type=jnp.float32)
    x = _ln(hidden + _gelu(pos), encg_ref[...], encb_ref[...])          # [BT, H]
    hs0_ref[...] = x

    # ---- transformer encoder layers (post-LayerNorm), fully fused -----------
    out_refs = [hs1_ref, hs2_ref]
    scale = DH ** -0.5
    for l in range(NUM_LAYERS):                                         # static
        qkv = jnp.dot(x, qkvw_ref[l],
                      preferred_element_type=jnp.float32) + qkvb_ref[l]  # [BT, 3H]
        ctx_rows = []
        for bi in range(B):                                             # static
            qkv_b = qkv[bi * T:(bi + 1) * T, :]                         # [T, 3H]
            heads = []
            for h in range(NH):                                         # static
                q = qkv_b[:, h * DH:(h + 1) * DH] * scale
                k = qkv_b[:, H + h * DH:H + (h + 1) * DH]
                v = qkv_b[:, 2 * H + h * DH:2 * H + (h + 1) * DH]
                # q @ k.T without materializing the transpose.
                s = jax.lax.dot_general(q, k, (((1,), (1,)), ((), ())),
                                        preferred_element_type=jnp.float32)
                m = jnp.max(s, axis=-1, keepdims=True)
                p = jnp.exp(s - m)
                # approx reciprocal (EUP slot); rows sum to 1 +- ~1e-4.
                p = p * pl.reciprocal(jnp.sum(p, axis=-1, keepdims=True),
                                      approx=True)
                heads.append(jnp.dot(p, v, preferred_element_type=jnp.float32))
            ctx_rows.append(jnp.concatenate(heads, axis=1))             # [T, H]
        ctx = jnp.concatenate(ctx_rows, axis=0)                         # [BT, H]
        # single output projection for all batches / heads
        attn = jnp.dot(ctx, ow_ref[l],
                       preferred_element_type=jnp.float32) + ob_ref[l]
        x = _ln(x + attn, ln1g_ref[l], ln1b_ref[l])                     # res + LN1
        ff = _gelu(jnp.dot(x, fiw_ref[l],
                           preferred_element_type=jnp.float32) + fib_ref[l])
        ff = jnp.dot(ff, fow_ref[l],
                     preferred_element_type=jnp.float32) + fob_ref[l]
        x = _ln(x + ff, ln2g_ref[l], ln2b_ref[l])                       # res + LN2
        out_refs[l][...] = x


def fused_encoder(frames1_2d, p):
    out = jax.ShapeDtypeStruct((BT, H), jnp.float32)
    # No grid: total weights + activations are a few hundred KB, far below the
    # scoped-VMEM default on every TPU generation (incl. v7x's 64 MiB).
    return pl.pallas_call(
        _fused_encoder_kernel,
        out_shape=(out,) * (NUM_LAYERS + 1),
    )(frames1_2d, p["conv1_w"], p["fp_ln_g"], p["fp_ln_b"], p["fp_w"], p["fp_b"],
      p["pos_w"], p["pos_b"], p["enc_ln_g"], p["enc_ln_b"],
      p["qkv_w"], p["qkv_b"], p["o_w"], p["o_b"], p["ln1_g"], p["ln1_b"],
      p["ffn_i_w"], p["ffn_i_b"], p["ffn_o_w"], p["ffn_o_b"],
      p["ln2_g"], p["ln2_b"])


# ----------------------------- glue (plain JAX) ------------------------------
def _im2col_1d(x, kernel, stride):
    """x:[B, L, C] -> frames [B, T_out, kernel*C] (tap-major flattening)."""
    Bb, L, C = x.shape
    t_out = (L - kernel) // stride + 1
    idx = (jnp.arange(t_out) * stride)[:, None] + jnp.arange(kernel)[None, :]
    frames = x[:, idx, :]                          # [B, T_out, K, C]
    return frames.reshape(Bb, t_out, kernel * C), t_out


def wav2vec2_hidden_states(params, input_values):
    """Returns tuple of hidden states: (embeddings, layer1_out, layer2_out)."""
    # --- feature extractor conv0 (im2col in wrapper, tiny gather) ---
    x = input_values[:, :, None]                                   # [B, L, 1]
    frames0, _ = _im2col_1d(x, CONV0["k"], CONV0["stride"])        # [B, 33, 10]
    h0 = conv0_gn_gelu(frames0, params["conv0_w"],
                       params["gn_g"], params["gn_b"])             # [B, 33, 32]

    # --- everything else in ONE fused Pallas kernel ---
    frames1, t_out = _im2col_1d(h0, CONV1["k"], CONV1["stride"])   # [B, 16, 96]
    outs = fused_encoder(frames1.reshape(B * t_out, -1), params)
    # TODO(synk): dropout / spec-augment masking omitted (inference no-ops).
    return tuple(o.reshape(B, t_out, H) for o in outs)


# ----------------------------- parameter init --------------------------------
def init_params(key):
    keys = iter(jax.random.split(key, 64))

    def nrm(shape, scale=0.05):
        return (scale * jax.random.normal(next(keys), shape)).astype(jnp.float32)

    hg = H // POS_G

    # weight-norm of pos-conv folded into an effective per-group weight, then
    # assembled into a block-diagonal [POS_K*H, H] weight (per-tap [H, H]
    # blocks are sliced in-kernel).
    pos_w_groups = nrm((POS_G, POS_K, hg, hg))                 # [g, tap, ci, co]
    pos_w_full = jnp.zeros((POS_K * H, H), jnp.float32)
    for g in range(POS_G):
        for j in range(POS_K):
            pos_w_full = pos_w_full.at[
                j * H + g * hg: j * H + (g + 1) * hg,
                g * hg:(g + 1) * hg].set(pos_w_groups[g, j])
    pos_b_full = nrm((POS_G, hg)).reshape(1, H)

    def stack(fn):
        return jnp.stack([fn() for _ in range(NUM_LAYERS)])

    params = {
        "conv0_w": nrm((CONV0["k"] * CONV0["cin"], CONV0["cout"])),
        "gn_g": jnp.ones((1, CONV0["cout"]), jnp.float32),
        "gn_b": jnp.zeros((1, CONV0["cout"]), jnp.float32),
        "conv1_w": nrm((CONV1["k"] * CONV1["cin"], CONV1["cout"])),
        "fp_ln_g": jnp.ones((1, C_FEAT), jnp.float32),
        "fp_ln_b": jnp.zeros((1, C_FEAT), jnp.float32),
        "fp_w": nrm((C_FEAT, H)),
        "fp_b": nrm((1, H)),
        "pos_w": pos_w_full,
        "pos_b": pos_b_full,
        "enc_ln_g": jnp.ones((1, H), jnp.float32),
        "enc_ln_b": jnp.zeros((1, H), jnp.float32),
        # stacked per-layer weights: leading axis = layer, sliced statically
        # inside the fused kernel (fused QKV: [H, 3H] weight, [1, 3H] bias).
        "qkv_w": stack(lambda: nrm((H, 3 * H))),
        "qkv_b": stack(lambda: nrm((1, 3 * H))),
        "o_w": stack(lambda: nrm((H, H))),
        "o_b": stack(lambda: nrm((1, H))),
        "ln1_g": jnp.ones((NUM_LAYERS, 1, H), jnp.float32),
        "ln1_b": jnp.zeros((NUM_LAYERS, 1, H), jnp.float32),
        "ffn_i_w": stack(lambda: nrm((H, FF))),
        "ffn_i_b": stack(lambda: nrm((1, FF))),
        "ffn_o_w": stack(lambda: nrm((FF, H))),
        "ffn_o_b": stack(lambda: nrm((1, H))),
        "ln2_g": jnp.ones((NUM_LAYERS, 1, H), jnp.float32),
        "ln2_b": jnp.zeros((NUM_LAYERS, 1, H), jnp.float32),
    }
    return params


# --------------------------------- main ---------------------------------------
if __name__ == "__main__":
    root = jax.random.PRNGKey(0)
    pkey, xkey = jax.random.split(root)
    params = init_params(pkey)
    input_values = jax.random.normal(xkey, (B, L_IN), dtype=jnp.float32)

    forward = jax.jit(wav2vec2_hidden_states)
    hidden_states = forward(params, input_values)
    for hs in hidden_states:
        jax.block_until_ready(hs)

    expected_T = 16
    assert len(hidden_states) == NUM_LAYERS + 1
    assert all(hs.shape == (B, expected_T, H) for hs in hidden_states)
    assert all(bool(jnp.all(jnp.isfinite(hs))) for hs in hidden_states)
    print("KERNEL_OK")
</pallas_src>

<mosaic_0001>
module attributes {stable_mosaic.version = 11 : i64} {
  func.func @_conv0_gn_gelu_kernel(%arg0: memref<2x33x10xf32, #tpu.memory_space<vmem>>, %arg1: memref<10x32xf32, #tpu.memory_space<vmem>>, %arg2: memref<1x32xf32, #tpu.memory_space<vmem>>, %arg3: memref<1x32xf32, #tpu.memory_space<vmem>>, %arg4: memref<2x33x32xf32, #tpu.memory_space<vmem>>) attributes {dimension_semantics = [], scalar_prefetch = 0 : i64, scratch_operands = 0 : i64, tpu.core_type = #tpu.core_type<tc>} {
    %c0 = arith.constant 0 : index
    %c0_0 = arith.constant 0 : index
    %0 = vector.load %arg1[%c0, %c0_0] : memref<10x32xf32, #tpu.memory_space<vmem>>, vector<10x32xf32>
    %c0_1 = arith.constant 0 : index
    %c0_2 = arith.constant 0 : index
    %1 = vector.load %arg2[%c0_1, %c0_2] : memref<1x32xf32, #tpu.memory_space<vmem>>, vector<1x32xf32>
    %c0_3 = arith.constant 0 : index
    %c0_4 = arith.constant 0 : index
    %2 = vector.load %arg3[%c0_3, %c0_4] : memref<1x32xf32, #tpu.memory_space<vmem>>, vector<1x32xf32>
    %c0_5 = arith.constant 0 : index
    %c0_6 = arith.constant 0 : index
    %c0_7 = arith.constant 0 : index
    %3 = vector.load %arg0[%c0_5, %c0_6, %c0_7] : memref<2x33x10xf32, #tpu.memory_space<vmem>>, vector<1x33x10xf32>
    %4 = vector.shape_cast %3 : vector<1x33x10xf32> to vector<33x10xf32>
    %cst = arith.constant dense<0.000000e+00> : vector<33x32xf32>
    %5 = tpu.matmul %4, %0, %cst {dimension_numbers = #tpu.dot_dimension_numbers<[1], [0], [0], [1], [0, 0, 1, 1], [], []>} : vector<33x10xf32>, vector<10x32xf32>, vector<33x32xf32> -> vector<33x32xf32>
    %cst_8 = arith.constant dense<0.000000e+00> : vector<32xf32>
    %6 = vector.multi_reduction <add>, %5, %cst_8 [0] : vector<33x32xf32> to vector<32xf32>
    %7 = vector.shape_cast %6 : vector<32xf32> to vector<1x32xf32>
    %cst_9 = arith.constant 3.300000e+01 : f32
    %8 = vector.broadcast %cst_9 : f32 to vector<1x32xf32>
    %9 = arith.divf %7, %8 : vector<1x32xf32>
    %10 = vector.broadcast %9 : vector<1x32xf32> to vector<33x32xf32>
    %11 = arith.subf %5, %10 : vector<33x32xf32>
    %12 = arith.mulf %11, %11 : vector<33x32xf32>
    %cst_10 = arith.constant dense<0.000000e+00> : vector<32xf32>
    %13 = vector.multi_reduction <add>, %12, %cst_10 [0] : vector<33x32xf32> to vector<32xf32>
    %14 = vector.shape_cast %13 : vector<32xf32> to vector<1x32xf32>
    %cst_11 = arith.constant 3.300000e+01 : f32
    %15 = vector.broadcast %cst_11 : f32 to vector<1x32xf32>
    %16 = arith.divf %14, %15 : vector<1x32xf32>
    %17 = vector.broadcast %9 : vector<1x32xf32> to vector<33x32xf32>
    %18 = arith.subf %5, %17 : vector<33x32xf32>
    %cst_12 = arith.constant 9.99999974E-6 : f32
    %19 = vector.broadcast %cst_12 : f32 to vector<1x32xf32>
    %20 = arith.addf %16, %19 : vector<1x32xf32>
    %21 = math.rsqrt %20 : vector<1x32xf32>
    %22 = vector.broadcast %21 : vector<1x32xf32> to vector<33x32xf32>
    %23 = arith.mulf %18, %22 : vector<33x32xf32>
    %24 = vector.broadcast %1 : vector<1x32xf32> to vector<33x32xf32>
    %25 = arith.mulf %23, %24 : vector<33x32xf32>
    %26 = vector.broadcast %2 : vector<1x32xf32> to vector<33x32xf32>
    %27 = arith.addf %25, %26 : vector<33x32xf32>
    %28 = arith.mulf %27, %27 : vector<33x32xf32>
    %29 = arith.mulf %27, %28 : vector<33x32xf32>
    %cst_13 = arith.constant 4.471500e-02 : f32
    %30 = vector.broadcast %cst_13 : f32 to vector<33x32xf32>
    %31 = arith.mulf %30, %29 : vector<33x32xf32>
    %32 = arith.addf %27, %31 : vector<33x32xf32>
    %cst_14 = arith.constant 0.797884583 : f32
    %33 = vector.broadcast %cst_14 : f32 to vector<33x32xf32>
    %34 = arith.mulf %33, %32 : vector<33x32xf32>
    %35 = math.tanh %34 : vector<33x32xf32>
    %cst_15 = arith.constant 1.000000e+00 : f32
    %36 = vector.broadcast %cst_15 : f32 to vector<33x32xf32>
    %37 = arith.addf %36, %35 : vector<33x32xf32>
    %cst_16 = arith.constant 5.000000e-01 : f32
    %38 = vector.broadcast %cst_16 : f32 to vector<33x32xf32>
    %39 = arith.mulf %38, %37 : vector<33x32xf32>
    %40 = arith.mulf %27, %39 : vector<33x32xf32>
    %c0_17 = arith.constant 0 : index
    %c0_18 = arith.constant 0 : index
    %c0_19 = arith.constant 0 : index
    %41 = vector.load %arg4[%c0_17, %c0_18, %c0_19] : memref<2x33x32xf32, #tpu.memory_space<vmem>>, vector<1x33x32xf32>
    %42 = vector.shape_cast %41 : vector<1x33x32xf32> to vector<33x32xf32>
    %43 = vector.shape_cast %40 : vector<33x32xf32> to vector<1x33x32xf32>
    tpu.vector_store %arg4[%c0_17, %c0_18, %c0_19], %43 {strides = array<i32>} : memref<2x33x32xf32, #tpu.memory_space<vmem>>, vector<1x33x32xf32>,
    %c1 = arith.constant 1 : index
    %c0_20 = arith.constant 0 : index
    %c0_21 = arith.constant 0 : index
    %44 = vector.load %arg0[%c1, %c0_20, %c0_21] : memref<2x33x10xf32, #tpu.memory_space<vmem>>, vector<1x33x10xf32>
    %45 = vector.shape_cast %44 : vector<1x33x10xf32> to vector<33x10xf32>
    %cst_22 = arith.constant dense<0.000000e+00> : vector<33x32xf32>
    %46 = tpu.matmul %45, %0, %cst_22 {dimension_numbers = #tpu.dot_dimension_numbers<[1], [0], [0], [1], [0, 0, 1, 1], [], []>} : vector<33x10xf32>, vector<10x32xf32>, vector<33x32xf32> -> vector<33x32xf32>
    %cst_23 = arith.constant dense<0.000000e+00> : vector<32xf32>
    %47 = vector.multi_reduction <add>, %46, %cst_23 [0] : vector<33x32xf32> to vector<32xf32>
    %48 = vector.shape_cast %47 : vector<32xf32> to vector<1x32xf32>
    %cst_24 = arith.constant 3.300000e+01 : f32
    %49 = vector.broadcast %cst_24 : f32 to vector<1x32xf32>
    %50 = arith.divf %48, %49 : vector<1x32xf32>
    %51 = vector.broadcast %50 : vector<1x32xf32> to vector<33x32xf32>
    %52 = arith.subf %46, %51 : vector<33x32xf32>
    %53 = arith.mulf %52, %52 : vector<33x32xf32>
    %cst_25 = arith.constant dense<0.000000e+00> : vector<32xf32>
    %54 = vector.multi_reduction <add>, %53, %cst_25 [0] : vector<33x32xf32> to vector<32xf32>
    %55 = vector.shape_cast %54 : vector<32xf32> to vector<1x32xf32>
    %cst_26 = arith.constant 3.300000e+01 : f32
    %56 = vector.broadcast %cst_26 : f32 to vector<1x32xf32>
    %57 = arith.divf %55, %56 : vector<1x32xf32>
    %58 = vector.broadcast %50 : vector<1x32xf32> to vector<33x32xf32>
    %59 = arith.subf %46, %58 : vector<33x32xf32>
    %cst_27 = arith.constant 9.99999974E-6 : f32
    %60 = vector.broadcast %cst_27 : f32 to vector<1x32xf32>
    %61 = arith.addf %57, %60 : vector<1x32xf32>
    %62 = math.rsqrt %61 : vector<1x32xf32>
    %63 = vector.broadcast %62 : vector<1x32xf32> to vector<33x32xf32>
    %64 = arith.mulf %59, %63 : vector<33x32xf32>
    %65 = vector.broadcast %1 : vector<1x32xf32> to vector<33x32xf32>
    %66 = arith.mulf %64, %65 : vector<33x32xf32>
    %67 = vector.broadcast %2 : vector<1x32xf32> to vector<33x32xf32>
    %68 = arith.addf %66, %67 : vector<33x32xf32>
    %69 = arith.mulf %68, %68 : vector<33x32xf32>
    %70 = arith.mulf %68, %69 : vector<33x32xf32>
    %cst_28 = arith.constant 4.471500e-02 : f32
    %71 = vector.broadcast %cst_28 : f32 to vector<33x32xf32>
    %72 = arith.mulf %71, %70 : vector<33x32xf32>
    %73 = arith.addf %68, %72 : vector<33x32xf32>
    %cst_29 = arith.constant 0.797884583 : f32
    %74 = vector.broadcast %cst_29 : f32 to vector<33x32xf32>
    %75 = arith.mulf %74, %73 : vector<33x32xf32>
    %76 = math.tanh %75 : vector<33x32xf32>
    %cst_30 = arith.constant 1.000000e+00 : f32
    %77 = vector.broadcast %cst_30 : f32 to vector<33x32xf32>
    %78 = arith.addf %77, %76 : vector<33x32xf32>
    %cst_31 = arith.constant 5.000000e-01 : f32
    %79 = vector.broadcast %cst_31 : f32 to vector<33x32xf32>
    %80 = arith.mulf %79, %78 : vector<33x32xf32>
    %81 = arith.mulf %68, %80 : vector<33x32xf32>
    %c1_32 = arith.constant 1 : index
    %c0_33 = arith.constant 0 : index
    %c0_34 = arith.constant 0 : index
    %82 = vector.load %arg4[%c1_32, %c0_33, %c0_34] : memref<2x33x32xf32, #tpu.memory_space<vmem>>, vector<1x33x32xf32>
    %83 = vector.shape_cast %82 : vector<1x33x32xf32> to vector<33x32xf32>
    %84 = vector.shape_cast %81 : vector<33x32xf32> to vector<1x33x32xf32>
    tpu.vector_store %arg4[%c1_32, %c0_33, %c0_34], %84 {strides = array<i32>} : memref<2x33x32xf32, #tpu.memory_space<vmem>>, vector<1x33x32xf32>,
    return
  }
}

module attributes {stable_mosaic.version = 11 : i64} {
  func.func @_fused_encoder_kernel(%arg0: memref<32x96xf32, #tpu.memory_space<vmem>>, %arg1: memref<96x32xf32, #tpu.memory_space<vmem>>, %arg2: memref<1x32xf32, #tpu.memory_space<vmem>>, %arg3: memref<1x32xf32, #tpu.memory_space<vmem>>, %arg4: memref<32x32xf32, #tpu.memory_space<vmem>>, %arg5: memref<1x32xf32, #tpu.memory_space<vmem>>, %arg6: memref<128x32xf32, #tpu.memory_space<vmem>>, %arg7: memref<1x32xf32, #tpu.memory_space<vmem>>, %arg8: memref<1x32xf32, #tpu.memory_space<vmem>>, %arg9: memref<1x32xf32, #tpu.memory_space<vmem>>, %arg10: memref<2x32x96xf32, #tpu.memory_space<vmem>>, %arg11: memref<2x1x96xf32, #tpu.memory_space<vmem>>, %arg12: memref<2x32x32xf32, #tpu.memory_space<vmem>>, %arg13: memref<2x1x32xf32, #tpu.memory_space<vmem>>, %arg14: memref<2x1x32xf32, #tpu.memory_space<vmem>>, %arg15: memref<2x1x32xf32, #tpu.memory_space<vmem>>, %arg16: memref<2x32x64xf32, #tpu.memory_space<vmem>>, %arg17: memref<2x1x64xf32, #tpu.memory_space<vmem>>, %arg18: memref<2x64x32xf32, #tpu.memory_space<vmem>>, %arg19: memref<2x1x32xf32, #tpu.memory_space<vmem>>, %arg20: memref<2x1x32xf32, #tpu.memory_space<vmem>>, %arg21: memref<2x1x32xf32, #tpu.memory_space<vmem>>, %arg22: memref<32x32xf32, #tpu.memory_space<vmem>>, %arg23: memref<32x32xf32, #tpu.memory_space<vmem>>, %arg24: memref<32x32xf32, #tpu.memory_space<vmem>>) attributes {dimension_semantics = [], scalar_prefetch = 0 : i64, scratch_operands = 0 : i64, tpu.core_type = #tpu.core_type<tc>} {
    %c0 = arith.constant 0 : index
    %c0_0 = arith.constant 0 : index
    %0 = vector.load %arg0[%c0, %c0_0] : memref<32x96xf32, #tpu.memory_space<vmem>>, vector<32x96xf32>
    %c0_1 = arith.constant 0 : index
    %c0_2 = arith.constant 0 : index
    %1 = vector.load %arg1[%c0_1, %c0_2] : memref<96x32xf32, #tpu.memory_space<vmem>>, vector<96x32xf32>
    %cst = arith.constant dense<0.000000e+00> : vector<32x32xf32>
    %2 = tpu.matmul %0, %1, %cst {dimension_numbers = #tpu.dot_dimension_numbers<[1], [0], [0], [1], [0, 0, 1, 1], [], []>} : vector<32x96xf32>, vector<96x32xf32>, vector<32x32xf32> -> vector<32x32xf32>
    %3 = arith.mulf %2, %2 : vector<32x32xf32>
    %4 = arith.mulf %2, %3 : vector<32x32xf32>
    %cst_3 = arith.constant 4.471500e-02 : f32
    %5 = vector.broadcast %cst_3 : f32 to vector<32x32xf32>
    %6 = arith.mulf %5, %4 : vector<32x32xf32>
    %7 = arith.addf %2, %6 : vector<32x32xf32>
    %cst_4 = arith.constant 0.797884583 : f32
    %8 = vector.broadcast %cst_4 : f32 to vector<32x32xf32>
    %9 = arith.mulf %8, %7 : vector<32x32xf32>
    %10 = math.tanh %9 : vector<32x32xf32>
    %cst_5 = arith.constant 1.000000e+00 : f32
    %11 = vector.broadcast %cst_5 : f32 to vector<32x32xf32>
    %12 = arith.addf %11, %10 : vector<32x32xf32>
    %cst_6 = arith.constant 5.000000e-01 : f32
    %13 = vector.broadcast %cst_6 : f32 to vector<32x32xf32>
    %14 = arith.mulf %13, %12 : vector<32x32xf32>
    %15 = arith.mulf %2, %14 : vector<32x32xf32>
    %c0_7 = arith.constant 0 : index
    %c0_8 = arith.constant 0 : index
    %16 = vector.load %arg2[%c0_7, %c0_8] : memref<1x32xf32, #tpu.memory_space<vmem>>, vector<1x32xf32>
    %c0_9 = arith.constant 0 : index
    %c0_10 = arith.constant 0 : index
    %17 = vector.load %arg3[%c0_9, %c0_10] : memref<1x32xf32, #tpu.memory_space<vmem>>, vector<1x32xf32>
    %cst_11 = arith.constant dense<0.000000e+00> : vector<32xf32>
    %18 = vector.multi_reduction <add>, %15, %cst_11 [1] : vector<32x32xf32> to vector<32xf32>
    %19 = vector.shape_cast %18 : vector<32xf32> to vector<32x1xf32>
    %cst_12 = arith.constant 3.200000e+01 : f32
    %20 = vector.broadcast %cst_12 : f32 to vector<32x1xf32>
    %21 = arith.divf %19, %20 : vector<32x1xf32>
    %22 = vector.broadcast %21 : vector<32x1xf32> to vector<32x32xf32>
    %23 = arith.subf %15, %22 : vector<32x32xf32>
    %24 = arith.mulf %23, %23 : vector<32x32xf32>
    %cst_13 = arith.constant dense<0.000000e+00> : vector<32xf32>
    %25 = vector.multi_reduction <add>, %24, %cst_13 [1] : vector<32x32xf32> to vector<32xf32>
    %26 = vector.shape_cast %25 : vector<32xf32> to vector<32x1xf32>
    %cst_14 = arith.constant 3.200000e+01 : f32
    %27 = vector.broadcast %cst_14 : f32 to vector<32x1xf32>
    %28 = arith.divf %26, %27 : vector<32x1xf32>
    %29 = vector.broadcast %21 : vector<32x1xf32> to vector<32x32xf32>
    %30 = arith.subf %15, %29 : vector<32x32xf32>
    %cst_15 = arith.constant 9.99999974E-6 : f32
    %31 = vector.broadcast %cst_15 : f32 to vector<32x1xf32>
    %32 = arith.addf %28, %31 : vector<32x1xf32>
    %33 = math.rsqrt %32 : vector<32x1xf32>
    %34 = vector.broadcast %33 : vector<32x1xf32> to vector<32x32xf32>
    %35 = arith.mulf %30, %34 : vector<32x32xf32>
    %36 = vector.broadcast %16 : vector<1x32xf32> to vector<32x32xf32>
    %37 = arith.mulf %35, %36 : vector<32x32xf32>
    %38 = vector.broadcast %17 : vector<1x32xf32> to vector<32x32xf32>
    %39 = arith.addf %37, %38 : vector<32x32xf32>
    %c0_16 = arith.constant 0 : index
    %c0_17 = arith.constant 0 : index
    %40 = vector.load %arg4[%c0_16, %c0_17] : memref<32x32xf32, #tpu.memory_space<vmem>>, vector<32x32xf32>
    %cst_18 = arith.constant dense<0.000000e+00> : vector<32x32xf32>
    %41 = tpu.matmul %39, %40, %cst_18 {dimension_numbers = #tpu.dot_dimension_numbers<[1], [0], [0], [1], [0, 0, 1, 1], [], []>} : vector<32x32xf32>, vector<32x32xf32>, vector<32x32xf32> -> vector<32x32xf32>
    %c0_19 = arith.constant 0 : index
    %c0_20 = arith.constant 0 : index
    %42 = vector.load %arg5[%c0_19, %c0_20] : memref<1x32xf32, #tpu.memory_space<vmem>>, vector<1x32xf32>
    %43 = vector.broadcast %42 : vector<1x32xf32> to vector<32x32xf32>
    %44 = arith.addf %41, %43 : vector<32x32xf32>
    %45 = tpu.iota {dimensions = array<i32: 0>} : vector<32x32xi32>
    %c16_i32 = arith.constant 16 : i32
    %c0_i32 = arith.constant 0 : i32
    %46 = arith.cmpi eq, %c16_i32, %c0_i32 : i32
    %c1_i32 = arith.constant 1 : i32
    %47 = arith.select %46, %c1_i32, %c16_i32 : i32
    %48 = vector.broadcast %47 : i32 to vector<32x32xi32>
    %49 = arith.remsi %45, %48 : vector<32x32xi32>
    %c0_i32_21 = arith.constant 0 : i32
    %50 = vector.broadcast %c0_i32_21 : i32 to vector<32x32xi32>
    %51 = arith.cmpi ne, %49, %50 : vector<32x32xi32>
    %c0_i32_22 = arith.constant 0 : i32
    %52 = vector.broadcast %c0_i32_22 : i32 to vector<32x32xi32>
    %53 = arith.cmpi slt, %49, %52 : vector<32x32xi32>
    %c0_i32_23 = arith.constant 0 : i32
    %54 = arith.cmpi slt, %47, %c0_i32_23 : i32
    %55 = vector.broadcast %54 : i1 to vector<32x32xi1>
    %56 = vector.broadcast %55 : vector<32x32xi1> to vector<32x32xi1>
    %57 = arith.xori %53, %56 : vector<32x32xi1>
    %58 = arith.andi %57, %51 : vector<32x32xi1>
    %59 = vector.broadcast %47 : i32 to vector<32x32xi32>
    %60 = arith.addi %49, %59 : vector<32x32xi32>
    %61 = arith.select %58, %60, %49 : vector<32x32xi1>, vector<32x32xi32>
    %c0_24 = arith.constant 0 : index
    %c0_25 = arith.constant 0 : index
    %62 = vector.load %arg6[%c0_24, %c0_25] : memref<128x32xf32, #tpu.memory_space<vmem>>, vector<128x32xf32>
    %cst_26 = arith.constant 0.000000e+00 : f32
    %63 = vector.broadcast %cst_26 : f32 to vector<32x32xf32>
    %c0_27 = arith.constant 0 : index
    %c0_28 = arith.constant 0 : index
    %64 = vector.load %arg7[%c0_27, %c0_28] : memref<1x32xf32, #tpu.memory_space<vmem>>, vector<1x32xf32>
    %65 = vector.broadcast %64 : vector<1x32xf32> to vector<32x32xf32>
    %66 = arith.addf %63, %65 : vector<32x32xf32>
    %67 = vector.extract_strided_slice %62 {offsets = [0, 0], sizes = [32, 32], strides = [1, 1]} : vector<128x32xf32> to vector<32x32xf32>
    %c2_i32 = arith.constant 2 : i32
    %68 = tpu.dynamic_rotate %44 by %c2_i32 dim 0 : vector<32x32xf32>, i32 -> vector<32x32xf32>
    %c2_i32_29 = arith.constant 2 : i32
    %69 = vector.broadcast %c2_i32_29 : i32 to vector<32x32xi32>
    %70 = arith.cmpi sge, %61, %69 : vector<32x32xi32>
    %cst_30 = arith.constant 0.000000e+00 : f32
    %71 = vector.broadcast %cst_30 : f32 to vector<32x32xf32>
    %72 = arith.select %70, %68, %71 : vector<32x32xi1>, vector<32x32xf32>
    %cst_31 = arith.constant dense<0.000000e+00> : vector<32x32xf32>
    %73 = tpu.matmul %72, %67, %cst_31 {dimension_numbers = #tpu.dot_dimension_numbers<[1], [0], [0], [1], [0, 0, 1, 1], [], []>} : vector<32x32xf32>, vector<32x32xf32>, vector<32x32xf32> -> vector<32x32xf32>
    %74 = arith.addf %66, %73 : vector<32x32xf32>
    %75 = vector.extract_strided_slice %62 {offsets = [32, 0], sizes = [32, 32], strides = [1, 1]} : vector<128x32xf32> to vector<32x32xf32>
    %c1_i32_32 = arith.constant 1 : i32
    %76 = tpu.dynamic_rotate %44 by %c1_i32_32 dim 0 : vector<32x32xf32>, i32 -> vector<32x32xf32>
    %c1_i32_33 = arith.constant 1 : i32
    %77 = vector.broadcast %c1_i32_33 : i32 to vector<32x32xi32>
    %78 = arith.cmpi sge, %61, %77 : vector<32x32xi32>
    %cst_34 = arith.constant 0.000000e+00 : f32
    %79 = vector.broadcast %cst_34 : f32 to vector<32x32xf32>
    %80 = arith.select %78, %76, %79 : vector<32x32xi1>, vector<32x32xf32>
    %cst_35 = arith.constant dense<0.000000e+00> : vector<32x32xf32>
    %81 = tpu.matmul %80, %75, %cst_35 {dimension_numbers = #tpu.dot_dimension_numbers<[1], [0], [0], [1], [0, 0, 1, 1], [], []>} : vector<32x32xf32>, vector<32x32xf32>, vector<32x32xf32> -> vector<32x32xf32>
    %82 = arith.addf %74, %81 : vector<32x32xf32>
    %83 = vector.extract_strided_slice %62 {offsets = [64, 0], sizes = [32, 32], strides = [1, 1]} : vector<128x32xf32> to vector<32x32xf32>
    %cst_36 = arith.constant dense<0.000000e+00> : vector<32x32xf32>
    %84 = tpu.matmul %44, %83, %cst_36 {dimension_numbers = #tpu.dot_dimension_numbers<[1], [0], [0], [1], [0, 0, 1, 1], [], []>} : vector<32x32xf32>, vector<32x32xf32>, vector<32x32xf32> -> vector<32x32xf32>
    %85 = arith.addf %82, %84 : vector<32x32xf32>
    %86 = vector.extract_strided_slice %62 {offsets = [96, 0], sizes = [32, 32], strides = [1, 1]} : vector<128x32xf32> to vector<32x32xf32>
    %c31_i32 = arith.constant 31 : i32
    %87 = tpu.dynamic_rotate %44 by %c31_i32 dim 0 : vector<32x32xf32>, i32 -> vector<32x32xf32>
    %c15_i32 = arith.constant 15 : i32
    %88 = vector.broadcast %c15_i32 : i32 to vector<32x32xi32>
    %89 = arith.cmpi slt, %61, %88 : vector<32x32xi32>
    %cst_37 = arith.constant 0.000000e+00 : f32
    %90 = vector.broadcast %cst_37 : f32 to vector<32x32xf32>
    %91 = arith.select %89, %87, %90 : vector<32x32xi1>, vector<32x32xf32>
    %cst_38 = arith.constant dense<0.000000e+00> : vector<32x32xf32>
    %92 = tpu.matmul %91, %86, %cst_38 {dimension_numbers = #tpu.dot_dimension_numbers<[1], [0], [0], [1], [0, 0, 1, 1], [], []>} : vector<32x32xf32>, vector<32x32xf32>, vector<32x32xf32> -> vector<32x32xf32>
    %93 = arith.addf %85, %92 : vector<32x32xf32>
    %94 = arith.mulf %93, %93 : vector<32x32xf32>
    %95 = arith.mulf %93, %94 : vector<32x32xf32>
    %cst_39 = arith.constant 4.471500e-02 : f32
    %96 = vector.broadcast %cst_39 : f32 to vector<32x32xf32>
    %97 = arith.mulf %96, %95 : vector<32x32xf32>
    %98 = arith.addf %93, %97 : vector<32x32xf32>
    %cst_40 = arith.constant 0.797884583 : f32
    %99 = vector.broadcast %cst_40 : f32 to vector<32x32xf32>
    %100 = arith.mulf %99, %98 : vector<32x32xf32>
    %101 = math.tanh %100 : vector<32x32xf32>
    %cst_41 = arith.constant 1.000000e+00 : f32
    %102 = vector.broadcast %cst_41 : f32 to vector<32x32xf32>
    %103 = arith.addf %102, %101 : vector<32x32xf32>
    %cst_42 = arith.constant 5.000000e-01 : f32
    %104 = vector.broadcast %cst_42 : f32 to vector<32x32xf32>
    %105 = arith.mulf %104, %103 : vector<32x32xf32>
    %106 = arith.mulf %93, %105 : vector<32x32xf32>
    %107 = arith.addf %44, %106 : vector<32x32xf32>
    %c0_43 = arith.constant 0 : index
    %c0_44 = arith.constant 0 : index
    %108 = vector.load %arg8[%c0_43, %c0_44] : memref<1x32xf32, #tpu.memory_space<vmem>>, vector<1x32xf32>
    %c0_45 = arith.constant 0 : index
    %c0_46 = arith.constant 0 : index
    %109 = vector.load %arg9[%c0_45, %c0_46] : memref<1x32xf32, #tpu.memory_space<vmem>>, vector<1x32xf32>
    %cst_47 = arith.constant dense<0.000000e+00> : vector<32xf32>
    %110 = vector.multi_reduction <add>, %107, %cst_47 [1] : vector<32x32xf32> to vector<32xf32>
    %111 = vector.shape_cast %110 : vector<32xf32> to vector<32x1xf32>
    %cst_48 = arith.constant 3.200000e+01 : f32
    %112 = vector.broadcast %cst_48 : f32 to vector<32x1xf32>
    %113 = arith.divf %111, %112 : vector<32x1xf32>
    %114 = vector.broadcast %113 : vector<32x1xf32> to vector<32x32xf32>
    %115 = arith.subf %107, %114 : vector<32x32xf32>
    %116 = arith.mulf %115, %115 : vector<32x32xf32>
    %cst_49 = arith.constant dense<0.000000e+00> : vector<32xf32>
    %117 = vector.multi_reduction <add>, %116, %cst_49 [1] : vector<32x32xf32> to vector<32xf32>
    %118 = vector.shape_cast %117 : vector<32xf32> to vector<32x1xf32>
    %cst_50 = arith.constant 3.200000e+01 : f32
    %119 = vector.broadcast %cst_50 : f32 to vector<32x1xf32>
    %120 = arith.divf %118, %119 : vector<32x1xf32>
    %121 = vector.broadcast %113 : vector<32x1xf32> to vector<32x32xf32>
    %122 = arith.subf %107, %121 : vector<32x32xf32>
    %cst_51 = arith.constant 9.99999974E-6 : f32
    %123 = vector.broadcast %cst_51 : f32 to vector<32x1xf32>
    %124 = arith.addf %120, %123 : vector<32x1xf32>
    %125 = math.rsqrt %124 : vector<32x1xf32>
    %126 = vector.broadcast %125 : vector<32x1xf32> to vector<32x32xf32>
    %127 = arith.mulf %122, %126 : vector<32x32xf32>
    %128 = vector.broadcast %108 : vector<1x32xf32> to vector<32x32xf32>
    %129 = arith.mulf %127, %128 : vector<32x32xf32>
    %130 = vector.broadcast %109 : vector<1x32xf32> to vector<32x32xf32>
    %131 = arith.addf %129, %130 : vector<32x32xf32>
    %c0_52 = arith.constant 0 : index
    %c0_53 = arith.constant 0 : index
    %132 = vector.load %arg22[%c0_52, %c0_53] : memref<32x32xf32, #tpu.memory_space<vmem>>, vector<32x32xf32>
    tpu.vector_store %arg22[%c0_52, %c0_53], %131 {strides = array<i32>} : memref<32x32xf32, #tpu.memory_space<vmem>>, vector<32x32xf32>,
    %c0_54 = arith.constant 0 : index
    %c0_55 = arith.constant 0 : index
    %c0_56 = arith.constant 0 : index
    %133 = vector.load %arg10[%c0_54, %c0_55, %c0_56] : memref<2x32x96xf32, #tpu.memory_space<vmem>>, vector<1x32x96xf32>
    %134 = vector.shape_cast %133 : vector<1x32x96xf32> to vector<32x96xf32>
    %cst_57 = arith.constant dense<0.000000e+00> : vector<32x96xf32>
    %135 = tpu.matmul %131, %134, %cst_57 {dimension_numbers = #tpu.dot_dimension_numbers<[1], [0], [0], [1], [0, 0, 1, 1], [], []>} : vector<32x32xf32>, vector<32x96xf32>, vector<32x96xf32> -> vector<32x96xf32>
    %c0_58 = arith.constant 0 : index
    %c0_59 = arith.constant 0 : index
    %c0_60 = arith.constant 0 : index
    %136 = vector.load %arg11[%c0_58, %c0_59, %c0_60] : memref<2x1x96xf32, #tpu.memory_space<vmem>>, vector<1x1x96xf32>
    %137 = vector.shape_cast %136 : vector<1x1x96xf32> to vector<1x96xf32>
    %138 = vector.broadcast %137 : vector<1x96xf32> to vector<32x96xf32>
    %139 = arith.addf %135, %138 : vector<32x96xf32>
    %140 = vector.extract_strided_slice %139 {offsets = [0, 0], sizes = [16, 96], strides = [1, 1]} : vector<32x96xf32> to vector<16x96xf32>
    %141 = vector.extract_strided_slice %140 {offsets = [0, 0], sizes = [16, 16], strides = [1, 1]} : vector<16x96xf32> to vector<16x16xf32>
    %cst_61 = arith.constant 2.500000e-01 : f32
    %142 = vector.broadcast %cst_61 : f32 to vector<16x16xf32>
    %143 = arith.mulf %141, %142 : vector<16x16xf32>
    %144 = vector.extract_strided_slice %140 {offsets = [0, 32], sizes = [16, 16], strides = [1, 1]} : vector<16x96xf32> to vector<16x16xf32>
    %145 = vector.extract_strided_slice %140 {offsets = [0, 64], sizes = [16, 16], strides = [1, 1]} : vector<16x96xf32> to vector<16x16xf32>
    %cst_62 = arith.constant dense<0.000000e+00> : vector<16x16xf32>
    %146 = tpu.matmul %143, %144, %cst_62 {dimension_numbers = #tpu.dot_dimension_numbers<[1], [1], [0], [0], [0, 0, 1, 0], [], []>} : vector<16x16xf32>, vector<16x16xf32>, vector<16x16xf32> -> vector<16x16xf32>
    %cst_63 = arith.constant dense<0xFF800000> : vector<16xf32>
    %147 = vector.multi_reduction <maximumf>, %146, %cst_63 [1] : vector<16x16xf32> to vector<16xf32>
    %148 = vector.shape_cast %147 : vector<16xf32> to vector<16x1xf32>
    %149 = vector.broadcast %148 : vector<16x1xf32> to vector<16x16xf32>
    %150 = arith.subf %146, %149 : vector<16x16xf32>
    %151 = math.exp %150 : vector<16x16xf32>
    %cst_64 = arith.constant dense<0.000000e+00> : vector<16xf32>
    %152 = vector.multi_reduction <add>, %151, %cst_64 [1] : vector<16x16xf32> to vector<16xf32>
    %153 = vector.shape_cast %152 : vector<16xf32> to vector<16x1xf32>
    %154 = tpu.reciprocal %153 {approx = true} : vector<16x1xf32> -> vector<16x1xf32>
    %155 = vector.broadcast %154 : vector<16x1xf32> to vector<16x16xf32>
    %156 = arith.mulf %151, %155 : vector<16x16xf32>
    %cst_65 = arith.constant dense<0.000000e+00> : vector<16x16xf32>
    %157 = tpu.matmul %156, %145, %cst_65 {dimension_numbers = #tpu.dot_dimension_numbers<[1], [0], [0], [1], [0, 0, 1, 1], [], []>} : vector<16x16xf32>, vector<16x16xf32>, vector<16x16xf32> -> vector<16x16xf32>
    %158 = vector.extract_strided_slice %140 {offsets = [0, 16], sizes = [16, 16], strides = [1, 1]} : vector<16x96xf32> to vector<16x16xf32>
    %cst_66 = arith.constant 2.500000e-01 : f32
    %159 = vector.broadcast %cst_66 : f32 to vector<16x16xf32>
    %160 = arith.mulf %158, %159 : vector<16x16xf32>
    %161 = vector.extract_strided_slice %140 {offsets = [0, 48], sizes = [16, 16], strides = [1, 1]} : vector<16x96xf32> to vector<16x16xf32>
    %162 = vector.extract_strided_slice %140 {offsets = [0, 80], sizes = [16, 16], strides = [1, 1]} : vector<16x96xf32> to vector<16x16xf32>
    %cst_67 = arith.constant dense<0.000000e+00> : vector<16x16xf32>
    %163 = tpu.matmul %160, %161, %cst_67 {dimension_numbers = #tpu.dot_dimension_numbers<[1], [1], [0], [0], [0, 0, 1, 0], [], []>} : vector<16x16xf32>, vector<16x16xf32>, vector<16x16xf32> -> vector<16x16xf32>
    %cst_68 = arith.constant dense<0xFF800000> : vector<16xf32>
    %164 = vector.multi_reduction <maximumf>, %163, %cst_68 [1] : vector<16x16xf32> to vector<16xf32>
    %165 = vector.shape_cast %164 : vector<16xf32> to vector<16x1xf32>
    %166 = vector.broadcast %165 : vector<16x1xf32> to vector<16x16xf32>
    %167 = arith.subf %163, %166 : vector<16x16xf32>
    %168 = math.exp %167 : vector<16x16xf32>
    %cst_69 = arith.constant dense<0.000000e+00> : vector<16xf32>
    %169 = vector.multi_reduction <add>, %168, %cst_69 [1] : vector<16x16xf32> to vector<16xf32>
    %170 = vector.shape_cast %169 : vector<16xf32> to vector<16x1xf32>
    %171 = tpu.reciprocal %170 {approx = true} : vector<16x1xf32> -> vector<16x1xf32>
    %172 = vector.broadcast %171 : vector<16x1xf32> to vector<16x16xf32>
    %173 = arith.mulf %168, %172 : vector<16x16xf32>
    %cst_70 = arith.constant dense<0.000000e+00> : vector<16x16xf32>
    %174 = tpu.matmul %173, %162, %cst_70 {dimension_numbers = #tpu.dot_dimension_numbers<[1], [0], [0], [1], [0, 0, 1, 1], [], []>} : vector<16x16xf32>, vector<16x16xf32>, vector<16x16xf32> -> vector<16x16xf32>
    %175 = tpu.concatenate %157, %174 in 1 : vector<16x16xf32>, vector<16x16xf32> -> vector<16x32xf32>
    %176 = vector.extract_strided_slice %139 {offsets = [16, 0], sizes = [16, 96], strides = [1, 1]} : vector<32x96xf32> to vector<16x96xf32>
    %177 = vector.extract_strided_slice %176 {offsets = [0, 0], sizes = [16, 16], strides = [1, 1]} : vector<16x96xf32> to vector<16x16xf32>
    %cst_71 = arith.constant 2.500000e-01 : f32
    %178 = vector.broadcast %cst_71 : f32 to vector<16x16xf32>
    %179 = arith.mulf %177, %178 : vector<16x16xf32>
    %180 = vector.extract_strided_slice %176 {offsets = [0, 32], sizes = [16, 16], strides = [1, 1]} : vector<16x96xf32> to vector<16x16xf32>
    %181 = vector.extract_strided_slice %176 {offsets = [0, 64], sizes = [16, 16], strides = [1, 1]} : vector<16x96xf32> to vector<16x16xf32>
    %cst_72 = arith.constant dense<0.000000e+00> : vector<16x16xf32>
    %182 = tpu.matmul %179, %180, %cst_72 {dimension_numbers = #tpu.dot_dimension_numbers<[1], [1], [0], [0], [0, 0, 1, 0], [], []>} : vector<16x16xf32>, vector<16x16xf32>, vector<16x16xf32> -> vector<16x16xf32>
    %cst_73 = arith.constant dense<0xFF800000> : vector<16xf32>
    %183 = vector.multi_reduction <maximumf>, %182, %cst_73 [1] : vector<16x16xf32> to vector<16xf32>
    %184 = vector.shape_cast %183 : vector<16xf32> to vector<16x1xf32>
    %185 = vector.broadcast %184 : vector<16x1xf32> to vector<16x16xf32>
    %186 = arith.subf %182, %185 : vector<16x16xf32>
    %187 = math.exp %186 : vector<16x16xf32>
    %cst_74 = arith.constant dense<0.000000e+00> : vector<16xf32>
    %188 = vector.multi_reduction <add>, %187, %cst_74 [1] : vector<16x16xf32> to vector<16xf32>
    %189 = vector.shape_cast %188 : vector<16xf32> to vector<16x1xf32>
    %190 = tpu.reciprocal %189 {approx = true} : vector<16x1xf32> -> vector<16x1xf32>
    %191 = vector.broadcast %190 : vector<16x1xf32> to vector<16x16xf32>
    %192 = arith.mulf %187, %191 : vector<16x16xf32>
    %cst_75 = arith.constant dense<0.000000e+00> : vector<16x16xf32>
    %193 = tpu.matmul %192, %181, %cst_75 {dimension_numbers = #tpu.dot_dimension_numbers<[1], [0], [0], [1], [0, 0, 1, 1], [], []>} : vector<16x16xf32>, vector<16x16xf32>, vector<16x16xf32> -> vector<16x16xf32>
    %194 = vector.extract_strided_slice %176 {offsets = [0, 16], sizes = [16, 16], strides = [1, 1]} : vector<16x96xf32> to vector<16x16xf32>
    %cst_76 = arith.constant 2.500000e-01 : f32
    %195 = vector.broadcast %cst_76 : f32 to vector<16x16xf32>
    %196 = arith.mulf %194, %195 : vector<16x16xf32>
    %197 = vector.extract_strided_slice %176 {offsets = [0, 48], sizes = [16, 16], strides = [1, 1]} : vector<16x96xf32> to vector<16x16xf32>
    %198 = vector.extract_strided_slice %176 {offsets = [0, 80], sizes = [16, 16], strides = [1, 1]} : vector<16x96xf32> to vector<16x16xf32>
    %cst_77 = arith.constant dense<0.000000e+00> : vector<16x16xf32>
    %199 = tpu.matmul %196, %197, %cst_77 {dimension_numbers = #tpu.dot_dimension_numbers<[1], [1], [0], [0], [0, 0, 1, 0], [], []>} : vector<16x16xf32>, vector<16x16xf32>, vector<16x16xf32> -> vector<16x16xf32>
    %cst_78 = arith.constant dense<0xFF800000> : vector<16xf32>
    %200 = vector.multi_reduction <maximumf>, %199, %cst_78 [1] : vector<16x16xf32> to vector<16xf32>
    %201 = vector.shape_cast %200 : vector<16xf32> to vector<16x1xf32>
    %202 = vector.broadcast %201 : vector<16x1xf32> to vector<16x16xf32>
    %203 = arith.subf %199, %202 : vector<16x16xf32>
    %204 = math.exp %203 : vector<16x16xf32>
    %cst_79 = arith.constant dense<0.000000e+00> : vector<16xf32>
    %205 = vector.multi_reduction <add>, %204, %cst_79 [1] : vector<16x16xf32> to vector<16xf32>
    %206 = vector.shape_cast %205 : vector<16xf32> to vector<16x1xf32>
    %207 = tpu.reciprocal %206 {approx = true} : vector<16x1xf32> -> vector<16x1xf32>
    %208 = vector.broadcast %207 : vector<16x1xf32> to vector<16x16xf32>
    %209 = arith.mulf %204, %208 : vector<16x16xf32>
    %cst_80 = arith.constant dense<0.000000e+00> : vector<16x16xf32>
    %210 = tpu.matmul %209, %198, %cst_80 {dimension_numbers = #tpu.dot_dimension_numbers<[1], [0], [0], [1], [0, 0, 1, 1], [], []>} : vector<16x16xf32>, vector<16x16xf32>, vector<16x16xf32> -> vector<16x16xf32>
    %211 = tpu.concatenate %193, %210 in 1 : vector<16x16xf32>, vector<16x16xf32> -> vector<16x32xf32>
    %212 = tpu.concatenate %175, %211 in 0 : vector<16x32xf32>, vector<16x32xf32> -> vector<32x32xf32>
    %c0_81 = arith.constant 0 : index
    %c0_82 = arith.constant 0 : index
    %c0_83 = arith.constant 0 : index
    %213 = vector.load %arg12[%c0_81, %c0_82, %c0_83] : memref<2x32x32xf32, #tpu.memory_space<vmem>>, vector<1x32x32xf32>
    %214 = vector.shape_cast %213 : vector<1x32x32xf32> to vector<32x32xf32>
    %cst_84 = arith.constant dense<0.000000e+00> : vector<32x32xf32>
    %215 = tpu.matmul %212, %214, %cst_84 {dimension_numbers = #tpu.dot_dimension_numbers<[1], [0], [0], [1], [0, 0, 1, 1], [], []>} : vector<32x32xf32>, vector<32x32xf32>, vector<32x32xf32> -> vector<32x32xf32>
    %c0_85 = arith.constant 0 : index
    %c0_86 = arith.constant 0 : index
    %c0_87 = arith.constant 0 : index
    %216 = vector.load %arg13[%c0_85, %c0_86, %c0_87] : memref<2x1x32xf32, #tpu.memory_space<vmem>>, vector<1x1x32xf32>
    %217 = vector.shape_cast %216 : vector<1x1x32xf32> to vector<1x32xf32>
    %218 = vector.broadcast %217 : vector<1x32xf32> to vector<32x32xf32>
    %219 = arith.addf %215, %218 : vector<32x32xf32>
    %220 = arith.addf %131, %219 : vector<32x32xf32>
    %c0_88 = arith.constant 0 : index
    %c0_89 = arith.constant 0 : index
    %c0_90 = arith.constant 0 : index
    %221 = vector.load %arg14[%c0_88, %c0_89, %c0_90] : memref<2x1x32xf32, #tpu.memory_space<vmem>>, vector<1x1x32xf32>
    %222 = vector.shape_cast %221 : vector<1x1x32xf32> to vector<1x32xf32>
    %c0_91 = arith.constant 0 : index
    %c0_92 = arith.constant 0 : index
    %c0_93 = arith.constant 0 : index
    %223 = vector.load %arg15[%c0_91, %c0_92, %c0_93] : memref<2x1x32xf32, #tpu.memory_space<vmem>>, vector<1x1x32xf32>
    %224 = vector.shape_cast %223 : vector<1x1x32xf32> to vector<1x32xf32>
    %cst_94 = arith.constant dense<0.000000e+00> : vector<32xf32>
    %225 = vector.multi_reduction <add>, %220, %cst_94 [1] : vector<32x32xf32> to vector<32xf32>
    %226 = vector.shape_cast %225 : vector<32xf32> to vector<32x1xf32>
    %cst_95 = arith.constant 3.200000e+01 : f32
    %227 = vector.broadcast %cst_95 : f32 to vector<32x1xf32>
    %228 = arith.divf %226, %227 : vector<32x1xf32>
    %229 = vector.broadcast %228 : vector<32x1xf32> to vector<32x32xf32>
    %230 = arith.subf %220, %229 : vector<32x32xf32>
    %231 = arith.mulf %230, %230 : vector<32x32xf32>
    %cst_96 = arith.constant dense<0.000000e+00> : vector<32xf32>
    %232 = vector.multi_reduction <add>, %231, %cst_96 [1] : vector<32x32xf32> to vector<32xf32>
    %233 = vector.shape_cast %232 : vector<32xf32> to vector<32x1xf32>
    %cst_97 = arith.constant 3.200000e+01 : f32
    %234 = vector.broadcast %cst_97 : f32 to vector<32x1xf32>
    %235 = arith.divf %233, %234 : vector<32x1xf32>
    %236 = vector.broadcast %228 : vector<32x1xf32> to vector<32x32xf32>
    %237 = arith.subf %220, %236 : vector<32x32xf32>
    %cst_98 = arith.constant 9.99999974E-6 : f32
    %238 = vector.broadcast %cst_98 : f32 to vector<32x1xf32>
    %239 = arith.addf %235, %238 : vector<32x1xf32>
    %240 = math.rsqrt %239 : vector<32x1xf32>
    %241 = vector.broadcast %240 : vector<32x1xf32> to vector<32x32xf32>
    %242 = arith.mulf %237, %241 : vector<32x32xf32>
    %243 = vector.broadcast %222 : vector<1x32xf32> to vector<32x32xf32>
    %244 = arith.mulf %242, %243 : vector<32x32xf32>
    %245 = vector.broadcast %224 : vector<1x32xf32> to vector<32x32xf32>
    %246 = arith.addf %244, %245 : vector<32x32xf32>
    %c0_99 = arith.constant 0 : index
    %c0_100 = arith.constant 0 : index
    %c0_101 = arith.constant 0 : index
    %247 = vector.load %arg16[%c0_99, %c0_100, %c0_101] : memref<2x32x64xf32, #tpu.memory_space<vmem>>, vector<1x32x64xf32>
    %248 = vector.shape_cast %247 : vector<1x32x64xf32> to vector<32x64xf32>
    %cst_102 = arith.constant dense<0.000000e+00> : vector<32x64xf32>
    %249 = tpu.matmul %246, %248, %cst_102 {dimension_numbers = #tpu.dot_dimension_numbers<[1], [0], [0], [1], [0, 0, 1, 1], [], []>} : vector<32x32xf32>, vector<32x64xf32>, vector<32x64xf32> -> vector<32x64xf32>
    %c0_103 = arith.constant 0 : index
    %c0_104 = arith.constant 0 : index
    %c0_105 = arith.constant 0 : index
    %250 = vector.load %arg17[%c0_103, %c0_104, %c0_105] : memref<2x1x64xf32, #tpu.memory_space<vmem>>, vector<1x1x64xf32>
    %251 = vector.shape_cast %250 : vector<1x1x64xf32> to vector<1x64xf32>
    %252 = vector.broadcast %251 : vector<1x64xf32> to vector<32x64xf32>
    %253 = arith.addf %249, %252 : vector<32x64xf32>
    %254 = arith.mulf %253, %253 : vector<32x64xf32>
    %255 = arith.mulf %253, %254 : vector<32x64xf32>
    %cst_106 = arith.constant 4.471500e-02 : f32
    %256 = vector.broadcast %cst_106 : f32 to vector<32x64xf32>
    %257 = arith.mulf %256, %255 : vector<32x64xf32>
    %258 = arith.addf %253, %257 : vector<32x64xf32>
    %cst_107 = arith.constant 0.797884583 : f32
    %259 = vector.broadcast %cst_107 : f32 to vector<32x64xf32>
    %260 = arith.mulf %259, %258 : vector<32x64xf32>
    %261 = math.tanh %260 : vector<32x64xf32>
    %cst_108 = arith.constant 1.000000e+00 : f32
    %262 = vector.broadcast %cst_108 : f32 to vector<32x64xf32>
    %263 = arith.addf %262, %261 : vector<32x64xf32>
    %cst_109 = arith.constant 5.000000e-01 : f32
    %264 = vector.broadcast %cst_109 : f32 to vector<32x64xf32>
    %265 = arith.mulf %264, %263 : vector<32x64xf32>
    %266 = arith.mulf %253, %265 : vector<32x64xf32>
    %c0_110 = arith.constant 0 : index
    %c0_111 = arith.constant 0 : index
    %c0_112 = arith.constant 0 : index
    %267 = vector.load %arg18[%c0_110, %c0_111, %c0_112] : memref<2x64x32xf32, #tpu.memory_space<vmem>>, vector<1x64x32xf32>
    %268 = vector.shape_cast %267 : vector<1x64x32xf32> to vector<64x32xf32>
    %cst_113 = arith.constant dense<0.000000e+00> : vector<32x32xf32>
    %269 = tpu.matmul %266, %268, %cst_113 {dimension_numbers = #tpu.dot_dimension_numbers<[1], [0], [0], [1], [0, 0, 1, 1], [], []>} : vector<32x64xf32>, vector<64x32xf32>, vector<32x32xf32> -> vector<32x32xf32>
    %c0_114 = arith.constant 0 : index
    %c0_115 = arith.constant 0 : index
    %c0_116 = arith.constant 0 : index
    %270 = vector.load %arg19[%c0_114, %c0_115, %c0_116] : memref<2x1x32xf32, #tpu.memory_space<vmem>>, vector<1x1x32xf32>
    %271 = vector.shape_cast %270 : vector<1x1x32xf32> to vector<1x32xf32>
    %272 = vector.broadcast %271 : vector<1x32xf32> to vector<32x32xf32>
    %273 = arith.addf %269, %272 : vector<32x32xf32>
    %274 = arith.addf %246, %273 : vector<32x32xf32>
    %c0_117 = arith.constant 0 : index
    %c0_118 = arith.constant 0 : index
    %c0_119 = arith.constant 0 : index
    %275 = vector.load %arg20[%c0_117, %c0_118, %c0_119] : memref<2x1x32xf32, #tpu.memory_space<vmem>>, vector<1x1x32xf32>
    %276 = vector.shape_cast %275 : vector<1x1x32xf32> to vector<1x32xf32>
    %c0_120 = arith.constant 0 : index
    %c0_121 = arith.constant 0 : index
    %c0_122 = arith.constant 0 : index
    %277 = vector.load %arg21[%c0_120, %c0_121, %c0_122] : memref<2x1x32xf32, #tpu.memory_space<vmem>>, vector<1x1x32xf32>
    %278 = vector.shape_cast %277 : vector<1x1x32xf32> to vector<1x32xf32>
    %cst_123 = arith.constant dense<0.000000e+00> : vector<32xf32>
    %279 = vector.multi_reduction <add>, %274, %cst_123 [1] : vector<32x32xf32> to vector<32xf32>
    %280 = vector.shape_cast %279 : vector<32xf32> to vector<32x1xf32>
    %cst_124 = arith.constant 3.200000e+01 : f32
    %281 = vector.broadcast %cst_124 : f32 to vector<32x1xf32>
    %282 = arith.divf %280, %281 : vector<32x1xf32>
    %283 = vector.broadcast %282 : vector<32x1xf32> to vector<32x32xf32>
    %284 = arith.subf %274, %283 : vector<32x32xf32>
    %285 = arith.mulf %284, %284 : vector<32x32xf32>
    %cst_125 = arith.constant dense<0.000000e+00> : vector<32xf32>
    %286 = vector.multi_reduction <add>, %285, %cst_125 [1] : vector<32x32xf32> to vector<32xf32>
    %287 = vector.shape_cast %286 : vector<32xf32> to vector<32x1xf32>
    %cst_126 = arith.constant 3.200000e+01 : f32
    %288 = vector.broadcast %cst_126 : f32 to vector<32x1xf32>
    %289 = arith.divf %287, %288 : vector<32x1xf32>
    %290 = vector.broadcast %282 : vector<32x1xf32> to vector<32x32xf32>
    %291 = arith.subf %274, %290 : vector<32x32xf32>
    %cst_127 = arith.constant 9.99999974E-6 : f32
    %292 = vector.broadcast %cst_127 : f32 to vector<32x1xf32>
    %293 = arith.addf %289, %292 : vector<32x1xf32>
    %294 = math.rsqrt %293 : vector<32x1xf32>
    %295 = vector.broadcast %294 : vector<32x1xf32> to vector<32x32xf32>
    %296 = arith.mulf %291, %295 : vector<32x32xf32>
    %297 = vector.broadcast %276 : vector<1x32xf32> to vector<32x32xf32>
    %298 = arith.mulf %296, %297 : vector<32x32xf32>
    %299 = vector.broadcast %278 : vector<1x32xf32> to vector<32x32xf32>
    %300 = arith.addf %298, %299 : vector<32x32xf32>
    %c0_128 = arith.constant 0 : index
    %c0_129 = arith.constant 0 : index
    %301 = vector.load %arg23[%c0_128, %c0_129] : memref<32x32xf32, #tpu.memory_space<vmem>>, vector<32x32xf32>
    tpu.vector_store %arg23[%c0_128, %c0_129], %300 {strides = array<i32>} : memref<32x32xf32, #tpu.memory_space<vmem>>, vector<32x32xf32>,
    %c1 = arith.constant 1 : index
    %c0_130 = arith.constant 0 : index
    %c0_131 = arith.constant 0 : index
    %302 = vector.load %arg10[%c1, %c0_130, %c0_131] : memref<2x32x96xf32, #tpu.memory_space<vmem>>, vector<1x32x96xf32>
    %303 = vector.shape_cast %302 : vector<1x32x96xf32> to vector<32x96xf32>
    %cst_132 = arith.constant dense<0.000000e+00> : vector<32x96xf32>
    %304 = tpu.matmul %300, %303, %cst_132 {dimension_numbers = #tpu.dot_dimension_numbers<[1], [0], [0], [1], [0, 0, 1, 1], [], []>} : vector<32x32xf32>, vector<32x96xf32>, vector<32x96xf32> -> vector<32x96xf32>
    %c1_133 = arith.constant 1 : index
    %c0_134 = arith.constant 0 : index
    %c0_135 = arith.constant 0 : index
    %305 = vector.load %arg11[%c1_133, %c0_134, %c0_135] : memref<2x1x96xf32, #tpu.memory_space<vmem>>, vector<1x1x96xf32>
    %306 = vector.shape_cast %305 : vector<1x1x96xf32> to vector<1x96xf32>
    %307 = vector.broadcast %306 : vector<1x96xf32> to vector<32x96xf32>
    %308 = arith.addf %304, %307 : vector<32x96xf32>
    %309 = vector.extract_strided_slice %308 {offsets = [0, 0], sizes = [16, 96], strides = [1, 1]} : vector<32x96xf32> to vector<16x96xf32>
    %310 = vector.extract_strided_slice %309 {offsets = [0, 0], sizes = [16, 16], strides = [1, 1]} : vector<16x96xf32> to vector<16x16xf32>
    %cst_136 = arith.constant 2.500000e-01 : f32
    %311 = vector.broadcast %cst_136 : f32 to vector<16x16xf32>
    %312 = arith.mulf %310, %311 : vector<16x16xf32>
    %313 = vector.extract_strided_slice %309 {offsets = [0, 32], sizes = [16, 16], strides = [1, 1]} : vector<16x96xf32> to vector<16x16xf32>
    %314 = vector.extract_strided_slice %309 {offsets = [0, 64], sizes = [16, 16], strides = [1, 1]} : vector<16x96xf32> to vector<16x16xf32>
    %cst_137 = arith.constant dense<0.000000e+00> : vector<16x16xf32>
    %315 = tpu.matmul %312, %313, %cst_137 {dimension_numbers = #tpu.dot_dimension_numbers<[1], [1], [0], [0], [0, 0, 1, 0], [], []>} : vector<16x16xf32>, vector<16x16xf32>, vector<16x16xf32> -> vector<16x16xf32>
    %cst_138 = arith.constant dense<0xFF800000> : vector<16xf32>
    %316 = vector.multi_reduction <maximumf>, %315, %cst_138 [1] : vector<16x16xf32> to vector<16xf32>
    %317 = vector.shape_cast %316 : vector<16xf32> to vector<16x1xf32>
    %318 = vector.broadcast %317 : vector<16x1xf32> to vector<16x16xf32>
    %319 = arith.subf %315, %318 : vector<16x16xf32>
    %320 = math.exp %319 : vector<16x16xf32>
    %cst_139 = arith.constant dense<0.000000e+00> : vector<16xf32>
    %321 = vector.multi_reduction <add>, %320, %cst_139 [1] : vector<16x16xf32> to vector<16xf32>
    %322 = vector.shape_cast %321 : vector<16xf32> to vector<16x1xf32>
    %323 = tpu.reciprocal %322 {approx = true} : vector<16x1xf32> -> vector<16x1xf32>
    %324 = vector.broadcast %323 : vector<16x1xf32> to vector<16x16xf32>
    %325 = arith.mulf %320, %324 : vector<16x16xf32>
    %cst_140 = arith.constant dense<0.000000e+00> : vector<16x16xf32>
    %326 = tpu.matmul %325, %314, %cst_140 {dimension_numbers = #tpu.dot_dimension_numbers<[1], [0], [0], [1], [0, 0, 1, 1], [], []>} : vector<16x16xf32>, vector<16x16xf32>, vector<16x16xf32> -> vector<16x16xf32>
    %327 = vector.extract_strided_slice %309 {offsets = [0, 16], sizes = [16, 16], strides = [1, 1]} : vector<16x96xf32> to vector<16x16xf32>
    %cst_141 = arith.constant 2.500000e-01 : f32
    %328 = vector.broadcast %cst_141 : f32 to vector<16x16xf32>
    %329 = arith.mulf %327, %328 : vector<16x16xf32>
    %330 = vector.extract_strided_slice %309 {offsets = [0, 48], sizes = [16, 16], strides = [1, 1]} : vector<16x96xf32> to vector<16x16xf32>
    %331 = vector.extract_strided_slice %309 {offsets = [0, 80], sizes = [16, 16], strides = [1, 1]} : vector<16x96xf32> to vector<16x16xf32>
    %cst_142 = arith.constant dense<0.000000e+00> : vector<16x16xf32>
    %332 = tpu.matmul %329, %330, %cst_142 {dimension_numbers = #tpu.dot_dimension_numbers<[1], [1], [0], [0], [0, 0, 1, 0], [], []>} : vector<16x16xf32>, vector<16x16xf32>, vector<16x16xf32> -> vector<16x16xf32>
    %cst_143 = arith.constant dense<0xFF800000> : vector<16xf32>
    %333 = vector.multi_reduction <maximumf>, %332, %cst_143 [1] : vector<16x16xf32> to vector<16xf32>
    %334 = vector.shape_cast %333 : vector<16xf32> to vector<16x1xf32>
    %335 = vector.broadcast %334 : vector<16x1xf32> to vector<16x16xf32>
    %336 = arith.subf %332, %335 : vector<16x16xf32>
    %337 = math.exp %336 : vector<16x16xf32>
    %cst_144 = arith.constant dense<0.000000e+00> : vector<16xf32>
    %338 = vector.multi_reduction <add>, %337, %cst_144 [1] : vector<16x16xf32> to vector<16xf32>
    %339 = vector.shape_cast %338 : vector<16xf32> to vector<16x1xf32>
    %340 = tpu.reciprocal %339 {approx = true} : vector<16x1xf32> -> vector<16x1xf32>
    %341 = vector.broadcast %340 : vector<16x1xf32> to vector<16x16xf32>
    %342 = arith.mulf %337, %341 : vector<16x16xf32>
    %cst_145 = arith.constant dense<0.000000e+00> : vector<16x16xf32>
    %343 = tpu.matmul %342, %331, %cst_145 {dimension_numbers = #tpu.dot_dimension_numbers<[1], [0], [0], [1], [0, 0, 1, 1], [], []>} : vector<16x16xf32>, vector<16x16xf32>, vector<16x16xf32> -> vector<16x16xf32>
    %344 = tpu.concatenate %326, %343 in 1 : vector<16x16xf32>, vector<16x16xf32> -> vector<16x32xf32>
    %345 = vector.extract_strided_slice %308 {offsets = [16, 0], sizes = [16, 96], strides = [1, 1]} : vector<32x96xf32> to vector<16x96xf32>
    %346 = vector.extract_strided_slice %345 {offsets = [0, 0], sizes = [16, 16], strides = [1, 1]} : vector<16x96xf32> to vector<16x16xf32>
    %cst_146 = arith.constant 2.500000e-01 : f32
    %347 = vector.broadcast %cst_146 : f32 to vector<16x16xf32>
    %348 = arith.mulf %346, %347 : vector<16x16xf32>
    %349 = vector.extract_strided_slice %345 {offsets = [0, 32], sizes = [16, 16], strides = [1, 1]} : vector<16x96xf32> to vector<16x16xf32>
    %350 = vector.extract_strided_slice %345 {offsets = [0, 64], sizes = [16, 16], strides = [1, 1]} : vector<16x96xf32> to vector<16x16xf32>
    %cst_147 = arith.constant dense<0.000000e+00> : vector<16x16xf32>
    %351 = tpu.matmul %348, %349, %cst_147 {dimension_numbers = #tpu.dot_dimension_numbers<[1], [1], [0], [0], [0, 0, 1, 0], [], []>} : vector<16x16xf32>, vector<16x16xf32>, vector<16x16xf32> -> vector<16x16xf32>
    %cst_148 = arith.constant dense<0xFF800000> : vector<16xf32>
    %352 = vector.multi_reduction <maximumf>, %351, %cst_148 [1] : vector<16x16xf32> to vector<16xf32>
    %353 = vector.shape_cast %352 : vector<16xf32> to vector<16x1xf32>
    %354 = vector.broadcast %353 : vector<16x1xf32> to vector<16x16xf32>
    %355 = arith.subf %351, %354 : vector<16x16xf32>
    %356 = math.exp %355 : vector<16x16xf32>
    %cst_149 = arith.constant dense<0.000000e+00> : vector<16xf32>
    %357 = vector.multi_reduction <add>, %356, %cst_149 [1] : vector<16x16xf32> to vector<16xf32>
    %358 = vector.shape_cast %357 : vector<16xf32> to vector<16x1xf32>
    %359 = tpu.reciprocal %358 {approx = true} : vector<16x1xf32> -> vector<16x1xf32>
    %360 = vector.broadcast %359 : vector<16x1xf32> to vector<16x16xf32>
    %361 = arith.mulf %356, %360 : vector<16x16xf32>
    %cst_150 = arith.constant dense<0.000000e+00> : vector<16x16xf32>
    %362 = tpu.matmul %361, %350, %cst_150 {dimension_numbers = #tpu.dot_dimension_numbers<[1], [0], [0], [1], [0, 0, 1, 1], [], []>} : vector<16x16xf32>, vector<16x16xf32>, vector<16x16xf32> -> vector<16x16xf32>
    %363 = vector.extract_strided_slice %345 {offsets = [0, 16], sizes = [16, 16], strides = [1, 1]} : vector<16x96xf32> to vector<16x16xf32>
    %cst_151 = arith.constant 2.500000e-01 : f32
    %364 = vector.broadcast %cst_151 : f32 to vector<16x16xf32>
    %365 = arith.mulf %363, %364 : vector<16x16xf32>
    %366 = vector.extract_strided_slice %345 {offsets = [0, 48], sizes = [16, 16], strides = [1, 1]} : vector<16x96xf32> to vector<16x16xf32>
    %367 = vector.extract_strided_slice %345 {offsets = [0, 80], sizes = [16, 16], strides = [1, 1]} : vector<16x96xf32> to vector<16x16xf32>
    %cst_152 = arith.constant dense<0.000000e+00> : vector<16x16xf32>
    %368 = tpu.matmul %365, %366, %cst_152 {dimension_numbers = #tpu.dot_dimension_numbers<[1], [1], [0], [0], [0, 0, 1, 0], [], []>} : vector<16x16xf32>, vector<16x16xf32>, vector<16x16xf32> -> vector<16x16xf32>
    %cst_153 = arith.constant dense<0xFF800000> : vector<16xf32>
    %369 = vector.multi_reduction <maximumf>, %368, %cst_153 [1] : vector<16x16xf32> to vector<16xf32>
    %370 = vector.shape_cast %369 : vector<16xf32> to vector<16x1xf32>
    %371 = vector.broadcast %370 : vector<16x1xf32> to vector<16x16xf32>
    %372 = arith.subf %368, %371 : vector<16x16xf32>
    %373 = math.exp %372 : vector<16x16xf32>
    %cst_154 = arith.constant dense<0.000000e+00> : vector<16xf32>
    %374 = vector.multi_reduction <add>, %373, %cst_154 [1] : vector<16x16xf32> to vector<16xf32>
    %375 = vector.shape_cast %374 : vector<16xf32> to vector<16x1xf32>
    %376 = tpu.reciprocal %375 {approx = true} : vector<16x1xf32> -> vector<16x1xf32>
    %377 = vector.broadcast %376 : vector<16x1xf32> to vector<16x16xf32>
    %378 = arith.mulf %373, %377 : vector<16x16xf32>
    %cst_155 = arith.constant dense<0.000000e+00> : vector<16x16xf32>
    %379 = tpu.matmul %378, %367, %cst_155 {dimension_numbers = #tpu.dot_dimension_numbers<[1], [0], [0], [1], [0, 0, 1, 1], [], []>} : vector<16x16xf32>, vector<16x16xf32>, vector<16x16xf32> -> vector<16x16xf32>
    %380 = tpu.concatenate %362, %379 in 1 : vector<16x16xf32>, vector<16x16xf32> -> vector<16x32xf32>
    %381 = tpu.concatenate %344, %380 in 0 : vector<16x32xf32>, vector<16x32xf32> -> vector<32x32xf32>
    %c1_156 = arith.constant 1 : index
    %c0_157 = arith.constant 0 : index
    %c0_158 = arith.constant 0 : index
    %382 = vector.load %arg12[%c1_156, %c0_157, %c0_158] : memref<2x32x32xf32, #tpu.memory_space<vmem>>, vector<1x32x32xf32>
    %383 = vector.shape_cast %382 : vector<1x32x32xf32> to vector<32x32xf32>
    %cst_159 = arith.constant dense<0.000000e+00> : vector<32x32xf32>
    %384 = tpu.matmul %381, %383, %cst_159 {dimension_numbers = #tpu.dot_dimension_numbers<[1], [0], [0], [1], [0, 0, 1, 1], [], []>} : vector<32x32xf32>, vector<32x32xf32>, vector<32x32xf32> -> vector<32x32xf32>
    %c1_160 = arith.constant 1 : index
    %c0_161 = arith.constant 0 : index
    %c0_162 = arith.constant 0 : index
    %385 = vector.load %arg13[%c1_160, %c0_161, %c0_162] : memref<2x1x32xf32, #tpu.memory_space<vmem>>, vector<1x1x32xf32>
    %386 = vector.shape_cast %385 : vector<1x1x32xf32> to vector<1x32xf32>
    %387 = vector.broadcast %386 : vector<1x32xf32> to vector<32x32xf32>
    %388 = arith.addf %384, %387 : vector<32x32xf32>
    %389 = arith.addf %300, %388 : vector<32x32xf32>
    %c1_163 = arith.constant 1 : index
    %c0_164 = arith.constant 0 : index
    %c0_165 = arith.constant 0 : index
    %390 = vector.load %arg14[%c1_163, %c0_164, %c0_165] : memref<2x1x32xf32, #tpu.memory_space<vmem>>, vector<1x1x32xf32>
    %391 = vector.shape_cast %390 : vector<1x1x32xf32> to vector<1x32xf32>
    %c1_166 = arith.constant 1 : index
    %c0_167 = arith.constant 0 : index
    %c0_168 = arith.constant 0 : index
    %392 = vector.load %arg15[%c1_166, %c0_167, %c0_168] : memref<2x1x32xf32, #tpu.memory_space<vmem>>, vector<1x1x32xf32>
    %393 = vector.shape_cast %392 : vector<1x1x32xf32> to vector<1x32xf32>
    %cst_169 = arith.constant dense<0.000000e+00> : vector<32xf32>
    %394 = vector.multi_reduction <add>, %389, %cst_169 [1] : vector<32x32xf32> to vector<32xf32>
    %395 = vector.shape_cast %394 : vector<32xf32> to vector<32x1xf32>
    %cst_170 = arith.constant 3.200000e+01 : f32
    %396 = vector.broadcast %cst_170 : f32 to vector<32x1xf32>
    %397 = arith.divf %395, %396 : vector<32x1xf32>
    %398 = vector.broadcast %397 : vector<32x1xf32> to vector<32x32xf32>
    %399 = arith.subf %389, %398 : vector<32x32xf32>
    %400 = arith.mulf %399, %399 : vector<32x32xf32>
    %cst_171 = arith.constant dense<0.000000e+00> : vector<32xf32>
    %401 = vector.multi_reduction <add>, %400, %cst_171 [1] : vector<32x32xf32> to vector<32xf32>
    %402 = vector.shape_cast %401 : vector<32xf32> to vector<32x1xf32>
    %cst_172 = arith.constant 3.200000e+01 : f32
    %403 = vector.broadcast %cst_172 : f32 to vector<32x1xf32>
    %404 = arith.divf %402, %403 : vector<32x1xf32>
    %405 = vector.broadcast %397 : vector<32x1xf32> to vector<32x32xf32>
    %406 = arith.subf %389, %405 : vector<32x32xf32>
    %cst_173 = arith.constant 9.99999974E-6 : f32
    %407 = vector.broadcast %cst_173 : f32 to vector<32x1xf32>
    %408 = arith.addf %404, %407 : vector<32x1xf32>
    %409 = math.rsqrt %408 : vector<32x1xf32>
    %410 = vector.broadcast %409 : vector<32x1xf32> to vector<32x32xf32>
    %411 = arith.mulf %406, %410 : vector<32x32xf32>
    %412 = vector.broadcast %391 : vector<1x32xf32> to vector<32x32xf32>
    %413 = arith.mulf %411, %412 : vector<32x32xf32>
    %414 = vector.broadcast %393 : vector<1x32xf32> to vector<32x32xf32>
    %415 = arith.addf %413, %414 : vector<32x32xf32>
    %c1_174 = arith.constant 1 : index
    %c0_175 = arith.constant 0 : index
    %c0_176 = arith.constant 0 : index
    %416 = vector.load %arg16[%c1_174, %c0_175, %c0_176] : memref<2x32x64xf32, #tpu.memory_space<vmem>>, vector<1x32x64xf32>
    %417 = vector.shape_cast %416 : vector<1x32x64xf32> to vector<32x64xf32>
    %cst_177 = arith.constant dense<0.000000e+00> : vector<32x64xf32>
    %418 = tpu.matmul %415, %417, %cst_177 {dimension_numbers = #tpu.dot_dimension_numbers<[1], [0], [0], [1], [0, 0, 1, 1], [], []>} : vector<32x32xf32>, vector<32x64xf32>, vector<32x64xf32> -> vector<32x64xf32>
    %c1_178 = arith.constant 1 : index
    %c0_179 = arith.constant 0 : index
    %c0_180 = arith.constant 0 : index
    %419 = vector.load %arg17[%c1_178, %c0_179, %c0_180] : memref<2x1x64xf32, #tpu.memory_space<vmem>>, vector<1x1x64xf32>
    %420 = vector.shape_cast %419 : vector<1x1x64xf32> to vector<1x64xf32>
    %421 = vector.broadcast %420 : vector<1x64xf32> to vector<32x64xf32>
    %422 = arith.addf %418, %421 : vector<32x64xf32>
    %423 = arith.mulf %422, %422 : vector<32x64xf32>
    %424 = arith.mulf %422, %423 : vector<32x64xf32>
    %cst_181 = arith.constant 4.471500e-02 : f32
    %425 = vector.broadcast %cst_181 : f32 to vector<32x64xf32>
    %426 = arith.mulf %425, %424 : vector<32x64xf32>
    %427 = arith.addf %422, %426 : vector<32x64xf32>
    %cst_182 = arith.constant 0.797884583 : f32
    %428 = vector.broadcast %cst_182 : f32 to vector<32x64xf32>
    %429 = arith.mulf %428, %427 : vector<32x64xf32>
    %430 = math.tanh %429 : vector<32x64xf32>
    %cst_183 = arith.constant 1.000000e+00 : f32
    %431 = vector.broadcast %cst_183 : f32 to vector<32x64xf32>
    %432 = arith.addf %431, %430 : vector<32x64xf32>
    %cst_184 = arith.constant 5.000000e-01 : f32
    %433 = vector.broadcast %cst_184 : f32 to vector<32x64xf32>
    %434 = arith.mulf %433, %432 : vector<32x64xf32>
    %435 = arith.mulf %422, %434 : vector<32x64xf32>
    %c1_185 = arith.constant 1 : index
    %c0_186 = arith.constant 0 : index
    %c0_187 = arith.constant 0 : index
    %436 = vector.load %arg18[%c1_185, %c0_186, %c0_187] : memref<2x64x32xf32, #tpu.memory_space<vmem>>, vector<1x64x32xf32>
    %437 = vector.shape_cast %436 : vector<1x64x32xf32> to vector<64x32xf32>
    %cst_188 = arith.constant dense<0.000000e+00> : vector<32x32xf32>
    %438 = tpu.matmul %435, %437, %cst_188 {dimension_numbers = #tpu.dot_dimension_numbers<[1], [0], [0], [1], [0, 0, 1, 1], [], []>} : vector<32x64xf32>, vector<64x32xf32>, vector<32x32xf32> -> vector<32x32xf32>
    %c1_189 = arith.constant 1 : index
    %c0_190 = arith.constant 0 : index
    %c0_191 = arith.constant 0 : index
    %439 = vector.load %arg19[%c1_189, %c0_190, %c0_191] : memref<2x1x32xf32, #tpu.memory_space<vmem>>, vector<1x1x32xf32>
    %440 = vector.shape_cast %439 : vector<1x1x32xf32> to vector<1x32xf32>
    %441 = vector.broadcast %440 : vector<1x32xf32> to vector<32x32xf32>
    %442 = arith.addf %438, %441 : vector<32x32xf32>
    %443 = arith.addf %415, %442 : vector<32x32xf32>
    %c1_192 = arith.constant 1 : index
    %c0_193 = arith.constant 0 : index
    %c0_194 = arith.constant 0 : index
    %444 = vector.load %arg20[%c1_192, %c0_193, %c0_194] : memref<2x1x32xf32, #tpu.memory_space<vmem>>, vector<1x1x32xf32>
    %445 = vector.shape_cast %444 : vector<1x1x32xf32> to vector<1x32xf32>
    %c1_195 = arith.constant 1 : index
    %c0_196 = arith.constant 0 : index
    %c0_197 = arith.constant 0 : index
    %446 = vector.load %arg21[%c1_195, %c0_196, %c0_197] : memref<2x1x32xf32, #tpu.memory_space<vmem>>, vector<1x1x32xf32>
    %447 = vector.shape_cast %446 : vector<1x1x32xf32> to vector<1x32xf32>
    %cst_198 = arith.constant dense<0.000000e+00> : vector<32xf32>
    %448 = vector.multi_reduction <add>, %443, %cst_198 [1] : vector<32x32xf32> to vector<32xf32>
    %449 = vector.shape_cast %448 : vector<32xf32> to vector<32x1xf32>
    %cst_199 = arith.constant 3.200000e+01 : f32
    %450 = vector.broadcast %cst_199 : f32 to vector<32x1xf32>
    %451 = arith.divf %449, %450 : vector<32x1xf32>
    %452 = vector.broadcast %451 : vector<32x1xf32> to vector<32x32xf32>
    %453 = arith.subf %443, %452 : vector<32x32xf32>
    %454 = arith.mulf %453, %453 : vector<32x32xf32>
    %cst_200 = arith.constant dense<0.000000e+00> : vector<32xf32>
    %455 = vector.multi_reduction <add>, %454, %cst_200 [1] : vector<32x32xf32> to vector<32xf32>
    %456 = vector.shape_cast %455 : vector<32xf32> to vector<32x1xf32>
    %cst_201 = arith.constant 3.200000e+01 : f32
    %457 = vector.broadcast %cst_201 : f32 to vector<32x1xf32>
    %458 = arith.divf %456, %457 : vector<32x1xf32>
    %459 = vector.broadcast %451 : vector<32x1xf32> to vector<32x32xf32>
    %460 = arith.subf %443, %459 : vector<32x32xf32>
    %cst_202 = arith.constant 9.99999974E-6 : f32
    %461 = vector.broadcast %cst_202 : f32 to vector<32x1xf32>
    %462 = arith.addf %458, %461 : vector<32x1xf32>
    %463 = math.rsqrt %462 : vector<32x1xf32>
    %464 = vector.broadcast %463 : vector<32x1xf32> to vector<32x32xf32>
    %465 = arith.mulf %460, %464 : vector<32x32xf32>
    %466 = vector.broadcast %445 : vector<1x32xf32> to vector<32x32xf32>
    %467 = arith.mulf %465, %466 : vector<32x32xf32>
    %468 = vector.broadcast %447 : vector<1x32xf32> to vector<32x32xf32>
    %469 = arith.addf %467, %468 : vector<32x32xf32>
    %c0_203 = arith.constant 0 : index
    %c0_204 = arith.constant 0 : index
    %470 = vector.load %arg24[%c0_203, %c0_204] : memref<32x32xf32, #tpu.memory_space<vmem>>, vector<32x32xf32>
    tpu.vector_store %arg24[%c0_203, %c0_204], %469 {strides = array<i32>} : memref<32x32xf32, #tpu.memory_space<vmem>>, vector<32x32xf32>,
    return
  }
}

</mosaic_0001>

<bundles_post_ra>
// kernel: wav2vec2_hidden_states.2
= control target key start
LH: loop header
LB: loop body
LE: loop exit
PB: predicated region body
PF: predicated region fallthrough
CT: control target
= control target key end

     0   :  { %vm42_vm0 = vcmask 1041408   ;;  %v587_v0 = vmov 0.0   ;;  %vm26_vm1 = vcmask 80896   ;;  %vm588_vm2 = vmmov 0   ;;  %s831_s1 = inlined_call_operand.vmem [shape: f32[10,32], index: 1, kind: input, shape index: {}]   ;;  %s832_s0 = inlined_call_operand.vmem [shape: f32[2,33,10], index: 0, kind: input, shape index: {}]   ;;  %s833_s2 = inlined_call_operand.vmem [shape: f32[1,32], index: 2, kind: input, shape index: {}]   ;;  %s834_s3 = inlined_call_operand.vmem [shape: f32[1,32], index: 3, kind: input, shape index: {}]   ;;  %s835_s4 = inlined_call_operand.vmem [shape: f32[2,33,32], index: 4, kind: output, shape index: {}]  }
   0x1   :  { %523 = vmatprep.subr.mxu0 %v587_v0  ;;  %542 = vmatprep.subr.mxu1 %v587_v0  ;;  %v18_v1 = vld [vmem:[%s831_s1 + $0x8] sm:$0x3]  ;;  %v17_v2 = vld [vmem:[%s831_s1] sm:$0xff]  ;;  %v494_v6 = vld [vmem:[%s832_s0 + $0x30] sm:$0xff]  ;;  %vm136_vm3 = vcmask 261120   ;;  %vm144_vm4 = vcmask 253952  }
   0x2   :  { %524 = vmatpush3.msk.msra.mxu0 %vm42_vm0, %v18_v1  ;;  %543 = vmatpush3.msk.msra.mxu1 %vm42_vm0, %v18_v1  ;;  %v21_v3 = vld [vmem:[%s832_s0] sm:$0xff]  ;;  %v493_v4 = vld [vmem:[%s832_s0 + $0x28] sm:$0xff]  ;;  %v23_v7 = vld [vmem:[%s832_s0 + $0x10] sm:$0xff] }
   0x3   :  { %525 = vmatprep.subr.mxu0 %v587_v0  ;;  %544 = vmatprep.subr.mxu1 %v587_v0  ;;  %v22_v5 = vld [vmem:[%s832_s0 + $0x8] sm:$0xff]  ;;  %v495_v8 = vld [vmem:[%s832_s0 + $0x38] sm:$0xff]  ;;  %v496_v10 = vld [vmem:[%s832_s0 + $0x40] sm:$0xff] }
   0x4   :  { %526 = vmatpush3.msra.mxu0 %v17_v2  ;;  %527 = vmatprep.mubr.msk.f32.mxu0 %vm588_vm2, %v587_v0  ;;  %v24_v9 = vld [vmem:[%s832_s0 + $0x18] sm:$0xff]  ;;  %v25_v11 = vld [vmem:[%s832_s0 + $0x20] sm:$0x1]  ;;  %v497_v12 = vld [vmem:[%s832_s0 + $0x48] sm:$0x1] }
   0x5   :  { %545 = vmatpush3.msra.mxu1 %v17_v2  ;;  %546 = vmatprep.mubr.msk.f32.mxu1 %vm588_vm2, %v587_v0 }
   0x6   :  { %528 = vmatmul.mubr.msk.f32.vlgmr.msra.gmra.mxu0 %vm26_vm1, %v21_v3  ;;  %547 = vmatmul.mubr.msk.f32.vlgmr.msra.gmra.mxu1 %vm26_vm1, %v493_v4 }
   0x7   :  { %530 = vmatprep.mubr.msk.f32.mxu0 %vm588_vm2, %v587_v0  ;;  %549 = vmatprep.mubr.msk.f32.mxu1 %vm588_vm2, %v587_v0 }
   0xa   :  { %531 = vmatmul.mubr.msk.f32.gmra.mxu0 %vm26_vm1, %v22_v5  ;;  %550 = vmatmul.mubr.msk.f32.gmra.mxu1 %vm26_vm1, %v494_v6 }
   0xb   :  { %533 = vmatprep.mubr.msk.f32.mxu0 %vm588_vm2, %v587_v0  ;;  %552 = vmatprep.mubr.msk.f32.mxu1 %vm588_vm2, %v587_v0 }
   0xe   :  { %534 = vmatmul.mubr.msk.f32.gmra.mxu0 %vm26_vm1, %v23_v7  ;;  %553 = vmatmul.mubr.msk.f32.gmra.mxu1 %vm26_vm1, %v495_v8 }
   0xf   :  { %536 = vmatprep.mubr.msk.f32.mxu0 %vm588_vm2, %v587_v0  ;;  %555 = vmatprep.mubr.msk.f32.mxu1 %vm588_vm2, %v587_v0 }
  0x12   :  { %537 = vmatmul.mubr.msk.f32.gmra.mxu0 %vm26_vm1, %v24_v9  ;;  %556 = vmatmul.mubr.msk.f32.gmra.mxu1 %vm26_vm1, %v496_v10 }
  0x13   :  { %539 = vmatprep.mubr.msk.f32.mxu0 %vm588_vm2, %v587_v0  ;;  %558 = vmatprep.mubr.msk.f32.mxu1 %vm588_vm2, %v587_v0 }
  0x16   :  { %540 = vmatmul.mubr.msk.f32.gmra.mxu0 %vm26_vm1, %v25_v11  ;;  %559 = vmatmul.mubr.msk.f32.gmra.mxu1 %vm26_vm1, %v497_v12 }
  0xc6   :  { %v112_v13 = vpop.f32.mrf.mxu0  ;;  %v347_v14 = vpop.f32.mrf.mxu1 }
  0xc7   :  { %v137_v27 = vsel %vm136_vm3, %v112_v13, 0.0  ;;  %v371_v28 = vsel %vm136_vm3, %v347_v14, 0.0 }
  0xc8   :  { %v529_v15 = vpop.f32.mrf.mxu0  ;;  %v548_v16 = vpop.f32.mrf.mxu1 }
  0xca   :  { %v117_v17 = vpop.f32.mrf.mxu0  ;;  %v352_v18 = vpop.f32.mrf.mxu1 }
  0xcb   :  { %v138_v23 = vsel %vm136_vm3, %v117_v17, 0.0  ;;  %v372_v24 = vsel %vm136_vm3, %v352_v18, 0.0 }
  0xcc   :  { %v532_v19 = vpop.f32.mrf.mxu0  ;;  %v551_v20 = vpop.f32.mrf.mxu1  ;;  %v139_v31 = vadd.f32 %v138_v23, %v137_v27  ;;  %v373_v32 = vadd.f32 %v372_v24, %v371_v28 }
  0xce   :  { %v122_v21 = vpop.f32.mrf.mxu0  ;;  %v357_v22 = vpop.f32.mrf.mxu1 }
  0xcf   :  { %v140_v29 = vsel %vm136_vm3, %v122_v21, 0.0  ;;  %v374_v30 = vsel %vm136_vm3, %v357_v22, 0.0 }
  0xd0   :  { %v535_v25 = vpop.f32.mrf.mxu0  ;;  %v554_v26 = vpop.f32.mrf.mxu1  ;;  %v141_v37 = vadd.f32 %v140_v29, %v139_v31  ;;  %v375_v38 = vadd.f32 %v374_v30, %v373_v32 }
  0xd2   :  { %v127_v33 = vpop.f32.mrf.mxu0  ;;  %v362_v34 = vpop.f32.mrf.mxu1 }
  0xd3   :  { %v142_v35 = vsel %vm136_vm3, %v127_v33, 0.0  ;;  %v376_v36 = vsel %vm136_vm3, %v362_v34, 0.0 }
  0xd4   :  { %v538_v39 = vpop.f32.mrf.mxu0  ;;  %v557_v40 = vpop.f32.mrf.mxu1  ;;  %v143_v41 = vadd.f32 %v142_v35, %v141_v37  ;;  %v377_v42 = vadd.f32 %v376_v36, %v375_v38 }
  0xd6   :  { %v132_v43 = vpop.f32.mrf.mxu0  ;;  %v367_v44 = vpop.f32.mrf.mxu1 }
  0xd7   :  { %v145_v45 = vsel %vm144_vm4, %v132_v43, 0.0  ;;  %v378_v46 = vsel %vm144_vm4, %v367_v44, 0.0 }
  0xd8   :  { %v146_v47 = vadd.f32 %v145_v45, %v143_v41  ;;  %v379_v48 = vadd.f32 %v378_v46, %v377_v42  ;;  %v541_v49 = vpop.f32.mrf.mxu0  ;;  %v560_v50 = vpop.f32.mrf.mxu1 }
  0xda   :  { %v147_v51 = vrot.slane %v146_v47, 4  ;;  %v380_v52 = vrot.slane %v379_v48, 4 }
  0xdc   :  { %v148_v53 = vadd.f32 %v147_v51, %v146_v47  ;;  %v381_v54 = vadd.f32 %v380_v52, %v379_v48 }
  0xde   :  { %v149_v55 = vrot.slane %v148_v53, 2  ;;  %v382_v56 = vrot.slane %v381_v54, 2 }
  0xe0   :  { %v150_v57 = vadd.f32 %v149_v55, %v148_v53  ;;  %v383_v58 = vadd.f32 %v382_v56, %v381_v54  ;;  %v491_v56 = vld [vmem:[%s833_s2] ss:$0 sm:$0xff] }
  0xe2   :  { %v151_v59 = vrot.slane %v150_v57, 1  ;;  %v384_v60 = vrot.slane %v383_v58, 1 }
  0xe4   :  { %v152_v61 = vadd.f32 %v151_v59, %v150_v57  ;;  %v385_v62 = vadd.f32 %v384_v60, %v383_v58 }
  0xe6   :  { %v154_v63 = vmul.f32 0.030303031, %v152_v61  ;;  %v386_v0 = vmul.f32 0.030303031, %v385_v62  ;;  %v492_v61 = vld [vmem:[%s834_s3] ss:$0 sm:$0xff] }
  0xe8   :  { %v155_v1 = vsub.f32 %v112_v13, %v154_v63  ;;  %v156_v2 = vsub.f32 %v117_v17, %v154_v63  ;;  %v157_v3 = vsub.f32 %v122_v21, %v154_v63  ;;  %v158_v4 = vsub.f32 %v127_v33, %v154_v63 }
  0xe9   :  { %v680_v5 = vsub.f32 %v347_v14, %v386_v0  ;;  %v682_v6 = vsub.f32 %v352_v18, %v386_v0  ;;  %v684_v7 = vsub.f32 %v357_v22, %v386_v0  ;;  %v159_v8 = vsub.f32 %v132_v43, %v154_v63 }
  0xea   :  { %v160_v9 = vmul.f32 %v155_v1, %v155_v1  ;;  %v161_v10 = vmul.f32 %v156_v2, %v156_v2  ;;  %v162_v11 = vmul.f32 %v157_v3, %v157_v3  ;;  %v686_v12 = vsub.f32 %v362_v34, %v386_v0 }
  0xeb   :  { %v392_v15 = vmul.f32 %v680_v5, %v680_v5  ;;  %v163_v16 = vmul.f32 %v158_v4, %v158_v4  ;;  %v692_v19 = vsub.f32 %v367_v44, %v386_v0  ;;  %v393_v18 = vmul.f32 %v682_v6, %v682_v6 }
  0xec   :  { %v165_v13 = vsel %vm136_vm3, %v160_v9, 0.0  ;;  %v166_v17 = vsel %vm136_vm3, %v161_v10, 0.0  ;;  %v394_v20 = vmul.f32 %v684_v7, %v684_v7  ;;  %v164_v21 = vmul.f32 %v159_v8, %v159_v8 }
  0xed   :  { %v167_v14 = vadd.f32 %v166_v17, %v165_v13  ;;  %v168_v22 = vsel %vm136_vm3, %v162_v11, 0.0  ;;  %v397_v23 = vsel %vm136_vm3, %v392_v15, 0.0  ;;  %v395_v25 = vmul.f32 %v686_v12, %v686_v12 }
  0xee   :  { %v398_v26 = vsel %vm136_vm3, %v393_v18, 0.0  ;;  %v170_v27 = vsel %vm136_vm3, %v163_v16, 0.0  ;;  %v396_v30 = vmul.f32 %v692_v19, %v692_v19  ;;  %v400_v31 = vsel %vm136_vm3, %v394_v20, 0.0 }
  0xef   :  { %v169_v24 = vadd.f32 %v168_v22, %v167_v14  ;;  %v399_v28 = vadd.f32 %v398_v26, %v397_v23  ;;  %v172_v32 = vsel %vm144_vm4, %v164_v21, 0.0  ;;  %v402_v35 = vsel %vm136_vm3, %v395_v25, 0.0 }
  0xf0   :  { %v404_v38 = vsel %vm144_vm4, %v396_v30, 0.0 }
  0xf1   :  { %v171_v29 = vadd.f32 %v170_v27, %v169_v24  ;;  %v401_v33 = vadd.f32 %v400_v31, %v399_v28 }
  0xf3   :  { %v173_v34 = vadd.f32 %v172_v32, %v171_v29  ;;  %v403_v36 = vadd.f32 %v402_v35, %v401_v33 }
  0xf5   :  { %v174_v37 = vrot.slane %v173_v34, 4  ;;  %v405_v39 = vadd.f32 %v404_v38, %v403_v36 }
  0xf7   :  { %v175_v40 = vadd.f32 %v174_v37, %v173_v34  ;;  %v406_v41 = vrot.slane %v405_v39, 4 }
  0xf9   :  { %v176_v42 = vrot.slane %v175_v40, 2  ;;  %v407_v43 = vadd.f32 %v406_v41, %v405_v39 }
  0xfb   :  { %v177_v44 = vadd.f32 %v176_v42, %v175_v40  ;;  %v408_v45 = vrot.slane %v407_v43, 2 }
  0xfd   :  { %v178_v46 = vrot.slane %v177_v44, 1  ;;  %v409_v47 = vadd.f32 %v408_v45, %v407_v43 }
  0xff   :  { %v179_v48 = vadd.f32 %v178_v46, %v177_v44  ;;  %v410_v49 = vrot.slane %v409_v47, 1 }
 0x101   :  { %v180_v50 = vmul.f32 0.030303031, %v179_v48  ;;  %v411_v51 = vadd.f32 %v410_v49, %v409_v47 }
 0x103   :  { %v181_v52 = vadd.f32 1e-05, %v180_v50  ;;  %v412_v53 = vmul.f32 0.030303031, %v411_v51 }
 0x105   :  { %563 = vrsqrt.f32 %v181_v52  ;;  %v413_v54 = vadd.f32 1e-05, %v412_v53 }
 0x107   :  { %565 = vrsqrt.f32 %v413_v54 }
 0x112   :  { %v564_v55 = vpop.eup %563 }
 0x113   :  { %v183_v57 = vmul.f32 %v564_v55, %v155_v1  ;;  %v184_v58 = vmul.f32 %v564_v55, %v156_v2  ;;  %v185_v59 = vmul.f32 %v564_v55, %v157_v3  ;;  %v186_v60 = vmul.f32 %v564_v55, %v158_v4 }
 0x114   :  { %v187_v62 = vmul.f32 %v564_v55, %v159_v8  ;;  %v566_v63 = vpop.eup %565 }
 0x115   :  { %v194_v0 = vmul.f32 %v491_v56, %v183_v57  ;;  %v195_v9 = vmul.f32 %v491_v56, %v184_v58  ;;  %v196_v10 = vmul.f32 %v491_v56, %v185_v59  ;;  %v197_v11 = vmul.f32 %v491_v56, %v186_v60 }
 0x116   :  { %v198_v15 = vmul.f32 %v491_v56, %v187_v62  ;;  %v415_v16 = vmul.f32 %v566_v63, %v680_v5  ;;  %v416_v13 = vmul.f32 %v566_v63, %v682_v6  ;;  %v417_v1 = vmul.f32 %v566_v63, %v684_v7 }
 0x117   :  { %v719_v2 = vadd.f32 %v492_v61, %v194_v0  ;;  %v721_v3 = vadd.f32 %v492_v61, %v195_v9  ;;  %v723_v4 = vadd.f32 %v492_v61, %v196_v10  ;;  %v725_v17 = vadd.f32 %v492_v61, %v197_v11 }
 0x118   :  { %v727_v8 = vadd.f32 %v492_v61, %v198_v15  ;;  %v418_v14 = vmul.f32 %v566_v63, %v686_v12  ;;  %v419_v18 = vmul.f32 %v566_v63, %v692_v19  ;;  %v420_v20 = vmul.f32 %v491_v56, %v415_v16 }
 0x119   :  { %v210_v5 = vmul.f32 %v719_v2, %v719_v2  ;;  %v211_v6 = vmul.f32 %v721_v3, %v721_v3  ;;  %v212_v7 = vmul.f32 %v723_v4, %v723_v4  ;;  %v213_v21 = vmul.f32 %v725_v17, %v725_v17 }
 0x11a   :  { %v214_v22 = vmul.f32 %v727_v8, %v727_v8  ;;  %v421_v23 = vmul.f32 %v491_v56, %v416_v13  ;;  %v422_v12 = vmul.f32 %v491_v56, %v417_v1  ;;  %v423_v24 = vmul.f32 %v491_v56, %v418_v14 }
 0x11b   :  { %v215_v19 = vmul.f32 %v210_v5, %v719_v2  ;;  %v216_v25 = vmul.f32 %v211_v6, %v721_v3  ;;  %v217_v26 = vmul.f32 %v212_v7, %v723_v4  ;;  %v218_v27 = vmul.f32 %v213_v21, %v725_v17 }
 0x11c   :  { %v219_v28 = vmul.f32 %v214_v22, %v727_v8  ;;  %v424_v29 = vmul.f32 %v491_v56, %v419_v18  ;;  %v746_v30 = vadd.f32 %v492_v61, %v420_v20  ;;  %v748_v31 = vadd.f32 %v492_v61, %v421_v23 }
 0x11d   :  { %v220_v32 = vmul.f32 0.044715, %v215_v19  ;;  %v221_v33 = vmul.f32 0.044715, %v216_v25  ;;  %v222_v34 = vmul.f32 0.044715, %v217_v26  ;;  %v750_v35 = vadd.f32 %v492_v61, %v422_v12 }
 0x11e   :  { %v223_v36 = vmul.f32 0.044715, %v218_v27  ;;  %v224_v37 = vmul.f32 0.044715, %v219_v28  ;;  %v752_v38 = vadd.f32 %v492_v61, %v423_v24  ;;  %v754_v39 = vadd.f32 %v492_v61, %v424_v29 }
 0x11f   :  { %v225_v40 = vadd.f32 %v220_v32, %v719_v2  ;;  %v226_v41 = vadd.f32 %v221_v33, %v721_v3  ;;  %v227_v42 = vadd.f32 %v222_v34, %v723_v4  ;;  %v430_v43 = vmul.f32 %v746_v30, %v746_v30 }
 0x120   :  { %v228_v44 = vadd.f32 %v223_v36, %v725_v17  ;;  %v229_v45 = vadd.f32 %v224_v37, %v727_v8  ;;  %v431_v46 = vmul.f32 %v748_v31, %v748_v31  ;;  %v432_v47 = vmul.f32 %v750_v35, %v750_v35 }
 0x121   :  { %v230_v48 = vmul.f32 0.7978846, %v225_v40  ;;  %v231_v49 = vmul.f32 0.7978846, %v226_v41  ;;  %v232_v50 = vmul.f32 0.7978846, %v227_v42  ;;  %v433_v51 = vmul.f32 %v752_v38, %v752_v38 }
 0x122   :  { %v233_v52 = vmul.f32 0.7978846, %v228_v44  ;;  %v234_v53 = vmul.f32 0.7978846, %v229_v45  ;;  %v434_v54 = vmul.f32 %v754_v39, %v754_v39  ;;  %v435_v55 = vmul.f32 %v430_v43, %v746_v30 }
 0x123   :  { %567 = vtanh.f32 %v230_v48  ;;  %v436_v56 = vmul.f32 %v431_v46, %v748_v31  ;;  %v437_v57 = vmul.f32 %v432_v47, %v750_v35  ;;  %v438_v58 = vmul.f32 %v433_v51, %v752_v38 }
 0x124   :  { %569 = vtanh.f32 %v231_v49  ;;  %v439_v59 = vmul.f32 %v434_v54, %v754_v39  ;;  %v440_v60 = vmul.f32 0.044715, %v435_v55 }
 0x125   :  { %571 = vtanh.f32 %v232_v50  ;;  %v441_v61 = vmul.f32 0.044715, %v436_v56  ;;  %v442_v62 = vmul.f32 0.044715, %v437_v57  ;;  %v443_v63 = vmul.f32 0.044715, %v438_v58 }
 0x126   :  { %573 = vtanh.f32 %v233_v52  ;;  %v444_v0 = vmul.f32 0.044715, %v439_v59  ;;  %v445_v9 = vadd.f32 %v440_v60, %v746_v30 }
 0x127   :  { %575 = vtanh.f32 %v234_v53  ;;  %v446_v10 = vadd.f32 %v441_v61, %v748_v31  ;;  %v447_v11 = vadd.f32 %v442_v62, %v750_v35  ;;  %v448_v15 = vadd.f32 %v443_v63, %v752_v38 }
 0x128   :  { %v449_v16 = vadd.f32 %v444_v0, %v754_v39  ;;  %v450_v13 = vmul.f32 0.7978846, %v445_v9 }
 0x129   :  { %v451_v1 = vmul.f32 0.7978846, %v446_v10  ;;  %v452_v14 = vmul.f32 0.7978846, %v447_v11  ;;  %v453_v18 = vmul.f32 0.7978846, %v448_v15 }
 0x12a   :  { %v454_v20 = vmul.f32 0.7978846, %v449_v16  ;;  %577 = vtanh.f32 %v450_v13 }
 0x12b   :  { %579 = vtanh.f32 %v451_v1 }
 0x12c   :  { %581 = vtanh.f32 %v452_v14 }
 0x12d   :  { %583 = vtanh.f32 %v453_v18 }
 0x12e   :  { %585 = vtanh.f32 %v454_v20 }
 0x130   :  { %v568_v5 = vpop.eup %567 }
 0x131   :  { %v570_v6 = vpop.eup %569  ;;  %v240_v7 = vadd.f32 1.0, %v568_v5 }
 0x132   :  { %v572_v21 = vpop.eup %571  ;;  %v241_v22 = vadd.f32 1.0, %v570_v6 }
 0x133   :  { %v574_v23 = vpop.eup %573  ;;  %v242_v12 = vadd.f32 1.0, %v572_v21  ;;  %v245_v24 = vmul.f32 0.5, %v240_v7 }
 0x134   :  { %v576_v19 = vpop.eup %575  ;;  %v243_v25 = vadd.f32 1.0, %v574_v23  ;;  %v246_v26 = vmul.f32 0.5, %v241_v22 }
 0x135   :  { %v244_v27 = vadd.f32 1.0, %v576_v19  ;;  %v247_v28 = vmul.f32 0.5, %v242_v12  ;;  %v250_v29 = vmul.f32 %v245_v24, %v719_v2 }
 0x136   :  { %v248_v32 = vmul.f32 0.5, %v243_v25  ;;  %v251_v33 = vmul.f32 %v246_v26, %v721_v3 }
 0x137   :  { %v578_v34 = vpop.eup %577  ;;  %v249_v36 = vmul.f32 0.5, %v244_v27  ;;  %v252_v37 = vmul.f32 %v247_v28, %v723_v4  ;;  %255 = vst.msk [vmem:[%s835_s4] sm:$0xff] %vm136_vm3, %v250_v29 }
 0x138   :  { %v580_v40 = vpop.eup %579  ;;  %v253_v41 = vmul.f32 %v248_v32, %v725_v17  ;;  %256 = vst.msk [vmem:[%s835_s4 + $0x8] sm:$0xff] %vm136_vm3, %v251_v33  ;;  %v460_v2 = vadd.f32 1.0, %v578_v34 }
 0x139   :  { %v582_v42 = vpop.eup %581  ;;  %v254_v3 = vmul.f32 %v249_v36, %v727_v8  ;;  %257 = vst.msk [vmem:[%s835_s4 + $0x10] sm:$0xff] %vm136_vm3, %v252_v37  ;;  %v461_v4 = vadd.f32 1.0, %v580_v40 }
 0x13a   :  { %v584_v43 = vpop.eup %583  ;;  %258 = vst.msk [vmem:[%s835_s4 + $0x18] sm:$0xff] %vm136_vm3, %v253_v41  ;;  %v462_v17 = vadd.f32 1.0, %v582_v42  ;;  %v465_v44 = vmul.f32 0.5, %v460_v2 }
 0x13b   :  { %v586_v45 = vpop.eup %585  ;;  %259 = vst.msk [vmem:[%s835_s4 + $0x20] sm:$0x1] %vm144_vm4, %v254_v3  ;;  %v463_v8 = vadd.f32 1.0, %v584_v43  ;;  %v466_v46 = vmul.f32 0.5, %v461_v4 }
 0x13c   :  { %v464_v47 = vadd.f32 1.0, %v586_v45  ;;  %v467_v48 = vmul.f32 0.5, %v462_v17  ;;  %v470_v49 = vmul.f32 %v465_v44, %v746_v30 }
 0x13d   :  { %v468_v50 = vmul.f32 0.5, %v463_v8  ;;  %v471_v51 = vmul.f32 %v466_v46, %v748_v31 }
 0x13e   :  { %v469_v52 = vmul.f32 0.5, %v464_v47  ;;  %v472_v53 = vmul.f32 %v467_v48, %v750_v35  ;;  %504 = vst.msk [vmem:[%s835_s4 + $0x28] sm:$0xff] %vm136_vm3, %v470_v49 }
 0x13f   :  { %v473_v54 = vmul.f32 %v468_v50, %v752_v38  ;;  %505 = vst.msk [vmem:[%s835_s4 + $0x30] sm:$0xff] %vm136_vm3, %v471_v51 }
 0x140   :  { %v474_v30 = vmul.f32 %v469_v52, %v754_v39  ;;  %506 = vst.msk [vmem:[%s835_s4 + $0x38] sm:$0xff] %vm136_vm3, %v472_v53 }
 0x141   :  { %507 = vst.msk [vmem:[%s835_s4 + $0x40] sm:$0xff] %vm136_vm3, %v473_v54 }
 0x142   :  { %508 = vst.msk [vmem:[%s835_s4 + $0x48] sm:$0x1] %vm144_vm4, %v474_v30 }

// kernel: wav2vec2_hidden_states.3
= control target key start
LH: loop header
LB: loop body
LE: loop exit
PB: predicated region body
PF: predicated region fallthrough
CT: control target
= control target key end

     0   :  { %s5879_s0 = inlined_call_operand.vmem [shape: f32[32,96], index: 0, kind: input, shape index: {}]   ;;  %s5880_s1 = inlined_call_operand.vmem [shape: f32[96,32], index: 1, kind: input, shape index: {}]   ;;  %s5881_s2 = inlined_call_operand.vmem [shape: f32[1,32], index: 2, kind: input, shape index: {}]   ;;  %s5882_s3 = inlined_call_operand.vmem [shape: f32[1,32], index: 3, kind: input, shape index: {}]   ;;  %s5883_s4 = inlined_call_operand.vmem [shape: f32[32,32], index: 4, kind: input, shape index: {}]   ;;  %s5884_s5 = inlined_call_operand.vmem [shape: f32[1,32], index: 5, kind: input, shape index: {}]   ;;  %s5885_s6 = inlined_call_operand.vmem [shape: f32[128,32], index: 6, kind: input, shape index: {}]   ;;  %s5886_s7 = inlined_call_operand.vmem [shape: f32[1,32], index: 7, kind: input, shape index: {}]   ;;  %s5887_s8 = inlined_call_operand.vmem [shape: f32[1,32], index: 8, kind: input, shape index: {}]   ;;  %s5888_s9 = inlined_call_operand.vmem [shape: f32[1,32], index: 9, kind: input, shape index: {}]   ;;  %s5889_s10 = inlined_call_operand.vmem [shape: f32[2,32,96], index: 10, kind: input, shape index: {}]   ;;  %s5890_s11 = inlined_call_operand.vmem [shape: f32[2,1,96], index: 11, kind: input, shape index: {}]   ;;  %s5891_s12 = inlined_call_operand.vmem [shape: f32[2,32,32], index: 12, kind: input, shape index: {}]   ;;  %s5892_s13 = inlined_call_operand.vmem [shape: f32[2,1,32], index: 13, kind: input, shape index: {}]   ;;  %s5893_s14 = inlined_call_operand.vmem [shape: f32[2,1,32], index: 14, kind: input, shape index: {}]   ;;  %s5894_s15 = inlined_call_operand.vmem [shape: f32[2,1,32], index: 15, kind: input, shape index: {}]   ;;  %s5895_s16 = inlined_call_operand.vmem [shape: f32[2,32,64], index: 16, kind: input, shape index: {}]   ;;  %s5896_s17 = inlined_call_operand.vmem [shape: f32[2,1,64], index: 17, kind: input, shape index: {}]   ;;  %s5897_s18 = inlined_call_operand.vmem [shape: f32[2,64,32], index: 18, kind: input, shape index: {}]   ;;  %s5898_s19 = inlined_call_operand.vmem [shape: f32[2,1,32], index: 19, kind: input, shape index: {}]   ;;  %s5899_s20 = inlined_call_operand.vmem [shape: f32[2,1,32], index: 20, kind: input, shape index: {}]   ;;  %s5900_s21 = inlined_call_operand.vmem [shape: f32[2,1,32], index: 21, kind: input, shape index: {}]   ;;  %s5901_s22 = inlined_call_operand.hbm [shape: f32[32,32], index: 22, kind: output, shape index: {0}]   ;;  %s5902_s23 = inlined_call_operand.hbm [shape: f32[32,32], index: 23, kind: output, shape index: {1}]   ;;  %s5903_s24 = inlined_call_operand.hbm [shape: f32[32,32], index: 24, kind: output, shape index: {2}]  }
   0x1   :  { %5908 = sst [smem:[#allocation9_spill]] %s5879_s0 }
   0x2   :  { %5909 = sst [smem:[#allocation10_spill]] %s5880_s1 }
   0x3   :  { %5910 = sst [smem:[#allocation11_spill]] %s5881_s2 }
   0x4   :  { %5911 = sst [smem:[#allocation12_spill]] %s5882_s3 }
   0x5   :  { %5912 = sst [smem:[#allocation13_spill]] %s5883_s4 }
   0x6   :  { %5913 = sst [smem:[#allocation14_spill]] %s5884_s5 }
   0x7   :  { %5914 = sst [smem:[#allocation15_spill]] %s5885_s6 }
   0x8   :  { %5915 = sst [smem:[#allocation16_spill]] %s5886_s7 }
   0x9   :  { %5916 = sst [smem:[#allocation17_spill]] %s5887_s8 }
   0xa   :  { %30 = vsyncpa [#allocation3], 0  ;;  %s5917_s27 = sld [smem:[#allocation10_spill]]  ;;  %vm92_vm0 = vcmask 785408  }
   0xb   :  { %s5918_s25 = sld [smem:[#allocation9_spill]] }
  0x10   :  { %v91_v0 = vld [vmem:[%s5917_s27 + $0x58] sm:$0xff]  ;;  %v90_v1 = vld [vmem:[%s5917_s27 + $0x50] sm:$0xff]  ;;  %v89_v2 = vld [vmem:[%s5917_s27 + $0x48] sm:$0xff] }
  0x11   :  { %4379 = vmatprep.subr.mxu0 %v91_v0  ;;  %v88_v3 = vld [vmem:[%s5917_s27 + $0x40] sm:$0xff] }
  0x12   :  { %4380 = vmatpush3.msra.mxu0 %v91_v0  ;;  %v76_v4 = vld [vmem:[%s5918_s25] sm:$0xff] }
  0x13   :  { %4381 = vmatprep.subr.mxu0 %v90_v1  ;;  %4403 = vmatprep.mubr.msk.f32.mxu0 %vm92_vm0, %v76_v4 }
  0x14   :  { %4382 = vmatpush3.msra.mxu0 %v90_v1 }
  0x15   :  { %4383 = vmatprep.subr.mxu0 %v89_v2 }
  0x16   :  { %31 = vsyncpa [#allocation5], 0  ;;  %4384 = vmatpush3.msra.mxu0 %v89_v2  ;;  %v87_v5 = vld [vmem:[%s5917_s27 + $0x38] sm:$0xff]  ;;  %v86_v6 = vld [vmem:[%s5917_s27 + $0x30] sm:$0xff]  ;;  %vm228_vm1 = vcmask 261120   ;;  %s5919_s0 = sld [smem:[#allocation13_spill]] }
  0x17   :  { %4385 = vmatprep.subr.mxu0 %v88_v3  ;;  %v85_v7 = vld [vmem:[%s5917_s27 + $0x28] sm:$0xff]  ;;  %v84_v8 = vld [vmem:[%s5917_s27 + $0x20] sm:$0xff]  ;;  %v83_v9 = vld [vmem:[%s5917_s27 + $0x18] sm:$0xff]  ;;  %s5920_s28 = sld [smem:[#allocation11_spill]]  ;;  %s4939_s26 = smov 96   ;;  %vm1176_vm11 = vcmask 130048  }
  0x18   :  { %4386 = vmatpush3.msra.mxu0 %v88_v3  ;;  %v82_v10 = vld [vmem:[%s5917_s27 + $0x10] sm:$0xff]  ;;  %v81_v11 = vld [vmem:[%s5917_s27 + $0x8] sm:$0xff]  ;;  %v80_v12 = vld [vmem:[%s5917_s27] sm:$0xff]  ;;  %s5921_s29 = sld [smem:[#allocation12_spill]]  ;;  %s4941_s6 = smov 64   ;;  %vm2338_vm12 = vcmask 523264  }
  0x19   :  { %4387 = vmatprep.subr.mxu0 %v87_v5  ;;  %v77_v13 = vld [vmem:[%s5918_s25 + $0x8] sm:$0xff]  ;;  %v78_v14 = vld [vmem:[%s5918_s25 + $0x10] sm:$0xff]  ;;  %v79_v15 = vld [vmem:[%s5918_s25 + $0x18] sm:$0xff]  ;;  %s5923_s2 = sld [smem:[#allocation14_spill]]  ;;  %s4944_s3 = smov [#allocation4]  }
  0x1a   :  { %4388 = vmatpush3.msra.mxu0 %v87_v5  ;;  %s5924_s5 = sld [smem:[#allocation16_spill]] }
  0x1b   :  { %4389 = vmatprep.subr.mxu0 %v86_v6  ;;  %s5925_s8 = sld [smem:[#allocation17_spill]] }
  0x1c   :  { %4390 = vmatpush3.msra.mxu0 %v86_v6 }
  0x1d   :  { %4391 = vmatprep.subr.mxu0 %v85_v7 }
  0x1e   :  { %4392 = vmatpush3.msra.mxu0 %v85_v7 }
  0x1f   :  { %4393 = vmatprep.subr.mxu0 %v84_v8 }
  0x20   :  { %4394 = vmatpush3.msra.mxu0 %v84_v8 }
  0x21   :  { %4395 = vmatprep.subr.mxu0 %v83_v9 }
  0x22   :  { %4396 = vmatpush3.msra.mxu0 %v83_v9 }
  0x23   :  { %4397 = vmatprep.subr.mxu0 %v82_v10 }
  0x24   :  { %4398 = vmatpush3.msra.mxu0 %v82_v10 }
  0x25   :  { %4399 = vmatprep.subr.mxu0 %v81_v11 }
  0x26   :  { %4400 = vmatpush3.msra.mxu0 %v81_v11 }
  0x27   :  { %4401 = vmatprep.subr.mxu0 %v80_v12 }
  0x28   :  { %4402 = vmatpush3.msra.mxu0 %v80_v12 }
  0x29   :  { %4404 = vmatmul.mubr.msk.f32.vlgmr.msra.gmra.mxu0 %vm92_vm0, %v77_v13 }
  0x2a   :  { %4406 = vmatprep.mubr.msk.f32.mxu0 %vm92_vm0, %v78_v14 }
  0x2d   :  { %4407 = vmatmul.mubr.msk.f32.gmra.mxu0 %vm92_vm0, %v79_v15 }
  0xe9   :  { %v4405_v16 = vpop.f32.mrf.mxu0 }
  0xea   :  { %v191_v17 = vmul.f32 %v4405_v16, %v4405_v16 }
  0xeb   :  { %v171_v18 = vpop.f32.mrf.mxu0 }
  0xec   :  { %v195_v19 = vmul.f32 %v4405_v16, %v191_v17  ;;  %v190_v20 = vmul.f32 %v171_v18, %v171_v18  ;;  %v304_v17 = vld [vmem:[%s5919_s0 + $0x10] sm:$0xff] }
  0xed   :  { %v4408_v21 = vpop.f32.mrf.mxu0 }
  0xee   :  { %v199_v22 = vmul.f32 0.044715, %v195_v19  ;;  %v194_v23 = vmul.f32 %v190_v20, %v171_v18  ;;  %v193_v24 = vmul.f32 %v4408_v21, %v4408_v21  ;;  %v302_v19 = vld [vmem:[%s5919_s0] sm:$0xff] }
  0xef   :  { %v181_v25 = vpop.f32.mrf.mxu0 }
  0xf0   :  { %v203_v26 = vadd.f32 %v4405_v16, %v199_v22  ;;  %v198_v27 = vmul.f32 0.044715, %v194_v23  ;;  %v197_v28 = vmul.f32 %v4408_v21, %v193_v24  ;;  %v192_v29 = vmul.f32 %v181_v25, %v181_v25 }
  0xf2   :  { %v207_v30 = vmul.f32 0.7978846, %v203_v26  ;;  %v202_v31 = vadd.f32 %v198_v27, %v171_v18  ;;  %v201_v32 = vmul.f32 0.044715, %v197_v28  ;;  %v196_v33 = vmul.f32 %v192_v29, %v181_v25 }
  0xf4   :  { %4730 = vtanh.f32 %v207_v30  ;;  %v206_v34 = vmul.f32 0.7978846, %v202_v31  ;;  %v205_v35 = vadd.f32 %v4408_v21, %v201_v32  ;;  %v200_v36 = vmul.f32 0.044715, %v196_v33  ;;  %v4037_v33 = vld [vmem:[%s5920_s28] ss:$0 sm:$0xff] }
  0xf5   :  { %s4940_s28 = smov 112  }
  0xf6   :  { %4732 = vtanh.f32 %v206_v34  ;;  %v209_v37 = vmul.f32 0.7978846, %v205_v35  ;;  %v204_v38 = vadd.f32 %v200_v36, %v181_v25  ;;  %v4038_v35 = vld [vmem:[%s5921_s29] ss:$0 sm:$0xff]  ;;  %s4943_s29 = smov 16  }
  0xf8   :  { %4734 = vtanh.f32 %v209_v37  ;;  %v208_v39 = vmul.f32 0.7978846, %v204_v38 }
  0xfa   :  { %4736 = vtanh.f32 %v208_v39 }
 0x101   :  { %v4731_v40 = vpop.eup %4730 }
 0x102   :  { %v215_v41 = vadd.f32 1.0, %v4731_v40 }
 0x103   :  { %v4733_v42 = vpop.eup %4732 }
 0x104   :  { %v214_v43 = vadd.f32 1.0, %v4733_v42  ;;  %v219_v46 = vmul.f32 0.5, %v215_v41 }
 0x105   :  { %v4735_v44 = vpop.eup %4734 }
 0x106   :  { %v218_v45 = vmul.f32 0.5, %v214_v43  ;;  %v217_v47 = vadd.f32 1.0, %v4735_v44  ;;  %v223_v52 = vmul.f32 %v4405_v16, %v219_v46  ;;  %v305_v16 = vld [vmem:[%s5919_s0 + $0x18] sm:$0xff] }
 0x107   :  { %v4737_v48 = vpop.eup %4736  ;;  %4409 = vmatprep.subr.mxu1 %v305_v16 }
 0x108   :  { %v222_v49 = vmul.f32 %v218_v45, %v171_v18  ;;  %v216_v50 = vadd.f32 1.0, %v4737_v48  ;;  %v221_v54 = vmul.f32 0.5, %v217_v47  ;;  %v232_v56 = vsel %vm228_vm1, %v223_v52, 0.0  ;;  %4410 = vmatpush3.msra.mxu1 %v305_v16  ;;  %v303_v18 = vld [vmem:[%s5919_s0 + $0x8] sm:$0xff]  ;;  %s5922_s0 = sld [smem:[#allocation15_spill]] }
 0x109   :  { %4411 = vmatprep.subr.mxu1 %v304_v17 }
 0x10a   :  { %v229_v51 = vsel %vm228_vm1, %v222_v49, 0.0  ;;  %v220_v53 = vmul.f32 0.5, %v216_v50  ;;  %v225_v58 = vmul.f32 %v4408_v21, %v221_v54  ;;  %4412 = vmatpush3.msra.mxu1 %v304_v17 }
 0x10b   :  { %230 = vadd.xlane.f32.xlu0 %v229_v51  ;;  %4413 = vmatprep.subr.mxu1 %v303_v18 }
 0x10c   :  { %v224_v55 = vmul.f32 %v220_v53, %v181_v25  ;;  %v238_v59 = vsel %vm228_vm1, %v225_v58, 0.0  ;;  %4414 = vmatpush3.msra.mxu1 %v303_v18 }
 0x10d   :  { %4415 = vmatprep.subr.mxu1 %v302_v19 }
 0x10e   :  { %v235_v57 = vsel %vm228_vm1, %v224_v55, 0.0  ;;  %4416 = vmatpush3.msra.mxu1 %v302_v19  ;;  %v466_v50 = vld [vmem:[%s5922_s0 + $0x18] sm:$0xff]  ;;  %v465_v51 = vld [vmem:[%s5922_s0 + $0x10] sm:$0xff]  ;;  %v463_v53 = vld [vmem:[%s5922_s0] sm:$0xff] }
 0x10f   :  { %233 = vadd.xlane.f32.xlu0 %v232_v56  ;;  %236 = vadd.xlane.f32.xlu1 %v235_v57  ;;  %v470_v54 = vld [vmem:[%s5922_s0 + $0x38] sm:$0xff]  ;;  %v468_v17 = vld [vmem:[%s5922_s0 + $0x28] sm:$0xff] }
 0x110   :  { %4423 = vmatprep.subr.mxu1 %v466_v50 }
 0x113   :  { %239 = vadd.xlane.f32.xlu1 %v238_v59  ;;  %v4039_v59 = vld [vmem:[%s5923_s2] ss:$0 sm:$0xff]  ;;  %s4942_s2 = smov 48  }
 0x194   :  { %v231_v60 = vpop.xlane.xlu0 %230 }
 0x195   :  { %v242_v61 = vmul.f32 0.03125, %v231_v60 }
 0x197   :  { %v246_v62 = vsub.f32 %v222_v49, %v242_v61 }
 0x198   :  { %v234_v63 = vpop.xlane.xlu0 %233  ;;  %v237_v0 = vpop.xlane.xlu1 %236 }
 0x199   :  { %v243_v1 = vmul.f32 0.03125, %v234_v63  ;;  %v244_v2 = vmul.f32 0.03125, %v237_v0  ;;  %v250_v3 = vmul.f32 %v246_v62, %v246_v62 }
 0x19b   :  { %v247_v4 = vsub.f32 %v223_v52, %v243_v1  ;;  %v248_v5 = vsub.f32 %v224_v55, %v244_v2  ;;  %v254_v6 = vsel %vm228_vm1, %v250_v3, 0.0  ;;  %v464_v52 = vld [vmem:[%s5922_s0 + $0x8] sm:$0xff]  ;;  %v410_v55 = vlaneseq }
 0x19c   :  { %255 = vadd.xlane.f32.xlu0 %v254_v6  ;;  %v240_v7 = vpop.xlane.xlu1 %239 }
 0x19d   :  { %v245_v8 = vmul.f32 0.03125, %v240_v7  ;;  %v251_v9 = vmul.f32 %v247_v4, %v247_v4  ;;  %v252_v10 = vmul.f32 %v248_v5, %v248_v5  ;;  %v5171_v56 = vshrl.u32 %v410_v55, 7 }
 0x19f   :  { %v249_v11 = vsub.f32 %v225_v58, %v245_v8  ;;  %v257_v12 = vsel %vm228_vm1, %v251_v9, 0.0  ;;  %v260_v13 = vsel %vm228_vm1, %v252_v10, 0.0  ;;  %v413_v58 = vadd.s32 16, %v5171_v56 }
 0x1a0   :  { %258 = vadd.xlane.f32.xlu1 %v257_v12  ;;  %261 = vadd.xlane.f32.xlu0 %v260_v13  ;;  %vm491_vm3 = vcmp.lt.s32.totalorder %v5171_v56, 2  ;;  %vm609_vm5 = vcmp.lt.s32.totalorder %v5171_v56, 1  ;;  %vm828_vm8 = vcmp.lt.s32.totalorder %v5171_v56, 7 }
 0x1a1   :  { %v253_v14 = vmul.f32 %v249_v11, %v249_v11  ;;  %v433_v0 = vand.u32 15, %v413_v58 }
 0x1a3   :  { %v263_v15 = vsel %vm228_vm1, %v253_v14, 0.0  ;;  %vm498_vm4 = vcmp.ge.s32.totalorder %v433_v0, 2  ;;  %v469_v14 = vld [vmem:[%s5922_s0 + $0x30] sm:$0xff]  ;;  %vm616_vm7 = vcmp.ge.s32.totalorder %v433_v0, 1 }
 0x1a4   :  { %264 = vadd.xlane.f32.xlu1 %v263_v15 }
 0x225   :  { %v256_v20 = vpop.xlane.xlu0 %255 }
 0x226   :  { %v266_v21 = vmul.f32 0.03125, %v256_v20 }
 0x228   :  { %v270_v22 = vadd.f32 1e-05, %v266_v21  ;;  %v467_v21 = vld [vmem:[%s5922_s0 + $0x20] sm:$0xff] }
 0x229   :  { %v262_v23 = vpop.xlane.xlu0 %261  ;;  %v259_v24 = vpop.xlane.xlu1 %258 }
 0x22a   :  { %4738 = vrsqrt.f32 %v270_v22  ;;  %v268_v25 = vmul.f32 0.03125, %v262_v23  ;;  %v267_v26 = vmul.f32 0.03125, %v259_v24  ;;  %v474_v24 = vld [vmem:[%s5922_s0 + $0x58] sm:$0xff] }
 0x22c   :  { %v272_v27 = vadd.f32 1e-05, %v268_v25  ;;  %v271_v28 = vadd.f32 1e-05, %v267_v26 }
 0x22d   :  { %v265_v29 = vpop.xlane.xlu1 %264 }
 0x22e   :  { %4740 = vrsqrt.f32 %v272_v27  ;;  %v269_v30 = vmul.f32 0.03125, %v265_v29  ;;  %v473_v27 = vld [vmem:[%s5922_s0 + $0x50] sm:$0xff]  ;;  %v472_v29 = vld [vmem:[%s5922_s0 + $0x48] sm:$0xff] }
 0x22f   :  { %4742 = vrsqrt.f32 %v271_v28 }
 0x230   :  { %v273_v31 = vadd.f32 1e-05, %v269_v30 }
 0x232   :  { %4744 = vrsqrt.f32 %v273_v31  ;;  %v471_v31 = vld [vmem:[%s5922_s0 + $0x40] sm:$0xff] }
 0x237   :  { %v4739_v32 = vpop.eup %4738 }
 0x238   :  { %v278_v34 = vmul.f32 %v4739_v32, %v246_v62  ;;  %v419_v62 = vand.u32 15, %v5171_v56  ;;  %v412_v32 = vadd.s32 8, %v5171_v56 }
 0x23a   :  { %v288_v36 = vmul.f32 %v4037_v33, %v278_v34  ;;  %vm496_vm2 = vcmp.ge.s32.totalorder %v419_v62, 2  ;;  %vm614_vm6 = vcmp.ge.s32.totalorder %v419_v62, 1  ;;  %v477_v34 = vld [vmem:[%s5922_s0 + $0x70] sm:$0xff] }
 0x23b   :  { %v4741_v37 = vpop.eup %4740 }
 0x23c   :  { %v4743_v38 = vpop.eup %4742  ;;  %v298_v39 = vadd.f32 %v4038_v35, %v288_v36  ;;  %v280_v40 = vmul.f32 %v4741_v37, %v248_v5 }
 0x23d   :  { %v279_v41 = vmul.f32 %v4743_v38, %v247_v4  ;;  %v426_v38 = vand.u32 15, %v412_v32 }
 0x23e   :  { %4417 = vmatprep.mubr.msk.f32.mxu1 %vm228_vm1, %v298_v39  ;;  %v290_v42 = vmul.f32 %v4037_v33, %v280_v40  ;;  %v476_v39 = vld [vmem:[%s5922_s0 + $0x68] sm:$0xff] }
 0x23f   :  { %v4745_v43 = vpop.eup %4744  ;;  %v289_v44 = vmul.f32 %v4037_v33, %v279_v41  ;;  %v475_v41 = vld [vmem:[%s5922_s0 + $0x60] sm:$0xff]  ;;  %vm834_vm9 = vcmp.lt.s32.totalorder %v426_v38, 15 }
 0x240   :  { %v300_v45 = vadd.f32 %v4038_v35, %v290_v42  ;;  %v281_v46 = vmul.f32 %v4745_v43, %v249_v11 }
 0x241   :  { %v299_v47 = vadd.f32 %v4038_v35, %v289_v44 }
 0x242   :  { %v291_v48 = vmul.f32 %v4037_v33, %v281_v46  ;;  %v478_v33 = vld [vmem:[%s5922_s0 + $0x78] sm:$0xff] }
 0x243   :  { %4418 = vmatmul.mubr.msk.f32.vlgmr.msra.gmra.mxu1 %vm228_vm1, %v299_v47 }
 0x244   :  { %4420 = vmatprep.mubr.msk.f32.mxu1 %vm228_vm1, %v300_v45  ;;  %v301_v49 = vadd.f32 %v4038_v35, %v291_v48  ;;  %4424 = vmatpush3.msra.mxu1 %v466_v50  ;;  %v414_v35 = vadd.s32 24, %v5171_v56 }
 0x245   :  { %4425 = vmatprep.subr.mxu1 %v465_v51 }
 0x246   :  { %4426 = vmatpush3.msra.mxu1 %v465_v51  ;;  %v440_v42 = vand.u32 15, %v414_v35 }
 0x247   :  { %4421 = vmatmul.mubr.msk.f32.gmra.mxu1 %vm228_vm1, %v301_v49  ;;  %4427 = vmatprep.subr.mxu1 %v464_v52 }
 0x248   :  { %4428 = vmatpush3.msra.mxu1 %v464_v52  ;;  %vm836_vm10 = vcmp.lt.s32.totalorder %v440_v42, 15 }
 0x249   :  { %4429 = vmatprep.subr.mxu1 %v463_v53 }
 0x24a   :  { %4430 = vmatpush3.msra.mxu1 %v463_v53 }
 0x24b   :  { %4437 = vmatprep.subr.mxu1 %v470_v54 }
 0x303   :  { %v4419_v57 = vpop.f32.mrf.mxu1 }
 0x304   :  { %v5180_v1 = vadd.f32 %v4419_v57, %v4039_v59 }
 0x305   :  { %v391_v60 = vpop.f32.mrf.mxu1 }
 0x306   :  { %v5177_v61 = vadd.f32 %v4039_v59, %v391_v60  ;;  %v488_v8 = vrot.slane %v5180_v1, 6  ;;  %v606_v22 = vrot.slane %v5180_v1, 7  ;;  %v825_v40 = vrot.slane %v5180_v1, 1 }
 0x307   :  { %v4422_v63 = vpop.f32.mrf.mxu1 }
 0x308   :  { %v5182_v2 = vadd.f32 %v4422_v63, %v4039_v59  ;;  %v487_v5 = vrot.slane %v5177_v61, 6  ;;  %v605_v15 = vrot.slane %v5177_v61, 7  ;;  %v824_v37 = vrot.slane %v5177_v61, 1 }
 0x309   :  { %v401_v3 = vpop.f32.mrf.mxu1 }
 0x30a   :  { %v5184_v4 = vadd.f32 %v4039_v59, %v401_v3  ;;  %v490_v6 = vrot.slane %v5182_v2, 6  ;;  %v608_v10 = vrot.slane %v5182_v2, 7  ;;  %v494_v12 = vsel %vm491_vm3, %v487_v5, %v488_v8  ;;  %v4044_v59 = vld [vmem:[%s5924_s5] ss:$0 sm:$0xff]  ;;  %s4938_s5 = smov 80  }
 0x30b   :  { %v612_v26 = vsel %vm609_vm5, %v605_v15, %v606_v22  ;;  %v831_v43 = vsel %vm828_vm8, %v824_v37, %v825_v40  ;;  %v827_v45 = vrot.slane %v5182_v2, 1 }
 0x30c   :  { %v495_v7 = vsel %vm491_vm3, %v490_v6, %v487_v5  ;;  %v489_v9 = vrot.slane %v5184_v4, 6  ;;  %v613_v18 = vsel %vm609_vm5, %v608_v10, %v605_v15  ;;  %v607_v19 = vrot.slane %v5184_v4, 7 }
 0x30d   :  { %v500_v11 = vsel %vm496_vm2, %v495_v7, 0.0  ;;  %v618_v23 = vsel %vm614_vm6, %v613_v18, 0.0  ;;  %v826_v36 = vrot.slane %v5184_v4, 1  ;;  %v832_v48 = vsel %vm828_vm8, %v827_v45, %v824_v37 }
 0x30e   :  { %4431 = vmatprep.mubr.msk.f32.mxu1 %vm228_vm1, %v500_v11  ;;  %v493_v13 = vsel %vm491_vm3, %v488_v8, %v489_v9  ;;  %v492_v20 = vsel %vm491_vm3, %v489_v9, %v490_v6  ;;  %v611_v25 = vsel %vm609_vm5, %v606_v22, %v607_v19  ;;  %v610_v30 = vsel %vm609_vm5, %v607_v19, %v608_v10 }
 0x30f   :  { %4432 = vmatmul.mubr.msk.f32.vlgmr.msra.gmra.mxu1 %vm228_vm1, %v494_v12  ;;  %v502_v16 = vsel %vm498_vm4, %v493_v13, 0.0  ;;  %v620_v28 = vsel %vm616_vm7, %v611_v25, 0.0  ;;  %v830_v44 = vsel %vm828_vm8, %v825_v40, %v826_v36  ;;  %v829_v47 = vsel %vm828_vm8, %v826_v36, %v827_v45 }
 0x310   :  { %4434 = vmatprep.mubr.msk.f32.mxu1 %vm228_vm1, %v502_v16  ;;  %4438 = vmatpush3.msra.mxu1 %v470_v54  ;;  %v838_v46 = vsel %vm834_vm9, %v830_v44, 0.0  ;;  %v840_v49 = vsel %vm836_vm10, %v832_v48, 0.0 }
 0x311   :  { %4439 = vmatprep.subr.mxu1 %v469_v14 }
 0x312   :  { %4440 = vmatpush3.msra.mxu1 %v469_v14 }
 0x313   :  { %4435 = vmatmul.mubr.msk.f32.gmra.mxu1 %vm228_vm1, %v492_v20  ;;  %4441 = vmatprep.subr.mxu1 %v468_v17 }
 0x314   :  { %4442 = vmatpush3.msra.mxu1 %v468_v17  ;;  %4445 = vmatprep.mubr.msk.f32.mxu1 %vm228_vm1, %v618_v23 }
 0x315   :  { %4443 = vmatprep.subr.mxu1 %v467_v21 }
 0x316   :  { %4444 = vmatpush3.msra.mxu1 %v467_v21 }
 0x317   :  { %4446 = vmatmul.mubr.msk.f32.vlgmr.msra.gmra.mxu1 %vm228_vm1, %v612_v26  ;;  %4451 = vmatprep.subr.mxu1 %v474_v24 }
 0x318   :  { %4448 = vmatprep.mubr.msk.f32.mxu1 %vm228_vm1, %v620_v28  ;;  %4452 = vmatpush3.msra.mxu1 %v474_v24 }
 0x319   :  { %4453 = vmatprep.subr.mxu1 %v473_v27 }
 0x31a   :  { %4454 = vmatpush3.msra.mxu1 %v473_v27 }
 0x31b   :  { %4449 = vmatmul.mubr.msk.f32.gmra.mxu1 %vm228_vm1, %v610_v30  ;;  %4455 = vmatprep.subr.mxu1 %v472_v29 }
 0x31c   :  { %4456 = vmatpush3.msra.mxu1 %v472_v29  ;;  %4459 = vmatprep.mubr.msk.f32.mxu1 %vm228_vm1, %v5177_v61 }
 0x31d   :  { %4457 = vmatprep.subr.mxu1 %v471_v31 }
 0x31e   :  { %4458 = vmatpush3.msra.mxu1 %v471_v31 }
 0x31f   :  { %4460 = vmatmul.mubr.msk.f32.vlgmr.msra.gmra.mxu1 %vm228_vm1, %v5180_v1  ;;  %4465 = vmatprep.subr.mxu1 %v478_v33 }
 0x320   :  { %4462 = vmatprep.mubr.msk.f32.mxu1 %vm228_vm1, %v5184_v4  ;;  %4466 = vmatpush3.msra.mxu1 %v478_v33 }
 0x321   :  { %4467 = vmatprep.subr.mxu1 %v477_v34 }
 0x322   :  { %4468 = vmatpush3.msra.mxu1 %v477_v34 }
 0x323   :  { %4463 = vmatmul.mubr.msk.f32.gmra.mxu1 %vm228_vm1, %v5182_v2  ;;  %4469 = vmatprep.subr.mxu1 %v476_v39 }
 0x324   :  { %4470 = vmatpush3.msra.mxu1 %v476_v39  ;;  %4473 = vmatprep.mubr.msk.f32.mxu1 %vm228_vm1, %v831_v43 }
 0x325   :  { %4471 = vmatprep.subr.mxu1 %v475_v41 }
 0x326   :  { %4472 = vmatpush3.msra.mxu1 %v475_v41 }
 0x327   :  { %4474 = vmatmul.mubr.msk.f32.vlgmr.msra.gmra.mxu1 %vm228_vm1, %v838_v46 }
 0x328   :  { %4476 = vmatprep.mubr.msk.f32.mxu1 %vm228_vm1, %v829_v47 }
 0x32b   :  { %4477 = vmatmul.mubr.msk.f32.gmra.mxu1 %vm228_vm1, %v840_v49 }
 0x3cf   :  { %v4433_v50 = vpop.f32.mrf.mxu1 }
 0x3d0   :  { %v602_v62 = vadd.f32 %v4433_v50, %v4044_v59 }
 0x3d1   :  { %v582_v51 = vpop.f32.mrf.mxu1 }
 0x3d2   :  { %v601_v0 = vadd.f32 %v4044_v59, %v582_v51 }
 0x3d3   :  { %v4436_v52 = vpop.f32.mrf.mxu1 }
 0x3d4   :  { %v604_v6 = vadd.f32 %v4436_v52, %v4044_v59 }
 0x3d5   :  { %v592_v53 = vpop.f32.mrf.mxu1 }
 0x3d6   :  { %v603_v10 = vadd.f32 %v4044_v59, %v592_v53 }
 0x3d7   :  { %v4447_v54 = vpop.f32.mrf.mxu1 }
 0x3d8   :  { %v720_v3 = vadd.f32 %v4447_v54, %v602_v62 }
 0x3d9   :  { %v700_v55 = vpop.f32.mrf.mxu1 }
 0x3da   :  { %v719_v7 = vadd.f32 %v700_v55, %v601_v0 }
 0x3db   :  { %v4450_v57 = vpop.f32.mrf.mxu1 }
 0x3dc   :  { %v722_v11 = vadd.f32 %v4450_v57, %v604_v6 }
 0x3dd   :  { %v710_v58 = vpop.f32.mrf.mxu1 }
 0x3de   :  { %v721_v15 = vadd.f32 %v710_v58, %v603_v10 }
 0x3df   :  { %v4461_v56 = vpop.f32.mrf.mxu1 }
 0x3e0   :  { %v821_v8 = vadd.f32 %v4461_v56, %v720_v3 }
 0x3e1   :  { %v801_v60 = vpop.f32.mrf.mxu1 }
 0x3e2   :  { %v820_v12 = vadd.f32 %v801_v60, %v719_v7 }
 0x3e3   :  { %v4464_v63 = vpop.f32.mrf.mxu1 }
 0x3e4   :  { %v823_v16 = vadd.f32 %v4464_v63, %v722_v11 }
 0x3e5   :  { %v811_v5 = vpop.f32.mrf.mxu1 }
 0x3e6   :  { %v822_v20 = vadd.f32 %v811_v5, %v721_v15 }
 0x3e7   :  { %v4475_v9 = vpop.f32.mrf.mxu1 }
 0x3e8   :  { %v939_v13 = vadd.f32 %v4475_v9, %v821_v8 }
 0x3e9   :  { %v919_v14 = vpop.f32.mrf.mxu1 }
 0x3ea   :  { %v943_v17 = vmul.f32 %v939_v13, %v939_v13  ;;  %v938_v18 = vadd.f32 %v919_v14, %v820_v12 }
 0x3eb   :  { %v4478_v19 = vpop.f32.mrf.mxu1 }
 0x3ec   :  { %v947_v21 = vmul.f32 %v943_v17, %v939_v13  ;;  %v942_v22 = vmul.f32 %v938_v18, %v938_v18  ;;  %v941_v23 = vadd.f32 %v4478_v19, %v823_v16 }
 0x3ed   :  { %v929_v24 = vpop.f32.mrf.mxu1 }
 0x3ee   :  { %v951_v25 = vmul.f32 0.044715, %v947_v21  ;;  %v946_v26 = vmul.f32 %v942_v22, %v938_v18  ;;  %v945_v27 = vmul.f32 %v941_v23, %v941_v23  ;;  %v940_v28 = vadd.f32 %v929_v24, %v822_v20  ;;  %v1062_v24 = vld [vmem:[%s5889_s10 + $0x10] sm:$0xff] }
 0x3f0   :  { %v955_v29 = vadd.f32 %v951_v25, %v939_v13  ;;  %v950_v30 = vmul.f32 0.044715, %v946_v26  ;;  %v949_v31 = vmul.f32 %v945_v27, %v941_v23  ;;  %v944_v32 = vmul.f32 %v940_v28, %v940_v28  ;;  %v1061_v25 = vld [vmem:[%s5889_s10 + $0x8] sm:$0xff]  ;;  %v1060_v26 = vld [vmem:[%s5889_s10] sm:$0xff] }
 0x3f2   :  { %v959_v33 = vmul.f32 0.7978846, %v955_v29  ;;  %v954_v34 = vadd.f32 %v950_v30, %v938_v18  ;;  %v953_v35 = vmul.f32 0.044715, %v949_v31  ;;  %v948_v36 = vmul.f32 %v944_v32, %v940_v28 }
 0x3f4   :  { %4746 = vtanh.f32 %v959_v33  ;;  %v958_v37 = vmul.f32 0.7978846, %v954_v34  ;;  %v957_v38 = vadd.f32 %v953_v35, %v941_v23  ;;  %v952_v39 = vmul.f32 0.044715, %v948_v36 }
 0x3f6   :  { %4748 = vtanh.f32 %v958_v37  ;;  %v961_v40 = vmul.f32 0.7978846, %v957_v38  ;;  %v956_v41 = vadd.f32 %v952_v39, %v940_v28 }
 0x3f8   :  { %4750 = vtanh.f32 %v961_v40  ;;  %v960_v42 = vmul.f32 0.7978846, %v956_v41  ;;  %v4061_v40 = vld [vmem:[%s5925_s8] ss:$0 sm:$0xff] }
 0x3fa   :  { %4752 = vtanh.f32 %v960_v42 }
 0x401   :  { %v4747_v43 = vpop.eup %4746 }
 0x402   :  { %v967_v44 = vadd.f32 1.0, %v4747_v43  ;;  %v4062_v43 = vld [vmem:[%s5888_s9] ss:$0 sm:$0xff] }
 0x403   :  { %v4749_v45 = vpop.eup %4748 }
 0x404   :  { %v971_v46 = vmul.f32 0.5, %v967_v44  ;;  %v966_v47 = vadd.f32 1.0, %v4749_v45 }
 0x405   :  { %v4751_v48 = vpop.eup %4750 }
 0x406   :  { %v975_v49 = vmul.f32 %v971_v46, %v939_v13  ;;  %v970_v50 = vmul.f32 0.5, %v966_v47  ;;  %v969_v51 = vadd.f32 1.0, %v4751_v48 }
 0x407   :  { %v4753_v52 = vpop.eup %4752 }
 0x408   :  { %v979_v53 = vadd.f32 %v975_v49, %v5180_v1  ;;  %v974_v54 = vmul.f32 %v970_v50, %v938_v18  ;;  %v973_v55 = vmul.f32 0.5, %v969_v51  ;;  %v968_v57 = vadd.f32 1.0, %v4753_v52 }
 0x40a   :  { %v987_v58 = vsel %vm228_vm1, %v979_v53, 0.0  ;;  %v978_v59 = vadd.f32 %v974_v54, %v5177_v61  ;;  %v977_v56 = vmul.f32 %v973_v55, %v941_v23  ;;  %v972_v60 = vmul.f32 0.5, %v968_v57  ;;  %v1063_v23 = vld [vmem:[%s5889_s10 + $0x18] sm:$0xff] }
 0x40b   :  { %988 = vadd.xlane.f32.xlu1 %v987_v58  ;;  %4479 = vmatprep.subr.mxu0 %v1063_v23  ;;  %v4063_v58 = vld [vmem:[%s5890_s11] ss:$0 sm:$0xff] }
 0x40c   :  { %v984_v62 = vsel %vm228_vm1, %v978_v59, 0.0  ;;  %v981_v63 = vadd.f32 %v977_v56, %v5182_v2  ;;  %v976_v0 = vmul.f32 %v972_v60, %v940_v28  ;;  %4480 = vmatpush3.msra.mxu0 %v1063_v23 }
 0x40d   :  { %985 = vadd.xlane.f32.xlu0 %v984_v62  ;;  %4481 = vmatprep.subr.mxu0 %v1062_v24 }
 0x40e   :  { %v993_v3 = vsel %vm228_vm1, %v981_v63, 0.0  ;;  %v980_v1 = vadd.f32 %v976_v0, %v5184_v4  ;;  %4482 = vmatpush3.msra.mxu0 %v1062_v24 }
 0x40f   :  { %994 = vadd.xlane.f32.xlu1 %v993_v3  ;;  %4483 = vmatprep.subr.mxu0 %v1061_v25 }
 0x410   :  { %v990_v5 = vsel %vm228_vm1, %v980_v1, 0.0  ;;  %4484 = vmatpush3.msra.mxu0 %v1061_v25 }
 0x411   :  { %991 = vadd.xlane.f32.xlu0 %v990_v5  ;;  %4485 = vmatprep.subr.mxu0 %v1060_v26 }
 0x412   :  { %4486 = vmatpush3.msra.mxu0 %v1060_v26 }
 0x494   :  { %v989_v6 = vpop.xlane.xlu1 %988 }
 0x495   :  { %v997_v7 = vmul.f32 0.03125, %v989_v6 }
 0x496   :  { %v986_v61 = vpop.xlane.xlu0 %985 }
 0x497   :  { %v1001_v8 = vsub.f32 %v979_v53, %v997_v7  ;;  %v996_v9 = vmul.f32 0.03125, %v986_v61 }
 0x498   :  { %v995_v10 = vpop.xlane.xlu1 %994 }
 0x499   :  { %v1000_v11 = vsub.f32 %v978_v59, %v996_v9  ;;  %v999_v12 = vmul.f32 0.03125, %v995_v10  ;;  %v1005_v13 = vmul.f32 %v1001_v8, %v1001_v8 }
 0x49a   :  { %v992_v2 = vpop.xlane.xlu0 %991 }
 0x49b   :  { %v1003_v14 = vsub.f32 %v981_v63, %v999_v12  ;;  %v998_v15 = vmul.f32 0.03125, %v992_v2  ;;  %v1011_v16 = vsel %vm228_vm1, %v1005_v13, 0.0  ;;  %v1004_v17 = vmul.f32 %v1000_v11, %v1000_v11 }
 0x49c   :  { %1012 = vadd.xlane.f32.xlu1 %v1011_v16 }
 0x49d   :  { %v1002_v4 = vsub.f32 %v980_v1, %v998_v15  ;;  %v1008_v18 = vsel %vm228_vm1, %v1004_v17, 0.0  ;;  %v1007_v19 = vmul.f32 %v1003_v14, %v1003_v14 }
 0x49e   :  { %1009 = vadd.xlane.f32.xlu0 %v1008_v18 }
 0x49f   :  { %v1017_v20 = vsel %vm228_vm1, %v1007_v19, 0.0  ;;  %v1006_v21 = vmul.f32 %v1002_v4, %v1002_v4 }
 0x4a0   :  { %1018 = vadd.xlane.f32.xlu1 %v1017_v20 }
 0x4a1   :  { %v1014_v22 = vsel %vm228_vm1, %v1006_v21, 0.0 }
 0x4a2   :  { %1015 = vadd.xlane.f32.xlu0 %v1014_v22 }
 0x525   :  { %v1013_v27 = vpop.xlane.xlu1 %1012 }
 0x526   :  { %v1021_v28 = vmul.f32 0.03125, %v1013_v27 }
 0x527   :  { %v1010_v29 = vpop.xlane.xlu0 %1009 }
 0x528   :  { %v1025_v30 = vadd.f32 1e-05, %v1021_v28  ;;  %v1020_v31 = vmul.f32 0.03125, %v1010_v29 }
 0x529   :  { %v1019_v32 = vpop.xlane.xlu1 %1018 }
 0x52a   :  { %4754 = vrsqrt.f32 %v1025_v30  ;;  %v1024_v33 = vadd.f32 1e-05, %v1020_v31  ;;  %v1023_v34 = vmul.f32 0.03125, %v1019_v32 }
 0x52b   :  { %v1016_v35 = vpop.xlane.xlu0 %1015 }
 0x52c   :  { %4756 = vrsqrt.f32 %v1024_v33  ;;  %v1027_v36 = vadd.f32 1e-05, %v1023_v34  ;;  %v1022_v37 = vmul.f32 0.03125, %v1016_v35 }
 0x52e   :  { %4758 = vrsqrt.f32 %v1027_v36  ;;  %v1026_v38 = vadd.f32 1e-05, %v1022_v37 }
 0x530   :  { %4760 = vrsqrt.f32 %v1026_v38 }
 0x537   :  { %v4755_v39 = vpop.eup %4754 }
 0x538   :  { %v1033_v41 = vmul.f32 %v4755_v39, %v1001_v8 }
 0x539   :  { %v4757_v42 = vpop.eup %4756 }
 0x53a   :  { %v1032_v44 = vmul.f32 %v4757_v42, %v1000_v11  ;;  %v1043_v45 = vmul.f32 %v4061_v40, %v1033_v41 }
 0x53b   :  { %v4759_v46 = vpop.eup %4758 }
 0x53c   :  { %v1042_v47 = vmul.f32 %v4061_v40, %v1032_v44  ;;  %v5313_v48 = vadd.f32 %v4062_v43, %v1043_v45  ;;  %v1035_v49 = vmul.f32 %v4759_v46, %v1003_v14 }
 0x53d   :  { %v4761_v50 = vpop.eup %4760 }
 0x53e   :  { %v5315_v51 = vadd.f32 %v4062_v43, %v1042_v47  ;;  %1057 = vst.msk [vmem:[#allocation2 + $0x8] sm:$0xff] %vm228_vm1, %v5313_v48  ;;  %v1034_v52 = vmul.f32 %v4761_v50, %v1002_v4  ;;  %v1045_v53 = vmul.f32 %v4061_v40, %v1035_v49 }
 0x540   :  { %4487 = vmatprep.mubr.msk.f32.mxu0 %vm228_vm1, %v5315_v51  ;;  %1056 = vst.msk [vmem:[#allocation2] sm:$0xff] %vm228_vm1, %v5315_v51  ;;  %v1044_v54 = vmul.f32 %v4061_v40, %v1034_v52  ;;  %v5323_v55 = vadd.f32 %v4062_v43, %v1045_v53 }
 0x541   :  { %4488 = vmatmul.mubr.msk.f32.vlgmr.msra.gmra.mxu0 %vm228_vm1, %v5313_v48 }
 0x542   :  { %v5327_v57 = vadd.f32 %v4062_v43, %v1044_v54  ;;  %1059 = vst.msk [vmem:[#allocation2 + $0x18] sm:$0xff] %vm228_vm1, %v5323_v55 }
 0x544   :  { %4490 = vmatprep.mubr.msk.f32.mxu0 %vm228_vm1, %v5327_v57  ;;  %1058 = vst.msk [vmem:[#allocation2 + $0x10] sm:$0xff] %vm228_vm1, %v5327_v57 }
 0x545   :  { %4491 = vmatmul.mubr.msk.f32.gmra.mxu0 %vm228_vm1, %v5323_v55 }
 0x601   :  { %v4489_v59 = vpop.f32.mrf.mxu0 }
 0x602   :  { %v5340_v56 = vadd.f32 %v4489_v59, %v4063_v58 }
 0x603   :  { %v1149_v60 = vpop.f32.mrf.mxu0 }
 0x604   :  { %v5342_v62 = vadd.f32 %v4063_v58, %v1149_v60  ;;  %1377 = vrot.lane.b32.xlu1 %v5340_v56, %s4938_s5  ;;  %1174 = vrot.lane.b32.xlu0 %v5340_v56, %s4939_s26  ;;  %v1169_v0 = vmul.f32 0.25, %v5340_v56 }
 0x605   :  { %v4492_v3 = vpop.f32.mrf.mxu0 }
 0x606   :  { %v1168_v63 = vmul.f32 0.25, %v5342_v62  ;;  %v5357_v1 = vadd.f32 %v4492_v3, %v4063_v58 }
 0x607   :  { %v1159_v5 = vpop.f32.mrf.mxu0 }
 0x608   :  { %1172 = vrot.lane.b32.xlu1 %v5342_v62, %s4939_s26  ;;  %1371 = vrot.lane.b32.xlu0 %v1168_v63, %s4940_s28  ;;  %v5361_v6 = vadd.f32 %v4063_v58, %v1159_v5  ;;  %v5386_v14 = vmul.f32 0.25, %v5357_v1 }
 0x609   :  { %4497 = vmatprep.mubr.msk.f32.mxu1 %vm1176_vm11, %v1168_v63 }
 0x60a   :  { %v5376_v13 = vmul.f32 0.25, %v5361_v6 }
 0x60c   :  { %1375 = vrot.lane.b32.xlu1 %v5342_v62, %s4938_s5  ;;  %1373 = vrot.lane.b32.xlu0 %v1169_v0, %s4940_s28 }
 0x610   :  { %1587 = vrot.lane.b32.xlu1 %v5357_v1, %s4939_s26 }
 0x614   :  { %1585 = vrot.lane.b32.xlu1 %v5361_v6, %s4939_s26 }
 0x676   :  { %v1378_v7 = vpop.permute.xlu1 %1377  ;;  %v1175_v61 = vpop.permute.xlu0 %1174 }
 0x677   :  { %4493 = vmatprep.subr.msk.mxu1 %vm1176_vm11, %v1175_v61  ;;  %4507 = vmatprep.subr.msk.mxu0 %vm1176_vm11, %v1378_v7 }
 0x678   :  { %4494 = vmatpush3.xpose.msk.msra.mxu1 %vm1176_vm11, %v1175_v61  ;;  %4508 = vmatpush3.xpose.msk.msra.mxu0 %vm1176_vm11, %v1378_v7 }
 0x67a   :  { %v1173_v8 = vpop.permute.xlu1 %1172  ;;  %v1372_v9 = vpop.permute.xlu0 %1371 }
 0x67b   :  { %4495 = vmatprep.subr.msk.mxu1 %vm1176_vm11, %v1173_v8  ;;  %4511 = vmatprep.mubr.msk.f32.mxu0 %vm1176_vm11, %v1372_v9 }
 0x67c   :  { %4496 = vmatpush3.xpose.msk.msra.mxu1 %vm1176_vm11, %v1173_v8 }
 0x67e   :  { %v1376_v10 = vpop.permute.xlu1 %1375  ;;  %v1374_v11 = vpop.permute.xlu0 %1373 }
 0x67f   :  { %4498 = vmatmul.mubr.msk.f32.vlgmr.msra.gmra.mxu1 %vm1176_vm11, %v1169_v0  ;;  %4509 = vmatprep.subr.msk.mxu0 %vm1176_vm11, %v1376_v10 }
 0x680   :  { %4510 = vmatpush3.xpose.msk.msra.mxu0 %vm1176_vm11, %v1376_v10 }
 0x682   :  { %v1588_v12 = vpop.permute.xlu1 %1587 }
 0x683   :  { %4512 = vmatmul.mubr.msk.f32.vlgmr.msra.gmra.mxu0 %vm1176_vm11, %v1374_v11  ;;  %4521 = vmatprep.subr.msk.mxu0 %vm1176_vm11, %v1588_v12 }
 0x684   :  { %4522 = vmatpush3.xpose.msk.msra.mxu0 %vm1176_vm11, %v1588_v12  ;;  %4525 = vmatprep.mubr.msk.f32.mxu0 %vm1176_vm11, %v5376_v13 }
 0x686   :  { %v1586_v2 = vpop.permute.xlu1 %1585 }
 0x687   :  { %4523 = vmatprep.subr.msk.mxu0 %vm1176_vm11, %v1586_v2 }
 0x688   :  { %4524 = vmatpush3.xpose.msk.msra.mxu0 %vm1176_vm11, %v1586_v2 }
 0x68b   :  { %4526 = vmatmul.mubr.msk.f32.vlgmr.msra.gmra.mxu0 %vm1176_vm11, %v5386_v14 }
 0x73f   :  { %v4499_v15 = vpop.f32.mrf.mxu1 }
 0x740   :  { %v1265_v16 = vsel %vm1176_vm11, %v4499_v15, -inf }
 0x741   :  { %1266 = vmax.xlane.f32.xlu1 %v1265_v16  ;;  %v1253_v18 = vpop.f32.mrf.mxu1 }
 0x742   :  { %v1262_v19 = vsel %vm1176_vm11, %v1253_v18, -inf }
 0x743   :  { %v4513_v17 = vpop.f32.mrf.mxu0 }
 0x744   :  { %v1465_v4 = vsel %vm1176_vm11, %v4513_v17, -inf }
 0x745   :  { %1466 = vmax.xlane.f32.xlu0 %v1465_v4  ;;  %v1453_v20 = vpop.f32.mrf.mxu0 }
 0x746   :  { %v1462_v23 = vsel %vm1176_vm11, %v1453_v20, -inf }
 0x749   :  { %1263 = vmax.xlane.f32.xlu0 %v1262_v19 }
 0x74b   :  { %v4527_v21 = vpop.f32.mrf.mxu0 }
 0x74c   :  { %v1677_v22 = vsel %vm1176_vm11, %v4527_v21, -inf }
 0x74d   :  { %1678 = vmax.xlane.f32.xlu1 %v1677_v22  ;;  %v1665_v24 = vpop.f32.mrf.mxu0  ;;  %1463 = vmax.xlane.f32.xlu0 %v1462_v23 }
 0x74e   :  { %v1674_v25 = vsel %vm1176_vm11, %v1665_v24, -inf }
 0x751   :  { %1675 = vmax.xlane.f32.xlu0 %v1674_v25 }
 0x75e   :  { %1284 = vrot.lane.b32.xlu1 %v5342_v62, %s4941_s6 }
 0x762   :  { %1486 = vrot.lane.b32.xlu1 %v5340_v56, %s4942_s2 }
 0x766   :  { %1484 = vrot.lane.b32.xlu1 %v5342_v62, %s4942_s2 }
 0x767   :  { %1286 = vrot.lane.b32.xlu0 %v5340_v56, %s4941_s6 }
 0x76a   :  { %1696 = vrot.lane.b32.xlu1 %v5361_v6, %s4941_s6 }
 0x76b   :  { %1698 = vrot.lane.b32.xlu0 %v5357_v1, %s4941_s6 }
 0x7ca   :  { %v1267_v26 = vpop.xlane.xlu1 %1266 }
 0x7cb   :  { %v1269_v27 = vsub.f32 %v4499_v15, %v1267_v26 }
 0x7cd   :  { %v1272_v28 = vmul.f32 1.442695, %v1269_v27 }
 0x7ce   :  { %v1467_v29 = vpop.xlane.xlu0 %1466 }
 0x7cf   :  { %4762 = vpow2.f32 %v1272_v28  ;;  %v1469_v30 = vsub.f32 %v4513_v17, %v1467_v29 }
 0x7d1   :  { %v1472_v31 = vmul.f32 1.442695, %v1469_v30 }
 0x7d2   :  { %v1264_v32 = vpop.xlane.xlu0 %1263 }
 0x7d3   :  { %4764 = vpow2.f32 %v1472_v31  ;;  %v1268_v33 = vsub.f32 %v1253_v18, %v1264_v32 }
 0x7d5   :  { %v1270_v34 = vmul.f32 1.442695, %v1268_v33 }
 0x7d6   :  { %v1679_v35 = vpop.xlane.xlu1 %1678  ;;  %v1464_v36 = vpop.xlane.xlu0 %1463 }
 0x7d7   :  { %4766 = vpow2.f32 %v1270_v34  ;;  %v1681_v37 = vsub.f32 %v4527_v21, %v1679_v35  ;;  %v1468_v38 = vsub.f32 %v1453_v20, %v1464_v36 }
 0x7d9   :  { %v1684_v39 = vmul.f32 1.442695, %v1681_v37  ;;  %v1470_v40 = vmul.f32 1.442695, %v1468_v38 }
 0x7da   :  { %v1676_v41 = vpop.xlane.xlu0 %1675  ;;  %v1285_v44 = vpop.permute.xlu1 %1284 }
 0x7db   :  { %4768 = vpow2.f32 %v1684_v39  ;;  %v1680_v42 = vsub.f32 %v1665_v24, %v1676_v41 }
 0x7dc   :  { %v4763_v43 = vpop.eup %4762  ;;  %4770 = vpow2.f32 %v1470_v40 }
 0x7dd   :  { %v1682_v45 = vmul.f32 1.442695, %v1680_v42  ;;  %v1277_v46 = vsel %vm1176_vm11, %v4763_v43, 0.0 }
 0x7de   :  { %1278 = vadd.xlane.f32.xlu1 %v1277_v46  ;;  %v1287_v47 = vpop.permute.xlu0 %1286  ;;  %v1487_v52 = vpop.permute.xlu1 %1486 }
 0x7df   :  { %4772 = vpow2.f32 %v1682_v45  ;;  %4500 = vmatprep.subr.mxu1 %v1287_v47 }
 0x7e0   :  { %v4765_v49 = vpop.eup %4764  ;;  %4501 = vmatpush3.msra.mxu1 %v1287_v47 }
 0x7e1   :  { %4502 = vmatprep.subr.mxu1 %v1285_v44  ;;  %v1477_v50 = vsel %vm1176_vm11, %v4765_v49, 0.0 }
 0x7e2   :  { %1478 = vadd.xlane.f32.xlu1 %v1477_v50  ;;  %4503 = vmatpush3.msra.mxu1 %v1285_v44  ;;  %v1485_v0 = vpop.permute.xlu1 %1484  ;;  %v1699_v5 = vpop.permute.xlu0 %1698  ;;  %v1996_v50 = vld [vmem:[%s5891_s12 + $0x18] sm:$0xff] }
 0x7e3   :  { %4514 = vmatprep.subr.mxu1 %v1487_v52 }
 0x7e4   :  { %v4767_v53 = vpop.eup %4766 }
 0x7e5   :  { %v1274_v54 = vsel %vm1176_vm11, %v4767_v53, 0.0 }
 0x7e6   :  { %1275 = vadd.xlane.f32.xlu0 %v1274_v54  ;;  %v1697_v3 = vpop.permute.xlu1 %1696 }
 0x7e8   :  { %v4769_v58 = vpop.eup %4768 }
 0x7e9   :  { %v4771_v59 = vpop.eup %4770  ;;  %v1689_v56 = vsel %vm1176_vm11, %v4769_v58, 0.0 }
 0x7ea   :  { %1690 = vadd.xlane.f32.xlu1 %v1689_v56  ;;  %v1474_v60 = vsel %vm1176_vm11, %v4771_v59, 0.0 }
 0x7eb   :  { %1475 = vadd.xlane.f32.xlu0 %v1474_v60  ;;  %v1994_v60 = vld [vmem:[%s5891_s12 + $0x8] sm:$0xff] }
 0x7ec   :  { %v4773_v62 = vpop.eup %4772 }
 0x7ed   :  { %v1686_v63 = vsel %vm1176_vm11, %v4773_v62, 0.0 }
 0x7ef   :  { %1687 = vadd.xlane.f32.xlu0 %v1686_v63 }
 0x7fb   :  { %1787 = vrot.lane.b32.xlu1 %v5361_v6, %s4938_s5 }
 0x7ff   :  { %1785 = vrot.lane.b32.xlu1 %v5386_v14, %s4940_s28 }
 0x805   :  { %1789 = vrot.lane.b32.xlu0 %v5357_v1, %s4938_s5 }
 0x809   :  { %1783 = vrot.lane.b32.xlu0 %v5376_v13, %s4940_s28 }
 0x867   :  { %v1279_v7 = vpop.xlane.xlu1 %1278 }
 0x868   :  { %4774 = vrcp.f32 %v1279_v7 }
 0x86b   :  { %v1479_v8 = vpop.xlane.xlu1 %1478 }
 0x86f   :  { %v1276_v61 = vpop.xlane.xlu0 %1275 }
 0x870   :  { %4776 = vrcp.f32 %v1276_v61 }
 0x871   :  { %4778 = vrcp.f32 %v1479_v8  ;;  %v4092_v8 = vld [vmem:[%s5892_s13] ss:$0 sm:$0xff] }
 0x873   :  { %v1691_v10 = vpop.xlane.xlu1 %1690 }
 0x874   :  { %v1476_v9 = vpop.xlane.xlu0 %1475 }
 0x875   :  { %4780 = vrcp.f32 %v1476_v9  ;;  %v4775_v12 = vpop.eup %4774 }
 0x876   :  { %4782 = vrcp.f32 %v1691_v10  ;;  %v1283_v15 = vmul.f32 %v4775_v12, %v4763_v43 }
 0x877   :  { %v1788_v24 = vpop.permute.xlu1 %1787 }
 0x878   :  { %v1688_v11 = vpop.xlane.xlu0 %1687 }
 0x879   :  { %4784 = vrcp.f32 %v1688_v11 }
 0x87b   :  { %v1786_v25 = vpop.permute.xlu1 %1785 }
 0x87c   :  { %v1790_v4 = vpop.permute.xlu0 %1789 }
 0x87d   :  { %v4777_v2 = vpop.eup %4776 }
 0x87e   :  { %v1282_v14 = vmul.f32 %v4777_v2, %v4767_v53  ;;  %v4779_v13 = vpop.eup %4778 }
 0x87f   :  { %v1483_v18 = vmul.f32 %v4779_v13, %v4765_v49 }
 0x880   :  { %4504 = vmatprep.mubr.msk.f32.mxu1 %vm1176_vm11, %v1282_v14  ;;  %v1784_v23 = vpop.permute.xlu0 %1783 }
 0x881   :  { %4505 = vmatmul.mubr.msk.f32.vlgmr.msra.gmra.mxu1 %vm1176_vm11, %v1283_v15 }
 0x882   :  { %v4781_v16 = vpop.eup %4780  ;;  %4515 = vmatpush3.msra.mxu1 %v1487_v52 }
 0x883   :  { %4516 = vmatprep.subr.mxu1 %v1485_v0  ;;  %v1482_v17 = vmul.f32 %v4781_v16, %v4771_v59  ;;  %v4783_v19 = vpop.eup %4782  ;;  %v1995_v59 = vld [vmem:[%s5891_s12 + $0x10] sm:$0xff] }
 0x884   :  { %4517 = vmatpush3.msra.mxu1 %v1485_v0  ;;  %v1695_v22 = vmul.f32 %v4783_v19, %v4769_v58 }
 0x885   :  { %4518 = vmatprep.mubr.msk.f32.mxu1 %vm1176_vm11, %v1482_v17  ;;  %4528 = vmatprep.subr.mxu1 %v1699_v5 }
 0x886   :  { %v4785_v20 = vpop.eup %4784  ;;  %4519 = vmatmul.mubr.msk.f32.vlgmr.msra.gmra.mxu1 %vm1176_vm11, %v1483_v18 }
 0x887   :  { %4529 = vmatpush3.msra.mxu1 %v1699_v5  ;;  %v1694_v21 = vmul.f32 %v4785_v20, %v4773_v62  ;;  %v1993_v62 = vld [vmem:[%s5891_s12] sm:$0xff] }
 0x888   :  { %4530 = vmatprep.subr.mxu1 %v1697_v3 }
 0x889   :  { %4531 = vmatpush3.msra.mxu1 %v1697_v3  ;;  %4532 = vmatprep.mubr.msk.f32.mxu1 %vm1176_vm11, %v1694_v21 }
 0x88a   :  { %4535 = vmatprep.subr.msk.mxu1 %vm1176_vm11, %v1790_v4  ;;  %4533 = vmatmul.mubr.msk.f32.vlgmr.msra.gmra.mxu1 %vm1176_vm11, %v1695_v22 }
 0x88b   :  { %4536 = vmatpush3.xpose.msk.msra.mxu1 %vm1176_vm11, %v1790_v4  ;;  %4539 = vmatprep.mubr.msk.f32.mxu1 %vm1176_vm11, %v1784_v23 }
 0x88c   :  { %4537 = vmatprep.subr.msk.mxu1 %vm1176_vm11, %v1788_v24 }
 0x88f   :  { %4538 = vmatpush3.xpose.msk.msra.mxu1 %vm1176_vm11, %v1788_v24 }
 0x892   :  { %4540 = vmatmul.mubr.msk.f32.vlgmr.msra.gmra.mxu1 %vm1176_vm11, %v1786_v25 }
 0x941   :  { %v5434_v26 = vpop.f32.mrf.mxu1 }
 0x943   :  { %v1362_v27 = vpop.f32.mrf.mxu1 }
 0x946   :  { %v4520_v28 = vpop.f32.mrf.mxu1 }
 0x948   :  { %v1562_v29 = vpop.f32.mrf.mxu1 }
 0x94a   :  { %v5436_v30 = vpop.f32.mrf.mxu1 }
 0x94c   :  { %v5438_v31 = vpop.f32.mrf.mxu1 }
 0x952   :  { %v4541_v32 = vpop.f32.mrf.mxu1 }
 0x953   :  { %v1877_v33 = vsel %vm1176_vm11, %v4541_v32, -inf }
 0x954   :  { %1878 = vmax.xlane.f32.xlu1 %v1877_v33  ;;  %v1865_v34 = vpop.f32.mrf.mxu1  ;;  %v2182_v33 = vld [vmem:[%s5895_s16 + $0x18] sm:$0xff] }
 0x955   :  { %v1874_v35 = vsel %vm1176_vm11, %v1865_v34, -inf  ;;  %4563 = vmatprep.subr.mxu1 %v2182_v33 }
 0x956   :  { %1875 = vmax.xlane.f32.xlu0 %v1874_v35  ;;  %4564 = vmatpush3.msra.mxu1 %v2182_v33 }
 0x965   :  { %1896 = vrot.lane.b32.xlu1 %v5361_v6, %s4942_s2 }
 0x969   :  { %1573 = vrot.lane.b32.xlu1 %v1562_v29, %s4943_s29 }
 0x96d   :  { %1575 = vrot.lane.b32.xlu1 %v4520_v28, %s4943_s29 }
 0x9dd   :  { %v1879_v36 = vpop.xlane.xlu1 %1878 }
 0x9de   :  { %v1881_v37 = vsub.f32 %v4541_v32, %v1879_v36 }
 0x9df   :  { %v1876_v38 = vpop.xlane.xlu0 %1875 }
 0x9e0   :  { %v1884_v39 = vmul.f32 1.442695, %v1881_v37  ;;  %v1880_v40 = vsub.f32 %v1865_v34, %v1876_v38  ;;  %v2179_v34 = vld [vmem:[%s5895_s16] sm:$0xff] }
 0x9e1   :  { %v1897_v49 = vpop.permute.xlu1 %1896 }
 0x9e2   :  { %4786 = vpow2.f32 %v1884_v39  ;;  %v1882_v41 = vmul.f32 1.442695, %v1880_v40 }
 0x9e4   :  { %4788 = vpow2.f32 %v1882_v41 }
 0x9e5   :  { %v1574_v54 = vpop.permute.xlu1 %1573 }
 0x9e6   :  { %v1579_v56 = vsel %vm1176_vm11, %v1362_v27, %v1574_v54  ;;  %v4097_v54 = vld [vmem:[%s5893_s14] ss:$0 sm:$0xff] }
 0x9e9   :  { %v1576_v63 = vpop.permute.xlu1 %1575 }
 0x9ea   :  { %v1580_v0 = vsel %vm1176_vm11, %v5434_v26, %v1576_v63 }
 0x9ef   :  { %v4787_v42 = vpop.eup %4786 }
 0x9f0   :  { %v1889_v43 = vsel %vm1176_vm11, %v4787_v42, 0.0 }
 0x9f1   :  { %v4789_v44 = vpop.eup %4788  ;;  %1890 = vadd.xlane.f32.xlu0 %v1889_v43 }
 0x9f2   :  { %v1886_v6 = vsel %vm1176_vm11, %v4789_v44, 0.0 }
 0x9f5   :  { %1887 = vadd.xlane.f32.xlu0 %v1886_v6 }
 0xa0b   :  { %1898 = vrot.lane.b32.xlu0 %v5357_v1, %s4942_s2 }
 0xa7a   :  { %v1891_v45 = vpop.xlane.xlu0 %1890 }
 0xa7b   :  { %4790 = vrcp.f32 %v1891_v45 }
 0xa7e   :  { %v1888_v46 = vpop.xlane.xlu0 %1887 }
 0xa7f   :  { %4792 = vrcp.f32 %v1888_v46 }
 0xa82   :  { %v1899_v47 = vpop.permute.xlu0 %1898 }
 0xa83   :  { %4542 = vmatprep.subr.mxu0 %v1899_v47 }
 0xa84   :  { %4543 = vmatpush3.msra.mxu0 %v1899_v47 }
 0xa85   :  { %4544 = vmatprep.subr.mxu0 %v1897_v49 }
 0xa86   :  { %4545 = vmatpush3.msra.mxu0 %v1897_v49 }
 0xa87   :  { %4549 = vmatprep.subr.mxu0 %v1996_v50 }
 0xa88   :  { %v4791_v52 = vpop.eup %4790 }
 0xa89   :  { %v1895_v1 = vmul.f32 %v4791_v52, %v4787_v42 }
 0xa8c   :  { %v4793_v53 = vpop.eup %4792 }
 0xa8d   :  { %v1894_v58 = vmul.f32 %v4793_v53, %v4789_v44 }
 0xa8f   :  { %4546 = vmatprep.mubr.msk.f32.mxu0 %vm1176_vm11, %v1894_v58 }
 0xa90   :  { %4547 = vmatmul.mubr.msk.f32.vlgmr.msra.gmra.mxu0 %vm1176_vm11, %v1895_v1 }
 0xa91   :  { %4550 = vmatpush3.msra.mxu0 %v1996_v50  ;;  %4557 = vmatprep.mubr.msk.f32.mxu0 %vm228_vm1, %v1579_v56  ;;  %v4098_v56 = vld [vmem:[%s5894_s15] ss:$0 sm:$0xff] }
 0xa92   :  { %4551 = vmatprep.subr.mxu0 %v1995_v59 }
 0xa93   :  { %4552 = vmatpush3.msra.mxu0 %v1995_v59 }
 0xa94   :  { %4553 = vmatprep.subr.mxu0 %v1994_v60 }
 0xa95   :  { %4554 = vmatpush3.msra.mxu0 %v1994_v60 }
 0xa96   :  { %4555 = vmatprep.subr.mxu0 %v1993_v62 }
 0xa97   :  { %4556 = vmatpush3.msra.mxu0 %v1993_v62 }
 0xa98   :  { %4558 = vmatmul.mubr.msk.f32.vlgmr.msra.gmra.mxu0 %vm228_vm1, %v1580_v0  ;;  %v2330_v0 = vld [vmem:[%s5897_s18 + $0x38] sm:$0xff] }
 0xa99   :  { %4577 = vmatprep.subr.mxu0 %v2330_v0 }
 0xa9a   :  { %4578 = vmatpush3.msra.mxu0 %v2330_v0 }
 0xb50   :  { %v4548_v3 = vpop.f32.mrf.mxu0 }
 0xb51   :  { %1987 = vrot.lane.b32.xlu1 %v4548_v3, %s4943_s29  ;;  %v2329_v3 = vld [vmem:[%s5897_s18 + $0x30] sm:$0xff] }
 0xb52   :  { %v1974_v5 = vpop.f32.mrf.mxu0  ;;  %4579 = vmatprep.subr.mxu0 %v2329_v3 }
 0xb53   :  { %1985 = vrot.lane.b32.xlu0 %v1974_v5, %s4943_s29  ;;  %4580 = vmatpush3.msra.mxu0 %v2329_v3  ;;  %v2328_v5 = vld [vmem:[%s5897_s18 + $0x28] sm:$0xff] }
 0xb54   :  { %4581 = vmatprep.subr.mxu0 %v2328_v5 }
 0xb55   :  { %4582 = vmatpush3.msra.mxu0 %v2328_v5 }
 0xb58   :  { %v4559_v7 = vpop.f32.mrf.mxu0 }
 0xb59   :  { %v2088_v10 = vadd.f32 %v4559_v7, %v4092_v8  ;;  %v2327_v7 = vld [vmem:[%s5897_s18 + $0x20] sm:$0xff] }
 0xb5a   :  { %v2082_v61 = vpop.f32.mrf.mxu0  ;;  %4583 = vmatprep.subr.mxu0 %v2327_v7 }
 0xb5b   :  { %v2083_v9 = vadd.f32 %v4092_v8, %v2082_v61  ;;  %v2102_v12 = vadd.f32 %v2088_v10, %v5313_v48  ;;  %4584 = vmatpush3.msra.mxu0 %v2327_v7  ;;  %v2326_v61 = vld [vmem:[%s5897_s18 + $0x18] sm:$0xff]  ;;  %v2323_v10 = vld [vmem:[%s5897_s18] sm:$0xff] }
 0xb5c   :  { %4585 = vmatprep.subr.mxu0 %v2326_v61 }
 0xb5d   :  { %v2101_v11 = vadd.f32 %v2083_v9, %v5315_v51  ;;  %v2110_v14 = vsel %vm228_vm1, %v2102_v12, 0.0  ;;  %4586 = vmatpush3.msra.mxu0 %v2326_v61  ;;  %v2324_v9 = vld [vmem:[%s5897_s18 + $0x8] sm:$0xff] }
 0xb5f   :  { %v2107_v2 = vsel %vm228_vm1, %v2101_v11, 0.0 }
 0xb72   :  { %2108 = vadd.xlane.f32.xlu0 %v2107_v2 }
 0xb75   :  { %2111 = vadd.xlane.f32.xlu1 %v2110_v14 }
 0xbc3   :  { %v1988_v15 = vpop.permute.xlu1 %1987 }
 0xbc4   :  { %v1992_v17 = vsel %vm1176_vm11, %v5436_v30, %v1988_v15 }
 0xbc5   :  { %v1986_v13 = vpop.permute.xlu0 %1985 }
 0xbc6   :  { %v1991_v16 = vsel %vm1176_vm11, %v5438_v31, %v1986_v13 }
 0xbc7   :  { %4560 = vmatprep.mubr.msk.f32.mxu0 %vm228_vm1, %v1991_v16 }
 0xbc8   :  { %4561 = vmatmul.mubr.msk.f32.gmra.mxu0 %vm228_vm1, %v1992_v17 }
 0xbfb   :  { %v2109_v20 = vpop.xlane.xlu0 %2108 }
 0xbfc   :  { %v2119_v23 = vmul.f32 0.03125, %v2109_v20 }
 0xbfe   :  { %v2112_v51 = vpop.xlane.xlu1 %2111  ;;  %v2123_v27 = vsub.f32 %v2101_v11, %v2119_v23 }
 0xbff   :  { %v2120_v48 = vmul.f32 0.03125, %v2112_v51 }
 0xc00   :  { %v2127_v31 = vmul.f32 %v2123_v27, %v2123_v27 }
 0xc01   :  { %v2124_v4 = vsub.f32 %v2102_v12, %v2120_v48 }
 0xc02   :  { %v2131_v32 = vsel %vm228_vm1, %v2127_v31, 0.0 }
 0xc03   :  { %v2128_v18 = vmul.f32 %v2124_v4, %v2124_v4 }
 0xc05   :  { %v2134_v19 = vsel %vm228_vm1, %v2128_v18, 0.0 }
 0xc06   :  { %2135 = vadd.xlane.f32.xlu1 %v2134_v19 }
 0xc88   :  { %v4562_v21 = vpop.f32.mrf.mxu0 }
 0xc89   :  { %v2098_v24 = vadd.f32 %v4562_v21, %v4092_v8  ;;  %v4099_v21 = vld [vmem:[%s5896_s17] ss:$0 sm:$0xff] }
 0xc8a   :  { %v2092_v22 = vpop.f32.mrf.mxu0 }
 0xc8b   :  { %v2093_v25 = vadd.f32 %v4092_v8, %v2092_v22  ;;  %v2104_v29 = vadd.f32 %v2098_v24, %v5323_v55  ;;  %v2180_v55 = vld [vmem:[%s5895_s16 + $0x8] sm:$0xff]  ;;  %v2325_v8 = vld [vmem:[%s5897_s18 + $0x10] sm:$0xff] }
 0xc8c   :  { %4587 = vmatprep.subr.mxu0 %v2325_v8 }
 0xc8d   :  { %v2103_v26 = vadd.f32 %v2093_v25, %v5327_v57  ;;  %v2116_v30 = vsel %vm228_vm1, %v2104_v29, 0.0  ;;  %v2181_v57 = vld [vmem:[%s5895_s16 + $0x10] sm:$0xff]  ;;  %4588 = vmatpush3.msra.mxu0 %v2325_v8  ;;  %v4104_v8 = vld [vmem:[%s5898_s19] ss:$0 sm:$0xff] }
 0xc8e   :  { %4565 = vmatprep.subr.mxu1 %v2181_v57  ;;  %4589 = vmatprep.subr.mxu0 %v2324_v9 }
 0xc8f   :  { %v2113_v28 = vsel %vm228_vm1, %v2103_v26, 0.0  ;;  %4566 = vmatpush3.msra.mxu1 %v2181_v57  ;;  %v2136_v35 = vpop.xlane.xlu1 %2135  ;;  %4590 = vmatpush3.msra.mxu0 %v2324_v9 }
 0xc90   :  { %2114 = vadd.xlane.f32.xlu0 %v2113_v28  ;;  %4567 = vmatprep.subr.mxu1 %v2180_v55  ;;  %v2144_v36 = vmul.f32 0.03125, %v2136_v35 }
 0xc91   :  { %4568 = vmatpush3.msra.mxu1 %v2180_v55  ;;  %4591 = vmatprep.subr.mxu0 %v2323_v10 }
 0xc92   :  { %4569 = vmatprep.subr.mxu1 %v2179_v34  ;;  %v2148_v40 = vadd.f32 1e-05, %v2144_v36  ;;  %4592 = vmatpush3.msra.mxu0 %v2323_v10 }
 0xc93   :  { %4570 = vmatpush3.msra.mxu1 %v2179_v34 }
 0xc94   :  { %2117 = vadd.xlane.f32.xlu0 %v2116_v30  ;;  %4794 = vrsqrt.f32 %v2148_v40 }
 0xc98   :  { %2132 = vadd.xlane.f32.xlu0 %v2131_v32 }
 0xca1   :  { %v4795_v52 = vpop.eup %4794 }
 0xca2   :  { %v2156_v53 = vmul.f32 %v4795_v52, %v2124_v4 }
 0xca4   :  { %v2166_v59 = vmul.f32 %v4097_v54, %v2156_v53 }
 0xca6   :  { %v5512_v63 = vadd.f32 %v4098_v56, %v2166_v59 }
 0xd19   :  { %v2115_v37 = vpop.xlane.xlu0 %2114 }
 0xd1a   :  { %v2121_v38 = vmul.f32 0.03125, %v2115_v37 }
 0xd1c   :  { %v2125_v39 = vsub.f32 %v2103_v26, %v2121_v38 }
 0xd1d   :  { %v2118_v41 = vpop.xlane.xlu0 %2117 }
 0xd1e   :  { %v2122_v42 = vmul.f32 0.03125, %v2118_v41  ;;  %v2129_v43 = vmul.f32 %v2125_v39, %v2125_v39 }
 0xd20   :  { %v2126_v44 = vsub.f32 %v2104_v29, %v2122_v42  ;;  %v2137_v6 = vsel %vm228_vm1, %v2129_v43, 0.0 }
 0xd21   :  { %2138 = vadd.xlane.f32.xlu0 %v2137_v6  ;;  %v2133_v45 = vpop.xlane.xlu0 %2132 }
 0xd22   :  { %v2143_v46 = vmul.f32 0.03125, %v2133_v45  ;;  %v2130_v47 = vmul.f32 %v2126_v44, %v2126_v44 }
 0xd24   :  { %v2147_v49 = vadd.f32 1e-05, %v2143_v46  ;;  %v2140_v50 = vsel %vm228_vm1, %v2130_v47, 0.0 }
 0xd25   :  { %2141 = vadd.xlane.f32.xlu1 %v2140_v50 }
 0xd26   :  { %4796 = vrsqrt.f32 %v2147_v49 }
 0xd33   :  { %v4797_v58 = vpop.eup %4796 }
 0xd34   :  { %v2155_v1 = vmul.f32 %v4797_v58, %v2123_v27 }
 0xd36   :  { %v2165_v60 = vmul.f32 %v4097_v54, %v2155_v1 }
 0xd38   :  { %v5510_v62 = vadd.f32 %v4098_v56, %v2165_v60 }
 0xd3a   :  { %4571 = vmatprep.mubr.msk.f32.mxu1 %vm228_vm1, %v5510_v62 }
 0xd3b   :  { %4572 = vmatmul.mubr.msk.f32.vlgmr.msra.gmra.mxu1 %vm228_vm1, %v5512_v63 }
 0xdaa   :  { %v2139_v11 = vpop.xlane.xlu0 %2138 }
 0xdab   :  { %v2145_v12 = vmul.f32 0.03125, %v2139_v11 }
 0xdad   :  { %v2149_v2 = vadd.f32 1e-05, %v2145_v12 }
 0xdae   :  { %v2142_v14 = vpop.xlane.xlu1 %2141 }
 0xdaf   :  { %4798 = vrsqrt.f32 %v2149_v2  ;;  %v2146_v15 = vmul.f32 0.03125, %v2142_v14 }
 0xdb1   :  { %v2150_v13 = vadd.f32 1e-05, %v2146_v15 }
 0xdb3   :  { %4800 = vrsqrt.f32 %v2150_v13 }
 0xdbc   :  { %v4799_v16 = vpop.eup %4798 }
 0xdbd   :  { %v2157_v17 = vmul.f32 %v4799_v16, %v2125_v39 }
 0xdbf   :  { %v2167_v51 = vmul.f32 %v4097_v54, %v2157_v17 }
 0xdc0   :  { %v4801_v48 = vpop.eup %4800 }
 0xdc1   :  { %v5542_v4 = vadd.f32 %v4098_v56, %v2167_v51  ;;  %v2158_v18 = vmul.f32 %v4801_v48, %v2126_v44 }
 0xdc3   :  { %4574 = vmatprep.mubr.msk.f32.mxu1 %vm228_vm1, %v5542_v4  ;;  %v2168_v19 = vmul.f32 %v4097_v54, %v2158_v18 }
 0xdc5   :  { %v5546_v20 = vadd.f32 %v4098_v56, %v2168_v19 }
 0xdc7   :  { %4575 = vmatmul.mubr.msk.f32.gmra.mxu1 %vm228_vm1, %v5546_v20 }
 0xdfb   :  { %v4573_v22 = vpop.f32.mrf.mxu1 }
 0xdfc   :  { %v2274_v23 = vadd.f32 %v4573_v22, %v4099_v21 }
 0xdfd   :  { %v2268_v24 = vpop.f32.mrf.mxu1 }
 0xdfe   :  { %v2288_v25 = vmul.f32 %v2274_v23, %v2274_v23  ;;  %v2269_v26 = vadd.f32 %v4099_v21, %v2268_v24 }
 0xe00   :  { %v2292_v27 = vmul.f32 %v2288_v25, %v2274_v23  ;;  %v2287_v28 = vmul.f32 %v2269_v26, %v2269_v26 }
 0xe02   :  { %v2296_v29 = vmul.f32 0.044715, %v2292_v27  ;;  %v2291_v30 = vmul.f32 %v2287_v28, %v2269_v26 }
 0xe04   :  { %v2300_v31 = vadd.f32 %v2296_v29, %v2274_v23  ;;  %v2295_v32 = vmul.f32 0.044715, %v2291_v30  ;;  %v4114_v30 = vld [vmem:[%s5889_s10 + $0x38] sm:$0xff] }
 0xe05   :  { %4599 = vmatprep.subr.mxu1 %v4114_v30 }
 0xe06   :  { %v2304_v33 = vmul.f32 0.7978846, %v2300_v31  ;;  %v2299_v57 = vadd.f32 %v2295_v32, %v2269_v26  ;;  %4600 = vmatpush3.msra.mxu1 %v4114_v30  ;;  %v4112_v31 = vld [vmem:[%s5889_s10 + $0x28] sm:$0xff]  ;;  %v4111_v32 = vld [vmem:[%s5889_s10 + $0x20] sm:$0xff] }
 0xe08   :  { %4802 = vtanh.f32 %v2304_v33  ;;  %v2303_v55 = vmul.f32 0.7978846, %v2299_v57 }
 0xe0a   :  { %4804 = vtanh.f32 %v2303_v55 }
 0xe15   :  { %v4803_v34 = vpop.eup %4802 }
 0xe16   :  { %v2312_v35 = vadd.f32 1.0, %v4803_v34 }
 0xe17   :  { %v4805_v36 = vpop.eup %4804 }
 0xe18   :  { %v2311_v37 = vadd.f32 1.0, %v4805_v36  ;;  %v2316_v38 = vmul.f32 0.5, %v2312_v35 }
 0xe1a   :  { %v2315_v39 = vmul.f32 0.5, %v2311_v37  ;;  %v2320_v41 = vmul.f32 %v2316_v38, %v2274_v23 }
 0xe1c   :  { %v2319_v40 = vmul.f32 %v2315_v39, %v2269_v26 }
 0xe1e   :  { %4593 = vmatprep.mubr.msk.f32.mxu0 %vm2338_vm12, %v2319_v40 }
 0xe1f   :  { %4594 = vmatmul.mubr.msk.f32.vlgmr.msra.gmra.mxu0 %vm2338_vm12, %v2320_v41 }
 0xe87   :  { %v4576_v42 = vpop.f32.mrf.mxu1 }
 0xe88   :  { %v2284_v43 = vadd.f32 %v4576_v42, %v4099_v21 }
 0xe89   :  { %v2278_v44 = vpop.f32.mrf.mxu1 }
 0xe8a   :  { %v2290_v6 = vmul.f32 %v2284_v43, %v2284_v43  ;;  %v2279_v45 = vadd.f32 %v4099_v21, %v2278_v44 }
 0xe8c   :  { %v2294_v46 = vmul.f32 %v2290_v6, %v2284_v43  ;;  %v2289_v47 = vmul.f32 %v2279_v45, %v2279_v45 }
 0xe8e   :  { %v2298_v49 = vmul.f32 0.044715, %v2294_v46  ;;  %v2293_v50 = vmul.f32 %v2289_v47, %v2279_v45  ;;  %v4109_v47 = vld [vmem:[%s5899_s20] ss:$0 sm:$0xff] }
 0xe90   :  { %v2302_v52 = vadd.f32 %v2298_v49, %v2284_v43  ;;  %v2297_v53 = vmul.f32 0.044715, %v2293_v50 }
 0xe92   :  { %v2306_v54 = vmul.f32 0.7978846, %v2302_v52  ;;  %v2301_v58 = vadd.f32 %v2297_v53, %v2279_v45  ;;  %v4110_v52 = vld [vmem:[%s5900_s21] ss:$0 sm:$0xff] }
 0xe94   :  { %4806 = vtanh.f32 %v2306_v54  ;;  %v2305_v1 = vmul.f32 0.7978846, %v2301_v58 }
 0xe96   :  { %4808 = vtanh.f32 %v2305_v1 }
 0xea1   :  { %v4807_v59 = vpop.eup %4806 }
 0xea2   :  { %v2314_v56 = vadd.f32 1.0, %v4807_v59 }
 0xea3   :  { %v4809_v60 = vpop.eup %4808 }
 0xea4   :  { %v2313_v0 = vadd.f32 1.0, %v4809_v60  ;;  %v2318_v3 = vmul.f32 0.5, %v2314_v56 }
 0xea6   :  { %v2317_v5 = vmul.f32 0.5, %v2313_v0  ;;  %v2322_v61 = vmul.f32 %v2318_v3, %v2284_v43 }
 0xea8   :  { %v2321_v7 = vmul.f32 %v2317_v5, %v2279_v45 }
 0xeaa   :  { %4596 = vmatprep.mubr.msk.f32.mxu0 %vm2338_vm12, %v2321_v7 }
 0xeab   :  { %4597 = vmatmul.mubr.msk.f32.gmra.mxu0 %vm2338_vm12, %v2322_v61 }
 0xedf   :  { %v4595_v9 = vpop.f32.mrf.mxu0 }
 0xee0   :  { %v2423_v10 = vadd.f32 %v4595_v9, %v4104_v8 }
 0xee1   :  { %v2417_v11 = vpop.f32.mrf.mxu0 }
 0xee2   :  { %v2418_v12 = vadd.f32 %v4104_v8, %v2417_v11  ;;  %v2437_v2 = vadd.f32 %v2423_v10, %v5512_v63 }
 0xee4   :  { %v2445_v14 = vsel %vm228_vm1, %v2437_v2, 0.0  ;;  %v2436_v15 = vadd.f32 %v2418_v12, %v5510_v62 }
 0xee5   :  { %2446 = vadd.xlane.f32.xlu1 %v2445_v14 }
 0xee6   :  { %v2442_v13 = vsel %vm228_vm1, %v2436_v15, 0.0 }
 0xee7   :  { %2443 = vadd.xlane.f32.xlu0 %v2442_v13 }
 0xf6b   :  { %v4598_v16 = vpop.f32.mrf.mxu0 }
 0xf6c   :  { %v2433_v17 = vadd.f32 %v4598_v16, %v4104_v8 }
 0xf6d   :  { %v2427_v51 = vpop.f32.mrf.mxu0 }
 0xf6e   :  { %v2428_v48 = vadd.f32 %v4104_v8, %v2427_v51  ;;  %v2447_v18 = vpop.xlane.xlu1 %2446  ;;  %v2439_v19 = vadd.f32 %v2433_v17, %v5546_v20 }
 0xf6f   :  { %v2455_v21 = vmul.f32 0.03125, %v2447_v18 }
 0xf70   :  { %v2444_v22 = vpop.xlane.xlu0 %2443  ;;  %v2451_v23 = vsel %vm228_vm1, %v2439_v19, 0.0  ;;  %v2438_v63 = vadd.f32 %v2428_v48, %v5542_v4  ;;  %v4113_v4 = vld [vmem:[%s5889_s10 + $0x30] sm:$0xff] }
 0xf71   :  { %v2459_v24 = vsub.f32 %v2437_v2, %v2455_v21  ;;  %v2454_v25 = vmul.f32 0.03125, %v2444_v22  ;;  %2452 = vadd.xlane.f32.xlu1 %v2451_v23  ;;  %4601 = vmatprep.subr.mxu1 %v4113_v4 }
 0xf72   :  { %v2448_v62 = vsel %vm228_vm1, %v2438_v63, 0.0  ;;  %4602 = vmatpush3.msra.mxu1 %v4113_v4 }
 0xf73   :  { %v2458_v26 = vsub.f32 %v2436_v15, %v2454_v25  ;;  %2449 = vadd.xlane.f32.xlu0 %v2448_v62  ;;  %v2463_v27 = vmul.f32 %v2459_v24, %v2459_v24  ;;  %4603 = vmatprep.subr.mxu1 %v4112_v31  ;;  %v4116_v15 = vld [vmem:[%s5890_s11 + $0x1] ss:$0 sm:$0xff]  ;;  %s4003_s11 = sshll.u32 %s4944_s3, 4  ;;  %s4004_s11 = int_to_ptr.vmem [resolvable:$true] %s4003_s11 }
 0xf74   :  { %4604 = vmatpush3.msra.mxu1 %v4112_v31  ;;  %p4879_p1 = scmp.lt.s32.totalorder %s4004_s11, %s4004_s11 }
 0xf75   :  { %v2469_v28 = vsel %vm228_vm1, %v2463_v27, 0.0  ;;  %v2462_v29 = vmul.f32 %v2458_v26, %v2458_v26  ;;  %4605 = vmatprep.subr.mxu1 %v4111_v32 }
 0xf76   :  { %2470 = vadd.xlane.f32.xlu1 %v2469_v28  ;;  %4606 = vmatpush3.msra.mxu1 %v4111_v32 }
 0xf77   :  { %v2466_v20 = vsel %vm228_vm1, %v2462_v29, 0.0 }
 0xf78   :  { %2467 = vadd.xlane.f32.xlu0 %v2466_v20 }
 0xffa   :  { %v2453_v33 = vpop.xlane.xlu1 %2452 }
 0xffb   :  { %v2457_v57 = vmul.f32 0.03125, %v2453_v33 }
 0xffc   :  { %v2450_v55 = vpop.xlane.xlu0 %2449 }
 0xffd   :  { %v2461_v34 = vsub.f32 %v2439_v19, %v2457_v57  ;;  %v2456_v35 = vmul.f32 0.03125, %v2450_v55 }
 0xfff   :  { %v2460_v36 = vsub.f32 %v2438_v63, %v2456_v35  ;;  %v2471_v37 = vpop.xlane.xlu1 %2470  ;;  %v2465_v38 = vmul.f32 %v2461_v34, %v2461_v34 }
0x1000   :  { %v2479_v39 = vmul.f32 0.03125, %v2471_v37 }
0x1001   :  { %v2468_v40 = vpop.xlane.xlu0 %2467  ;;  %v2475_v41 = vsel %vm228_vm1, %v2465_v38, 0.0  ;;  %v2464_v42 = vmul.f32 %v2460_v36, %v2460_v36 }
0x1002   :  { %v2483_v43 = vadd.f32 1e-05, %v2479_v39  ;;  %v2478_v44 = vmul.f32 0.03125, %v2468_v40  ;;  %2476 = vadd.xlane.f32.xlu1 %v2475_v41 }
0x1003   :  { %v2472_v6 = vsel %vm228_vm1, %v2464_v42, 0.0 }
0x1004   :  { %4810 = vrsqrt.f32 %v2483_v43  ;;  %v2482_v45 = vadd.f32 1e-05, %v2478_v44  ;;  %2473 = vadd.xlane.f32.xlu0 %v2472_v6 }
0x1006   :  { %4812 = vrsqrt.f32 %v2482_v45 }
0x1011   :  { %v4811_v46 = vpop.eup %4810 }
0x1012   :  { %v2491_v49 = vmul.f32 %v4811_v46, %v2459_v24 }
0x1013   :  { %v4813_v50 = vpop.eup %4812 }
0x1014   :  { %v2490_v53 = vmul.f32 %v4813_v50, %v2458_v26  ;;  %v2501_v54 = vmul.f32 %v4109_v47, %v2491_v49 }
0x1016   :  { %v2500_v58 = vmul.f32 %v4109_v47, %v2490_v53  ;;  %v5590_v1 = vadd.f32 %v4110_v52, %v2501_v54 }
0x1018   :  { %v5592_v59 = vadd.f32 %v4110_v52, %v2500_v58  ;;  %2515 = vst.msk [vmem:[#allocation4 + $0x8] sm:$0xff] %vm228_vm1, %v5590_v1 }
0x101a   :  { %2514 = vst.msk [vmem:[#allocation4] sm:$0xff] %vm228_vm1, %v5592_v59  ;;  %4607 = vmatprep.mubr.msk.f32.mxu1 %vm228_vm1, %v5592_v59 }
0x101b   :  { %4608 = vmatmul.mubr.msk.f32.vlgmr.msra.gmra.mxu1 %vm228_vm1, %v5590_v1 }
0x108b   :  { %v2477_v56 = vpop.xlane.xlu1 %2476 }
0x108c   :  { %v2481_v60 = vmul.f32 0.03125, %v2477_v56 }
0x108d   :  { %v2474_v0 = vpop.xlane.xlu0 %2473 }
0x108e   :  { %v2485_v3 = vadd.f32 1e-05, %v2481_v60  ;;  %v2480_v5 = vmul.f32 0.03125, %v2474_v0 }
0x1090   :  { %4814 = vrsqrt.f32 %v2485_v3  ;;  %v2484_v7 = vadd.f32 1e-05, %v2480_v5 }
0x1092   :  { %4816 = vrsqrt.f32 %v2484_v7 }
0x109d   :  { %v4815_v61 = vpop.eup %4814 }
0x109e   :  { %v2493_v8 = vmul.f32 %v4815_v61, %v2461_v34 }
0x109f   :  { %v4817_v9 = vpop.eup %4816 }
0x10a0   :  { %v2492_v10 = vmul.f32 %v4817_v9, %v2460_v36  ;;  %v2503_v11 = vmul.f32 %v4109_v47, %v2493_v8 }
0x10a2   :  { %v2502_v12 = vmul.f32 %v4109_v47, %v2492_v10  ;;  %v5602_v2 = vadd.f32 %v4110_v52, %v2503_v11 }
0x10a4   :  { %v5604_v14 = vadd.f32 %v4110_v52, %v2502_v12  ;;  %2517 = vst.msk [vmem:[#allocation4 + $0x18] sm:$0xff] %vm228_vm1, %v5602_v2 }
0x10a6   :  { %2516 = vst.msk [vmem:[#allocation4 + $0x10] sm:$0xff] %vm228_vm1, %v5604_v14  ;;  %4610 = vmatprep.mubr.msk.f32.mxu1 %vm228_vm1, %v5604_v14 }
0x10a7   :  { %4611 = vmatmul.mubr.msk.f32.gmra.mxu1 %vm228_vm1, %v5602_v2 }
0x10db   :  { %v4609_v13 = vpop.f32.mrf.mxu1 }
0x10dc   :  { %v5617_v16 = vadd.f32 %v4609_v13, %v4116_v15 }
0x10dd   :  { %v2609_v17 = vpop.f32.mrf.mxu1 }
0x10de   :  { %v5619_v51 = vadd.f32 %v4116_v15, %v2609_v17  ;;  %2836 = vrot.lane.b32.xlu1 %v5617_v16, %s4938_s5  ;;  %2634 = vrot.lane.b32.xlu0 %v5617_v16, %s4939_s26  ;;  %v2629_v18 = vmul.f32 0.25, %v5617_v16 }
0x10e0   :  { %v2628_v48 = vmul.f32 0.25, %v5619_v51 }
0x10e2   :  { %2632 = vrot.lane.b32.xlu1 %v5619_v51, %s4939_s26  ;;  %2830 = vrot.lane.b32.xlu0 %v2628_v48, %s4940_s28 }
0x10e3   :  { %4617 = vmatprep.mubr.msk.f32.mxu1 %vm1176_vm11, %v2628_v48 }
0x10e6   :  { %2834 = vrot.lane.b32.xlu1 %v5619_v51, %s4938_s5  ;;  %2832 = vrot.lane.b32.xlu0 %v2629_v18, %s4940_s28 }
0x1150   :  { %v2837_v19 = vpop.permute.xlu1 %2836  ;;  %v2635_v21 = vpop.permute.xlu0 %2634 }
0x1151   :  { %4613 = vmatprep.subr.msk.mxu1 %vm1176_vm11, %v2635_v21  ;;  %4627 = vmatprep.subr.msk.mxu0 %vm1176_vm11, %v2837_v19 }
0x1152   :  { %4614 = vmatpush3.xpose.msk.msra.mxu1 %vm1176_vm11, %v2635_v21  ;;  %4628 = vmatpush3.xpose.msk.msra.mxu0 %vm1176_vm11, %v2837_v19 }
0x1154   :  { %v2633_v22 = vpop.permute.xlu1 %2632  ;;  %v2831_v23 = vpop.permute.xlu0 %2830 }
0x1155   :  { %4615 = vmatprep.subr.msk.mxu1 %vm1176_vm11, %v2633_v22  ;;  %4631 = vmatprep.mubr.msk.f32.mxu0 %vm1176_vm11, %v2831_v23 }
0x1156   :  { %4616 = vmatpush3.xpose.msk.msra.mxu1 %vm1176_vm11, %v2633_v22 }
0x1158   :  { %v2835_v63 = vpop.permute.xlu1 %2834  ;;  %v2833_v24 = vpop.permute.xlu0 %2832 }
0x1159   :  { %4618 = vmatmul.mubr.msk.f32.vlgmr.msra.gmra.mxu1 %vm1176_vm11, %v2629_v18  ;;  %4629 = vmatprep.subr.msk.mxu0 %vm1176_vm11, %v2835_v63 }
0x115a   :  { %4630 = vmatpush3.xpose.msk.msra.mxu0 %vm1176_vm11, %v2835_v63 }
0x115d   :  { %4632 = vmatmul.mubr.msk.f32.vlgmr.msra.gmra.mxu0 %vm1176_vm11, %v2833_v24 }
0x1167   :  { %v4612_v25 = vpop.f32.mrf.mxu1 }
0x1168   :  { %v5645_v62 = vadd.f32 %v4612_v25, %v4116_v15 }
0x1169   :  { %v2619_v26 = vpop.f32.mrf.mxu1 }
0x116a   :  { %v5647_v27 = vadd.f32 %v4116_v15, %v2619_v26  ;;  %3046 = vrot.lane.b32.xlu1 %v5645_v62, %s4939_s26  ;;  %v5663_v30 = vmul.f32 0.25, %v5645_v62 }
0x116c   :  { %v5652_v28 = vmul.f32 0.25, %v5647_v27 }
0x116e   :  { %3044 = vrot.lane.b32.xlu1 %v5647_v27, %s4939_s26  ;;  %4645 = vmatprep.mubr.msk.f32.mxu0 %vm1176_vm11, %v5652_v28 }
0x11dc   :  { %v3047_v29 = vpop.permute.xlu1 %3046 }
0x11dd   :  { %4641 = vmatprep.subr.msk.mxu0 %vm1176_vm11, %v3047_v29 }
0x11de   :  { %4642 = vmatpush3.xpose.msk.msra.mxu0 %vm1176_vm11, %v3047_v29 }
0x11e0   :  { %v3045_v20 = vpop.permute.xlu1 %3044 }
0x11e1   :  { %4643 = vmatprep.subr.msk.mxu0 %vm1176_vm11, %v3045_v20 }
0x11e2   :  { %4644 = vmatpush3.xpose.msk.msra.mxu0 %vm1176_vm11, %v3045_v20 }
0x11e5   :  { %4646 = vmatmul.mubr.msk.f32.vlgmr.msra.gmra.mxu0 %vm1176_vm11, %v5663_v30 }
0x1219   :  { %v4619_v4 = vpop.f32.mrf.mxu1 }
0x121a   :  { %v2724_v31 = vsel %vm1176_vm11, %v4619_v4, -inf }
0x121b   :  { %2725 = vmax.xlane.f32.xlu1 %v2724_v31  ;;  %v2712_v57 = vpop.f32.mrf.mxu1 }
0x121c   :  { %v2721_v55 = vsel %vm1176_vm11, %v2712_v57, -inf }
0x121d   :  { %v4633_v32 = vpop.f32.mrf.mxu0 }
0x121e   :  { %v2924_v33 = vsel %vm1176_vm11, %v4633_v32, -inf }
0x121f   :  { %2925 = vmax.xlane.f32.xlu0 %v2924_v33  ;;  %v2912_v34 = vpop.f32.mrf.mxu0 }
0x1220   :  { %v2921_v35 = vsel %vm1176_vm11, %v2912_v34, -inf }
0x1223   :  { %2722 = vmax.xlane.f32.xlu0 %v2721_v55 }
0x1227   :  { %2922 = vmax.xlane.f32.xlu0 %v2921_v35 }
0x12a4   :  { %v2726_v36 = vpop.xlane.xlu1 %2725 }
0x12a5   :  { %v2728_v37 = vsub.f32 %v4619_v4, %v2726_v36  ;;  %v4647_v38 = vpop.f32.mrf.mxu0 }
0x12a6   :  { %v3136_v39 = vsel %vm1176_vm11, %v4647_v38, -inf }
0x12a7   :  { %v2731_v40 = vmul.f32 1.442695, %v2728_v37  ;;  %3137 = vmax.xlane.f32.xlu1 %v3136_v39  ;;  %v3124_v41 = vpop.f32.mrf.mxu0 }
0x12a8   :  { %v2926_v42 = vpop.xlane.xlu0 %2925  ;;  %v3133_v43 = vsel %vm1176_vm11, %v3124_v41, -inf }
0x12a9   :  { %4818 = vpow2.f32 %v2731_v40  ;;  %v2928_v44 = vsub.f32 %v4633_v32, %v2926_v42  ;;  %3134 = vmax.xlane.f32.xlu0 %v3133_v43 }
0x12ab   :  { %v2931_v6 = vmul.f32 1.442695, %v2928_v44 }
0x12ac   :  { %v2723_v45 = vpop.xlane.xlu0 %2722 }
0x12ad   :  { %4820 = vpow2.f32 %v2931_v6  ;;  %v2727_v46 = vsub.f32 %v2712_v57, %v2723_v45 }
0x12af   :  { %v2729_v47 = vmul.f32 1.442695, %v2727_v46 }
0x12b0   :  { %v2923_v49 = vpop.xlane.xlu0 %2922 }
0x12b1   :  { %4822 = vpow2.f32 %v2729_v47  ;;  %v2927_v50 = vsub.f32 %v2912_v34, %v2923_v49 }
0x12b3   :  { %v2929_v52 = vmul.f32 1.442695, %v2927_v50 }
0x12b5   :  { %4824 = vpow2.f32 %v2929_v52 }
0x12b6   :  { %v4819_v53 = vpop.eup %4818 }
0x12b7   :  { %v2736_v54 = vsel %vm1176_vm11, %v4819_v53, 0.0 }
0x12b8   :  { %2737 = vadd.xlane.f32.xlu1 %v2736_v54 }
0x12ba   :  { %v4821_v58 = vpop.eup %4820 }
0x12bb   :  { %v2936_v56 = vsel %vm1176_vm11, %v4821_v58, 0.0 }
0x12bc   :  { %2937 = vadd.xlane.f32.xlu1 %v2936_v56 }
0x12be   :  { %v4823_v60 = vpop.eup %4822 }
0x12bf   :  { %v2733_v0 = vsel %vm1176_vm11, %v4823_v60, 0.0 }
0x12c0   :  { %2734 = vadd.xlane.f32.xlu0 %v2733_v0 }
0x12c2   :  { %v4825_v3 = vpop.eup %4824 }
0x12c3   :  { %v2933_v5 = vsel %vm1176_vm11, %v4825_v3, 0.0 }
0x12c4   :  { %2934 = vadd.xlane.f32.xlu0 %v2933_v5 }
0x12cd   :  { %2743 = vrot.lane.b32.xlu1 %v5619_v51, %s4941_s6 }
0x12d1   :  { %2945 = vrot.lane.b32.xlu1 %v5617_v16, %s4942_s2 }
0x12d5   :  { %2943 = vrot.lane.b32.xlu1 %v5619_v51, %s4942_s2 }
0x12d9   :  { %3155 = vrot.lane.b32.xlu1 %v5647_v27, %s4941_s6 }
0x12da   :  { %2745 = vrot.lane.b32.xlu0 %v5617_v16, %s4941_s6 }
0x12de   :  { %3157 = vrot.lane.b32.xlu0 %v5645_v62, %s4941_s6 }
0x1330   :  { %v3138_v7 = vpop.xlane.xlu1 %3137 }
0x1331   :  { %v3140_v61 = vsub.f32 %v4647_v38, %v3138_v7 }
0x1332   :  { %v3135_v8 = vpop.xlane.xlu0 %3134 }
0x1333   :  { %v3143_v9 = vmul.f32 1.442695, %v3140_v61  ;;  %v3139_v10 = vsub.f32 %v3124_v41, %v3135_v8 }
0x1335   :  { %4826 = vpow2.f32 %v3143_v9  ;;  %v3141_v11 = vmul.f32 1.442695, %v3139_v10  ;;  %v4148_v9 = vld [vmem:[%s5891_s12 + $0x38] sm:$0xff] }
0x1337   :  { %4828 = vpow2.f32 %v3141_v11 }
0x1341   :  { %v2738_v15 = vpop.xlane.xlu1 %2737 }
0x1342   :  { %v4827_v12 = vpop.eup %4826  ;;  %4830 = vrcp.f32 %v2738_v15 }
0x1343   :  { %v3148_v13 = vsel %vm1176_vm11, %v4827_v12, 0.0 }
0x1344   :  { %v4829_v17 = vpop.eup %4828  ;;  %3149 = vadd.xlane.f32.xlu1 %v3148_v13  ;;  %v4147_v13 = vld [vmem:[%s5891_s12 + $0x30] sm:$0xff] }
0x1345   :  { %v3145_v51 = vsel %vm1176_vm11, %v4829_v17, 0.0  ;;  %v2938_v16 = vpop.xlane.xlu1 %2937 }
0x1346   :  { %3146 = vadd.xlane.f32.xlu0 %v3145_v51  ;;  %v4146_v51 = vld [vmem:[%s5891_s12 + $0x28] sm:$0xff] }
0x1349   :  { %v2735_v48 = vpop.xlane.xlu0 %2734  ;;  %v2744_v19 = vpop.permute.xlu1 %2743 }
0x134a   :  { %4832 = vrcp.f32 %v2735_v48 }
0x134b   :  { %4834 = vrcp.f32 %v2938_v16  ;;  %v4145_v16 = vld [vmem:[%s5891_s12 + $0x20] sm:$0xff] }
0x134d   :  { %v2935_v18 = vpop.xlane.xlu0 %2934  ;;  %v2946_v22 = vpop.permute.xlu1 %2945 }
0x134e   :  { %4836 = vrcp.f32 %v2935_v18 }
0x134f   :  { %v4831_v23 = vpop.eup %4830 }
0x1350   :  { %v2742_v25 = vmul.f32 %v4831_v23, %v4819_v53 }
0x1351   :  { %v2746_v21 = vpop.permute.xlu0 %2745  ;;  %v2944_v29 = vpop.permute.xlu1 %2943 }
0x1352   :  { %4620 = vmatprep.subr.mxu1 %v2746_v21 }
0x1353   :  { %4621 = vmatpush3.msra.mxu1 %v2746_v21 }
0x1354   :  { %4622 = vmatprep.subr.mxu1 %v2744_v19 }
0x1355   :  { %3246 = vrot.lane.b32.xlu1 %v5647_v27, %s4938_s5  ;;  %4623 = vmatpush3.msra.mxu1 %v2744_v19  ;;  %v3158_v32 = vpop.permute.xlu0 %3157 }
0x1356   :  { %4634 = vmatprep.subr.mxu1 %v2946_v22 }
0x1357   :  { %v4833_v63 = vpop.eup %4832 }
0x1358   :  { %v2741_v24 = vmul.f32 %v4833_v63, %v4823_v60  ;;  %v4835_v26 = vpop.eup %4834  ;;  %v4150_v63 = vld [vmem:[%s5892_s13 + $0x1] ss:$0 sm:$0xff] }
0x1359   :  { %3244 = vrot.lane.b32.xlu1 %v5663_v30, %s4940_s28  ;;  %v2942_v31 = vmul.f32 %v4835_v26, %v4821_v58  ;;  %v3156_v30 = vpop.permute.xlu1 %3155 }
0x135a   :  { %4624 = vmatprep.mubr.msk.f32.mxu1 %vm1176_vm11, %v2741_v24 }
0x135b   :  { %v4837_v20 = vpop.eup %4836  ;;  %4625 = vmatmul.mubr.msk.f32.vlgmr.msra.gmra.mxu1 %vm1176_vm11, %v2742_v25 }
0x135c   :  { %4635 = vmatpush3.msra.mxu1 %v2946_v22  ;;  %3248 = vrot.lane.b32.xlu0 %v5645_v62, %s4938_s5  ;;  %v2941_v4 = vmul.f32 %v4837_v20, %v4825_v3  ;;  %s4945_s5 = smov [#allocation2]  }
0x135d   :  { %4636 = vmatprep.subr.mxu1 %v2944_v29 }
0x135e   :  { %4637 = vmatpush3.msra.mxu1 %v2944_v29  ;;  %4638 = vmatprep.mubr.msk.f32.mxu1 %vm1176_vm11, %v2941_v4 }
0x135f   :  { %4648 = vmatprep.subr.mxu1 %v3158_v32  ;;  %4639 = vmatmul.mubr.msk.f32.vlgmr.msra.gmra.mxu1 %vm1176_vm11, %v2942_v31 }
0x1360   :  { %4649 = vmatpush3.msra.mxu1 %v3158_v32  ;;  %3242 = vrot.lane.b32.xlu0 %v5652_v28, %s4940_s28 }
0x1361   :  { %4650 = vmatprep.subr.mxu1 %v3156_v30 }
0x1362   :  { %4651 = vmatpush3.msra.mxu1 %v3156_v30 }
0x13cd   :  { %v3150_v33 = vpop.xlane.xlu1 %3149 }
0x13ce   :  { %4838 = vrcp.f32 %v3150_v33 }
0x13cf   :  { %v3147_v57 = vpop.xlane.xlu0 %3146 }
0x13d0   :  { %4840 = vrcp.f32 %v3147_v57 }
0x13d1   :  { %v3247_v39 = vpop.permute.xlu1 %3246 }
0x13d3   :  { %v3249_v55 = vpop.permute.xlu0 %3248 }
0x13d4   :  { %4655 = vmatprep.subr.msk.mxu1 %vm1176_vm11, %v3249_v55 }
0x13d5   :  { %v3245_v28 = vpop.permute.xlu1 %3244 }
0x13d7   :  { %v3243_v38 = vpop.permute.xlu0 %3242 }
0x13db   :  { %v4839_v34 = vpop.eup %4838 }
0x13dc   :  { %v3154_v37 = vmul.f32 %v4839_v34, %v4827_v12 }
0x13dd   :  { %v4841_v35 = vpop.eup %4840 }
0x13de   :  { %v3153_v36 = vmul.f32 %v4841_v35, %v4829_v17 }
0x13e0   :  { %4652 = vmatprep.mubr.msk.f32.mxu1 %vm1176_vm11, %v3153_v36 }
0x13e1   :  { %4653 = vmatmul.mubr.msk.f32.vlgmr.msra.gmra.mxu1 %vm1176_vm11, %v3154_v37 }
0x13e2   :  { %4656 = vmatpush3.xpose.msk.msra.mxu1 %vm1176_vm11, %v3249_v55  ;;  %4659 = vmatprep.mubr.msk.f32.mxu1 %vm1176_vm11, %v3243_v38 }
0x13e3   :  { %4657 = vmatprep.subr.msk.mxu1 %vm1176_vm11, %v3247_v39 }
0x13e6   :  { %4658 = vmatpush3.xpose.msk.msra.mxu1 %vm1176_vm11, %v3247_v39 }
0x13e9   :  { %4660 = vmatmul.mubr.msk.f32.vlgmr.msra.gmra.mxu1 %vm1176_vm11, %v3245_v28 }
0x141b   :  { %v4626_v40 = vpop.f32.mrf.mxu1 }
0x141d   :  { %v2821_v41 = vpop.f32.mrf.mxu1 }
0x141f   :  { %v4640_v42 = vpop.f32.mrf.mxu1 }
0x1421   :  { %v3021_v43 = vpop.f32.mrf.mxu1 }
0x14a1   :  { %v5711_v44 = vpop.f32.mrf.mxu1 }
0x14a3   :  { %v5713_v6 = vpop.f32.mrf.mxu1 }
0x14a9   :  { %v4661_v45 = vpop.f32.mrf.mxu1 }
0x14aa   :  { %v3336_v46 = vsel %vm1176_vm11, %v4661_v45, -inf }
0x14ab   :  { %3337 = vmax.xlane.f32.xlu1 %v3336_v46  ;;  %v3324_v47 = vpop.f32.mrf.mxu1  ;;  %v4162_v46 = vld [vmem:[%s5895_s16 + $0x38] sm:$0xff] }
0x14ac   :  { %v3333_v49 = vsel %vm1176_vm11, %v3324_v47, -inf  ;;  %4683 = vmatprep.subr.mxu1 %v4162_v46 }
0x14ad   :  { %3334 = vmax.xlane.f32.xlu0 %v3333_v49  ;;  %4684 = vmatpush3.msra.mxu1 %v4162_v46 }
0x14bc   :  { %3355 = vrot.lane.b32.xlu1 %v5647_v27, %s4942_s2 }
0x14c0   :  { %3032 = vrot.lane.b32.xlu1 %v3021_v43, %s4943_s29 }
0x14c4   :  { %3034 = vrot.lane.b32.xlu1 %v4640_v42, %s4943_s29 }
0x1534   :  { %v3338_v50 = vpop.xlane.xlu1 %3337 }
0x1535   :  { %v3340_v52 = vsub.f32 %v4661_v45, %v3338_v50 }
0x1536   :  { %v3335_v53 = vpop.xlane.xlu0 %3334 }
0x1537   :  { %v3343_v54 = vmul.f32 1.442695, %v3340_v52  ;;  %v3339_v58 = vsub.f32 %v3324_v47, %v3335_v53  ;;  %v4159_v47 = vld [vmem:[%s5895_s16 + $0x20] sm:$0xff] }
0x1538   :  { %v3356_v8 = vpop.permute.xlu1 %3355 }
0x1539   :  { %4842 = vpow2.f32 %v3343_v54  ;;  %v3341_v56 = vmul.f32 1.442695, %v3339_v58 }
0x153b   :  { %4844 = vpow2.f32 %v3341_v56 }
0x153c   :  { %v3033_v12 = vpop.permute.xlu1 %3032 }
0x153d   :  { %v3038_v17 = vsel %vm1176_vm11, %v2821_v41, %v3033_v12  ;;  %v4157_v12 = vld [vmem:[%s5893_s14 + $0x1] ss:$0 sm:$0xff]  ;;  %s3991_s14 = sshll.u32 %s4945_s5, 4  ;;  %s3992_s14 = int_to_ptr.vmem [resolvable:$true] %s3991_s14 }
0x1540   :  { %v3035_v48 = vpop.permute.xlu1 %3034 }
0x1541   :  { %v3039_v18 = vsel %vm1176_vm11, %v4626_v40, %v3035_v48 }
0x1546   :  { %v4843_v60 = vpop.eup %4842 }
0x1547   :  { %v3348_v0 = vsel %vm1176_vm11, %v4843_v60, 0.0 }
0x1548   :  { %v4845_v3 = vpop.eup %4844  ;;  %3349 = vadd.xlane.f32.xlu0 %v3348_v0 }
0x1549   :  { %v3345_v5 = vsel %vm1176_vm11, %v4845_v3, 0.0 }
0x154c   :  { %3346 = vadd.xlane.f32.xlu0 %v3345_v5 }
0x1562   :  { %3357 = vrot.lane.b32.xlu0 %v5645_v62, %s4942_s2 }
0x15d1   :  { %v3350_v27 = vpop.xlane.xlu0 %3349 }
0x15d2   :  { %4846 = vrcp.f32 %v3350_v27 }
0x15d5   :  { %v3347_v7 = vpop.xlane.xlu0 %3346 }
0x15d6   :  { %4848 = vrcp.f32 %v3347_v7 }
0x15d9   :  { %v3358_v61 = vpop.permute.xlu0 %3357 }
0x15da   :  { %4662 = vmatprep.subr.mxu0 %v3358_v61 }
0x15db   :  { %4663 = vmatpush3.msra.mxu0 %v3358_v61 }
0x15dc   :  { %4664 = vmatprep.subr.mxu0 %v3356_v8 }
0x15dd   :  { %4665 = vmatpush3.msra.mxu0 %v3356_v8 }
0x15de   :  { %4669 = vmatprep.subr.mxu0 %v4148_v9 }
0x15df   :  { %v4847_v10 = vpop.eup %4846 }
0x15e0   :  { %v3354_v62 = vmul.f32 %v4847_v10, %v4843_v60 }
0x15e3   :  { %v4849_v11 = vpop.eup %4848 }
0x15e4   :  { %v3353_v15 = vmul.f32 %v4849_v11, %v4845_v3 }
0x15e6   :  { %4666 = vmatprep.mubr.msk.f32.mxu0 %vm1176_vm11, %v3353_v15 }
0x15e7   :  { %4667 = vmatmul.mubr.msk.f32.vlgmr.msra.gmra.mxu0 %vm1176_vm11, %v3354_v62 }
0x15e8   :  { %4670 = vmatpush3.msra.mxu0 %v4148_v9  ;;  %4677 = vmatprep.mubr.msk.f32.mxu0 %vm228_vm1, %v3038_v17  ;;  %v4158_v17 = vld [vmem:[%s5894_s15 + $0x1] ss:$0 sm:$0xff] }
0x15e9   :  { %4671 = vmatprep.subr.mxu0 %v4147_v13 }
0x15ea   :  { %4672 = vmatpush3.msra.mxu0 %v4147_v13 }
0x15eb   :  { %4673 = vmatprep.subr.mxu0 %v4146_v51 }
0x15ec   :  { %4674 = vmatpush3.msra.mxu0 %v4146_v51 }
0x15ed   :  { %4675 = vmatprep.subr.mxu0 %v4145_v16 }
0x15ee   :  { %4676 = vmatpush3.msra.mxu0 %v4145_v16 }
0x15ef   :  { %4678 = vmatmul.mubr.msk.f32.vlgmr.msra.gmra.mxu0 %vm228_vm1, %v3039_v18  ;;  %v4176_v18 = vld [vmem:[%s5897_s18 + $0x78] sm:$0xff] }
0x15f0   :  { %4697 = vmatprep.subr.mxu0 %v4176_v18 }
0x15f1   :  { %4698 = vmatpush3.msra.mxu0 %v4176_v18 }
0x16a7   :  { %v4668_v19 = vpop.f32.mrf.mxu0 }
0x16a8   :  { %3446 = vrot.lane.b32.xlu1 %v4668_v19, %s4943_s29  ;;  %v4175_v19 = vld [vmem:[%s5897_s18 + $0x70] sm:$0xff] }
0x16a9   :  { %v3433_v21 = vpop.f32.mrf.mxu0  ;;  %4699 = vmatprep.subr.mxu0 %v4175_v19 }
0x16aa   :  { %3444 = vrot.lane.b32.xlu0 %v3433_v21, %s4943_s29  ;;  %4700 = vmatpush3.msra.mxu0 %v4175_v19  ;;  %v4174_v21 = vld [vmem:[%s5897_s18 + $0x68] sm:$0xff] }
0x16ab   :  { %4701 = vmatprep.subr.mxu0 %v4174_v21 }
0x16ac   :  { %4702 = vmatpush3.msra.mxu0 %v4174_v21 }
0x16af   :  { %v4679_v22 = vpop.f32.mrf.mxu0 }
0x16b0   :  { %v3549_v25 = vadd.f32 %v4679_v22, %v4150_v63  ;;  %v4173_v22 = vld [vmem:[%s5897_s18 + $0x60] sm:$0xff] }
0x16b1   :  { %v3543_v23 = vpop.f32.mrf.mxu0  ;;  %4703 = vmatprep.subr.mxu0 %v4173_v22 }
0x16b2   :  { %v3544_v24 = vadd.f32 %v4150_v63, %v3543_v23  ;;  %v3563_v29 = vadd.f32 %v3549_v25, %v5590_v1  ;;  %4704 = vmatpush3.msra.mxu0 %v4173_v22  ;;  %v4172_v23 = vld [vmem:[%s5897_s18 + $0x58] sm:$0xff]  ;;  %v4169_v25 = vld [vmem:[%s5897_s18 + $0x40] sm:$0xff] }
0x16b3   :  { %4705 = vmatprep.subr.mxu0 %v4172_v23 }
0x16b4   :  { %v3562_v26 = vadd.f32 %v3544_v24, %v5592_v59  ;;  %v3573_v4 = vsel %vm228_vm1, %v3563_v29, 0.0  ;;  %4706 = vmatpush3.msra.mxu0 %v4172_v23  ;;  %v4170_v24 = vld [vmem:[%s5897_s18 + $0x48] sm:$0xff] }
0x16b6   :  { %v3570_v20 = vsel %vm228_vm1, %v3562_v26, 0.0 }
0x16c9   :  { %3571 = vadd.xlane.f32.xlu0 %v3570_v20 }
0x16cc   :  { %3574 = vadd.xlane.f32.xlu1 %v3573_v4 }
0x171a   :  { %v3447_v31 = vpop.permute.xlu1 %3446 }
0x171b   :  { %v3451_v33 = vsel %vm1176_vm11, %v5711_v44, %v3447_v31 }
0x171c   :  { %v3445_v32 = vpop.permute.xlu0 %3444 }
0x171d   :  { %v3450_v30 = vsel %vm1176_vm11, %v5713_v6, %v3445_v32 }
0x171e   :  { %4680 = vmatprep.mubr.msk.f32.mxu0 %vm228_vm1, %v3450_v30 }
0x171f   :  { %4681 = vmatmul.mubr.msk.f32.gmra.mxu0 %vm228_vm1, %v3451_v33 }
0x1752   :  { %v3572_v35 = vpop.xlane.xlu0 %3571 }
0x1753   :  { %v3582_v38 = vmul.f32 0.03125, %v3572_v35 }
0x1755   :  { %v3575_v59 = vpop.xlane.xlu1 %3574  ;;  %v3586_v41 = vsub.f32 %v3562_v26, %v3582_v38 }
0x1756   :  { %v3583_v1 = vmul.f32 0.03125, %v3575_v59 }
0x1757   :  { %v3590_v6 = vmul.f32 %v3586_v41, %v3586_v41 }
0x1758   :  { %v3587_v57 = vsub.f32 %v3563_v29, %v3583_v1 }
0x1759   :  { %v3594_v45 = vsel %vm228_vm1, %v3590_v6, 0.0 }
0x175a   :  { %v3591_v55 = vmul.f32 %v3587_v57, %v3587_v57 }
0x175c   :  { %v3597_v34 = vsel %vm228_vm1, %v3591_v55, 0.0 }
0x175d   :  { %3598 = vadd.xlane.f32.xlu1 %v3597_v34 }
0x17df   :  { %v4682_v36 = vpop.f32.mrf.mxu0 }
0x17e0   :  { %v3559_v39 = vadd.f32 %v4682_v36, %v4150_v63  ;;  %v4164_v36 = vld [vmem:[%s5896_s17 + $0x1] ss:$0 sm:$0xff] }
0x17e1   :  { %v3553_v37 = vpop.f32.mrf.mxu0 }
0x17e2   :  { %v3554_v28 = vadd.f32 %v4150_v63, %v3553_v37  ;;  %v3565_v42 = vadd.f32 %v3559_v39, %v5602_v2  ;;  %v4160_v2 = vld [vmem:[%s5895_s16 + $0x28] sm:$0xff]  ;;  %v4171_v63 = vld [vmem:[%s5897_s18 + $0x50] sm:$0xff] }
0x17e3   :  { %4707 = vmatprep.subr.mxu0 %v4171_v63 }
0x17e4   :  { %v3564_v40 = vadd.f32 %v3554_v28, %v5604_v14  ;;  %v3579_v44 = vsel %vm228_vm1, %v3565_v42, 0.0  ;;  %v4161_v14 = vld [vmem:[%s5895_s16 + $0x30] sm:$0xff]  ;;  %4708 = vmatpush3.msra.mxu0 %v4171_v63  ;;  %v4178_v63 = vld [vmem:[%s5898_s19 + $0x1] ss:$0 sm:$0xff] }
0x17e5   :  { %4685 = vmatprep.subr.mxu1 %v4161_v14  ;;  %4709 = vmatprep.subr.mxu0 %v4170_v24 }
0x17e6   :  { %v3576_v43 = vsel %vm228_vm1, %v3564_v40, 0.0  ;;  %4686 = vmatpush3.msra.mxu1 %v4161_v14  ;;  %v3599_v49 = vpop.xlane.xlu1 %3598  ;;  %4710 = vmatpush3.msra.mxu0 %v4170_v24 }
0x17e7   :  { %3577 = vadd.xlane.f32.xlu0 %v3576_v43  ;;  %4687 = vmatprep.subr.mxu1 %v4160_v2  ;;  %v3607_v50 = vmul.f32 0.03125, %v3599_v49 }
0x17e8   :  { %4688 = vmatpush3.msra.mxu1 %v4160_v2  ;;  %4711 = vmatprep.subr.mxu0 %v4169_v25 }
0x17e9   :  { %4689 = vmatprep.subr.mxu1 %v4159_v47  ;;  %v3611_v58 = vadd.f32 1e-05, %v3607_v50  ;;  %4712 = vmatpush3.msra.mxu0 %v4169_v25 }
0x17ea   :  { %4690 = vmatpush3.msra.mxu1 %v4159_v47 }
0x17eb   :  { %3580 = vadd.xlane.f32.xlu0 %v3579_v44  ;;  %4850 = vrsqrt.f32 %v3611_v58 }
0x17ef   :  { %3595 = vadd.xlane.f32.xlu0 %v3594_v45 }
0x17f8   :  { %v4851_v10 = vpop.eup %4850 }
0x17f9   :  { %v3619_v11 = vmul.f32 %v4851_v10, %v3587_v57 }
0x17fb   :  { %v3629_v13 = vmul.f32 %v4157_v12, %v3619_v11 }
0x17fd   :  { %v5786_v48 = vadd.f32 %v4158_v17, %v3629_v13 }
0x1870   :  { %v3578_v52 = vpop.xlane.xlu0 %3577 }
0x1871   :  { %v3584_v53 = vmul.f32 0.03125, %v3578_v52 }
0x1873   :  { %v3588_v54 = vsub.f32 %v3564_v40, %v3584_v53 }
0x1874   :  { %v3581_v56 = vpop.xlane.xlu0 %3580 }
0x1875   :  { %v3585_v60 = vmul.f32 0.03125, %v3581_v56  ;;  %v3592_v0 = vmul.f32 %v3588_v54, %v3588_v54 }
0x1877   :  { %v3589_v3 = vsub.f32 %v3565_v42, %v3585_v60  ;;  %v3600_v5 = vsel %vm228_vm1, %v3592_v0, 0.0 }
0x1878   :  { %3601 = vadd.xlane.f32.xlu0 %v3600_v5  ;;  %v3596_v27 = vpop.xlane.xlu0 %3595 }
0x1879   :  { %v3606_v7 = vmul.f32 0.03125, %v3596_v27  ;;  %v3593_v61 = vmul.f32 %v3589_v3, %v3589_v3 }
0x187b   :  { %v3610_v8 = vadd.f32 1e-05, %v3606_v7  ;;  %v3603_v9 = vsel %vm228_vm1, %v3593_v61, 0.0 }
0x187c   :  { %3604 = vadd.xlane.f32.xlu1 %v3603_v9 }
0x187d   :  { %4852 = vrsqrt.f32 %v3610_v8 }
0x188a   :  { %v4853_v15 = vpop.eup %4852 }
0x188b   :  { %v3618_v62 = vmul.f32 %v4853_v15, %v3586_v41 }
0x188d   :  { %v3628_v51 = vmul.f32 %v4157_v12, %v3618_v62 }
0x188f   :  { %v5784_v16 = vadd.f32 %v4158_v17, %v3628_v51 }
0x1891   :  { %4691 = vmatprep.mubr.msk.f32.mxu1 %vm228_vm1, %v5784_v16 }
0x1892   :  { %4692 = vmatmul.mubr.msk.f32.vlgmr.msra.gmra.mxu1 %vm228_vm1, %v5786_v48 }
0x1901   :  { %v3602_v26 = vpop.xlane.xlu0 %3601 }
0x1902   :  { %v3608_v29 = vmul.f32 0.03125, %v3602_v26 }
0x1904   :  { %v3612_v20 = vadd.f32 1e-05, %v3608_v29 }
0x1905   :  { %v3605_v4 = vpop.xlane.xlu1 %3604 }
0x1906   :  { %4854 = vrsqrt.f32 %v3612_v20  ;;  %v3609_v31 = vmul.f32 0.03125, %v3605_v4 }
0x1908   :  { %v3613_v32 = vadd.f32 1e-05, %v3609_v31 }
0x190a   :  { %4856 = vrsqrt.f32 %v3613_v32 }
0x1913   :  { %v4855_v30 = vpop.eup %4854 }
0x1914   :  { %v3620_v33 = vmul.f32 %v4855_v30, %v3588_v54 }
0x1916   :  { %v3630_v59 = vmul.f32 %v4157_v12, %v3620_v33 }
0x1917   :  { %v4857_v1 = vpop.eup %4856 }
0x1918   :  { %v5816_v57 = vadd.f32 %v4158_v17, %v3630_v59  ;;  %v3621_v55 = vmul.f32 %v4857_v1, %v3589_v3 }
0x191a   :  { %4694 = vmatprep.mubr.msk.f32.mxu1 %vm228_vm1, %v5816_v57  ;;  %v3631_v34 = vmul.f32 %v4157_v12, %v3621_v55 }
0x191c   :  { %v5820_v35 = vadd.f32 %v4158_v17, %v3631_v34 }
0x191e   :  { %4695 = vmatmul.mubr.msk.f32.gmra.mxu1 %vm228_vm1, %v5820_v35 }
0x1952   :  { %v4693_v37 = vpop.f32.mrf.mxu1 }
0x1953   :  { %v3739_v38 = vadd.f32 %v4693_v37, %v4164_v36 }
0x1954   :  { %v3733_v39 = vpop.f32.mrf.mxu1 }
0x1955   :  { %v3753_v28 = vmul.f32 %v3739_v38, %v3739_v38  ;;  %v3734_v40 = vadd.f32 %v4164_v36, %v3733_v39 }
0x1957   :  { %v3757_v41 = vmul.f32 %v3753_v28, %v3739_v38  ;;  %v3752_v42 = vmul.f32 %v3734_v40, %v3734_v40 }
0x1959   :  { %v3761_v43 = vmul.f32 0.044715, %v3757_v41  ;;  %v3756_v44 = vmul.f32 %v3752_v42, %v3734_v40 }
0x195b   :  { %v3765_v6 = vadd.f32 %v3761_v43, %v3739_v38  ;;  %v3760_v45 = vmul.f32 0.044715, %v3756_v44 }
0x195d   :  { %v3769_v46 = vmul.f32 0.7978846, %v3765_v6  ;;  %v3764_v14 = vadd.f32 %v3760_v45, %v3734_v40 }
0x195f   :  { %4858 = vtanh.f32 %v3769_v46  ;;  %v3768_v2 = vmul.f32 0.7978846, %v3764_v14 }
0x1961   :  { %4860 = vtanh.f32 %v3768_v2 }
0x196c   :  { %v4859_v47 = vpop.eup %4858 }
0x196d   :  { %v3777_v49 = vadd.f32 1.0, %v4859_v47 }
0x196e   :  { %v4861_v50 = vpop.eup %4860 }
0x196f   :  { %v3776_v52 = vadd.f32 1.0, %v4861_v50  ;;  %v3781_v53 = vmul.f32 0.5, %v3777_v49 }
0x1971   :  { %v3780_v54 = vmul.f32 0.5, %v3776_v52  ;;  %v3785_v56 = vmul.f32 %v3781_v53, %v3739_v38 }
0x1973   :  { %v3784_v58 = vmul.f32 %v3780_v54, %v3734_v40 }
0x1975   :  { %4713 = vmatprep.mubr.msk.f32.mxu0 %vm2338_vm12, %v3784_v58 }
0x1976   :  { %4714 = vmatmul.mubr.msk.f32.vlgmr.msra.gmra.mxu0 %vm2338_vm12, %v3785_v56 }
0x19de   :  { %v4696_v60 = vpop.f32.mrf.mxu1 }
0x19df   :  { %v3749_v0 = vadd.f32 %v4696_v60, %v4164_v36 }
0x19e0   :  { %v3743_v3 = vpop.f32.mrf.mxu1 }
0x19e1   :  { %v3755_v5 = vmul.f32 %v3749_v0, %v3749_v0  ;;  %v3744_v27 = vadd.f32 %v4164_v36, %v3743_v3  ;;  %v4185_v3 = vld [vmem:[%s5899_s20 + $0x1] ss:$0 sm:$0xff]  ;;  %s4874_s20 = scalar_lea.vmem %s4004_s11, 512 }
0x19e2   :  { %p4875_p0 = scmp.ne.s32.totalorder %s4004_s11, %s4874_s20  ;;  %p4880_p2 = scmp.lt.s32.totalorder %s4874_s20, %s4874_s20 }
0x19e3   :  { %v3759_v7 = vmul.f32 %v3755_v5, %v3749_v0  ;;  %v3754_v61 = vmul.f32 %v3744_v27, %v3744_v27 }
0x19e4   :  { %p4881_p3 = por %p4880_p2, %p4879_p1 }
0x19e5   :  { %v3763_v8 = vmul.f32 0.044715, %v3759_v7  ;;  %v3758_v9 = vmul.f32 %v3754_v61, %v3744_v27  ;;  %v4186_v7 = vld [vmem:[%s5900_s21 + $0x1] ss:$0 sm:$0xff] }
0x19e6   :  { %p4882_p4 = pnand %p4881_p3, %p4875_p0 }
0x19e7   :  { %v3767_v10 = vadd.f32 %v3763_v8, %v3749_v0  ;;  %v3762_v11 = vmul.f32 0.044715, %v3758_v9 }
0x19e9   :  { %v3771_v12 = vmul.f32 0.7978846, %v3767_v10  ;;  %v3766_v15 = vadd.f32 %v3762_v11, %v3744_v27 }
0x19eb   :  { %4862 = vtanh.f32 %v3771_v12  ;;  %v3770_v62 = vmul.f32 0.7978846, %v3766_v15 }
0x19ed   :  { %4864 = vtanh.f32 %v3770_v62 }
0x19f8   :  { %v4863_v13 = vpop.eup %4862 }
0x19f9   :  { %v3779_v17 = vadd.f32 1.0, %v4863_v13 }
0x19fa   :  { %v4865_v51 = vpop.eup %4864 }
0x19fb   :  { %v3778_v18 = vadd.f32 1.0, %v4865_v51  ;;  %v3783_v19 = vmul.f32 0.5, %v3779_v17 }
0x19fd   :  { %v3782_v21 = vmul.f32 0.5, %v3778_v18  ;;  %v3787_v23 = vmul.f32 %v3783_v19, %v3749_v0 }
0x19ff   :  { %v3786_v22 = vmul.f32 %v3782_v21, %v3744_v27 }
0x1a01   :  { %4716 = vmatprep.mubr.msk.f32.mxu0 %vm2338_vm12, %v3786_v22 }
0x1a02   :  { %4717 = vmatmul.mubr.msk.f32.gmra.mxu0 %vm2338_vm12, %v3787_v23 }
0x1a36   :  { %v4715_v24 = vpop.f32.mrf.mxu0 }
0x1a37   :  { %v3889_v25 = vadd.f32 %v4715_v24, %v4178_v63 }
0x1a38   :  { %v3883_v26 = vpop.f32.mrf.mxu0 }
0x1a39   :  { %v3903_v29 = vadd.f32 %v3889_v25, %v5786_v48  ;;  %v3884_v20 = vadd.f32 %v4178_v63, %v3883_v26 }
0x1a3b   :  { %v3902_v4 = vadd.f32 %v3884_v20, %v5784_v16  ;;  %v3913_v31 = vsel %vm228_vm1, %v3903_v29, 0.0 }
0x1a3c   :  { %3914 = vadd.xlane.f32.xlu1 %v3913_v31 }
0x1a3d   :  { %v3910_v32 = vsel %vm228_vm1, %v3902_v4, 0.0 }
0x1a3e   :  { %3911 = vadd.xlane.f32.xlu0 %v3910_v32 }
0x1ac2   :  { %v4718_v30 = vpop.f32.mrf.mxu0 }
0x1ac3   :  { %v3899_v33 = vadd.f32 %v4718_v30, %v4178_v63 }
0x1ac4   :  { %v3893_v59 = vpop.f32.mrf.mxu0 }
0x1ac5   :  { %v3905_v1 = vadd.f32 %v3899_v33, %v5820_v35  ;;  %v3894_v55 = vadd.f32 %v4178_v63, %v3893_v59  ;;  %v3915_v34 = vpop.xlane.xlu1 %3914 }
0x1ac6   :  { %v3923_v36 = vmul.f32 0.03125, %v3915_v34 }
0x1ac7   :  { %v3904_v37 = vadd.f32 %v3894_v55, %v5816_v57  ;;  %v3912_v48 = vpop.xlane.xlu0 %3911  ;;  %v3919_v38 = vsel %vm228_vm1, %v3905_v1, 0.0 }
0x1ac8   :  { %v3927_v16 = vsub.f32 %v3903_v29, %v3923_v36  ;;  %v3922_v39 = vmul.f32 0.03125, %v3912_v48  ;;  %3920 = vadd.xlane.f32.xlu1 %v3919_v38 }
0x1ac9   :  { %v3916_v28 = vsel %vm228_vm1, %v3904_v37, 0.0 }
0x1aca   :  { %v3926_v40 = vsub.f32 %v3902_v4, %v3922_v39  ;;  %3917 = vadd.xlane.f32.xlu0 %v3916_v28  ;;  %v3931_v41 = vmul.f32 %v3927_v16, %v3927_v16 }
0x1acc   :  { %v3937_v42 = vsel %vm228_vm1, %v3931_v41, 0.0  ;;  %v3930_v43 = vmul.f32 %v3926_v40, %v3926_v40 }
0x1acd   :  { %3938 = vadd.xlane.f32.xlu1 %v3937_v42 }
0x1ace   :  { %v3934_v35 = vsel %vm228_vm1, %v3930_v43, 0.0 }
0x1acf   :  { %3935 = vadd.xlane.f32.xlu0 %v3934_v35 }
0x1b51   :  { %v3921_v44 = vpop.xlane.xlu1 %3920 }
0x1b52   :  { %v3925_v57 = vmul.f32 0.03125, %v3921_v44 }
0x1b53   :  { %v3918_v6 = vpop.xlane.xlu0 %3917 }
0x1b54   :  { %v3929_v45 = vsub.f32 %v3905_v1, %v3925_v57  ;;  %v3924_v46 = vmul.f32 0.03125, %v3918_v6 }
0x1b56   :  { %v5844_v14 = vsub.f32 %v3904_v37, %v3924_v46  ;;  %v3939_v2 = vpop.xlane.xlu1 %3938  ;;  %v3933_v47 = vmul.f32 %v3929_v45, %v3929_v45 }
0x1b57   :  { %v3947_v49 = vmul.f32 0.03125, %v3939_v2 }
0x1b58   :  { %v3936_v50 = vpop.xlane.xlu0 %3935  ;;  %v3943_v52 = vsel %vm228_vm1, %v3933_v47, 0.0  ;;  %v3932_v53 = vmul.f32 %v5844_v14, %v5844_v14 }
0x1b59   :  { %v3951_v54 = vadd.f32 1e-05, %v3947_v49  ;;  %v3946_v58 = vmul.f32 0.03125, %v3936_v50  ;;  %3944 = vadd.xlane.f32.xlu1 %v3943_v52 }
0x1b5a   :  { %v3940_v56 = vsel %vm228_vm1, %v3932_v53, 0.0 }
0x1b5b   :  { %4866 = vrsqrt.f32 %v3951_v54  ;;  %v3950_v60 = vadd.f32 1e-05, %v3946_v58  ;;  %3941 = vadd.xlane.f32.xlu0 %v3940_v56 }
0x1b5d   :  { %4868 = vrsqrt.f32 %v3950_v60 }
0x1b68   :  { %v4867_v0 = vpop.eup %4866 }
0x1b69   :  { %v3959_v5 = vmul.f32 %v4867_v0, %v3927_v16 }
0x1b6a   :  { %v4869_v27 = vpop.eup %4868 }
0x1b6b   :  { %v3969_v61 = vmul.f32 %v4185_v3, %v3959_v5  ;;  %v3958_v8 = vmul.f32 %v4869_v27, %v3926_v40 }
0x1b6d   :  { %v3968_v9 = vmul.f32 %v4185_v3, %v3958_v8  ;;  %v3979_v10 = vadd.f32 %v4186_v7, %v3969_v61 }
0x1b6f   :  { %v3978_v11 = vadd.f32 %v4186_v7, %v3968_v9  ;;  %3983 = vst.msk [vmem:[#allocation6 + $0x8] sm:$0xff] %vm228_vm1, %v3979_v10 }
0x1b71   :  { %3982 = vst.msk [vmem:[#allocation6] sm:$0xff] %vm228_vm1, %v3978_v11 }
0x1b72   :  { %4885 = shalt.err (!%p4882_p4)
}
0x1b73   :  { %s4946_s21 = smov 128   ;;  %s4947_s26 = smov 8  }
0x1b74   :  { %4009 = dma.vmem_to_hbm [thread:$0]  %s4004_s11, 512, %s5902_s23, [#allocation5], %s4946_s21, %s4946_s21, %s4947_s26  }
0x1b75   :  { %s4894_s6 = scalar_lea.vmem %s3992_s14, 512  ;;  %p4899_p6 = scmp.lt.s32.totalorder %s3992_s14, %s3992_s14 }
0x1b76   :  { %p4895_p5 = scmp.ne.s32.totalorder %s3992_s14, %s4894_s6  ;;  %p4900_p7 = scmp.lt.s32.totalorder %s4894_s6, %s4894_s6 }
0x1b78   :  { %p4901_p8 = por %p4900_p7, %p4899_p6 }
0x1b7a   :  { %p4902_p9 = pnand %p4901_p8, %p4895_p5 }
0x1b7c   :  { %4905 = shalt.err (!%p4902_p9)
}
0x1b7d   :  { %3997 = dma.vmem_to_hbm [thread:$0]  %s3992_s14, 512, %s5901_s22, [#allocation3], %s4946_s21, %s4946_s21, %s4947_s26  }
0x1b7e   :  { %s4948_s23 = smov [#allocation6]  }
0x1b7f   :  { %s4015_s4 = sshll.u32 %s4948_s23, 4  ;;  %s4016_s4 = int_to_ptr.vmem [resolvable:$true] %s4015_s4 }
0x1b80   :  { %s4914_s22 = scalar_lea.vmem %s4016_s4, 512  ;;  %p4919_p11 = scmp.lt.s32.totalorder %s4016_s4, %s4016_s4 }
0x1b81   :  { %p4915_p10 = scmp.ne.s32.totalorder %s4016_s4, %s4914_s22  ;;  %p4920_p12 = scmp.lt.s32.totalorder %s4914_s22, %s4914_s22 }
0x1b83   :  { %p4921_p13 = por %p4920_p12, %p4919_p11 }
0x1b85   :  { %p4922_p0 = pnand %p4921_p13, %p4915_p10 }
0x1be2   :  { %v3945_v12 = vpop.xlane.xlu1 %3944 }
0x1be3   :  { %v3949_v15 = vmul.f32 0.03125, %v3945_v12 }
0x1be4   :  { %v3942_v62 = vpop.xlane.xlu0 %3941 }
0x1be5   :  { %v3953_v13 = vadd.f32 1e-05, %v3949_v15  ;;  %v3948_v17 = vmul.f32 0.03125, %v3942_v62 }
0x1be7   :  { %4870 = vrsqrt.f32 %v3953_v13  ;;  %v3952_v51 = vadd.f32 1e-05, %v3948_v17 }
0x1be9   :  { %4872 = vrsqrt.f32 %v3952_v51 }
0x1bf4   :  { %v4871_v18 = vpop.eup %4870 }
0x1bf5   :  { %v3961_v19 = vmul.f32 %v4871_v18, %v3929_v45 }
0x1bf6   :  { %v4873_v21 = vpop.eup %4872 }
0x1bf7   :  { %v3971_v22 = vmul.f32 %v4185_v3, %v3961_v19  ;;  %v3960_v23 = vmul.f32 %v4873_v21, %v5844_v14 }
0x1bf9   :  { %v3970_v63 = vmul.f32 %v4185_v3, %v3960_v23  ;;  %v3981_v24 = vadd.f32 %v4186_v7, %v3971_v22 }
0x1bfb   :  { %v3980_v25 = vadd.f32 %v4186_v7, %v3970_v63  ;;  %3985 = vst.msk [vmem:[#allocation6 + $0x18] sm:$0xff] %vm228_vm1, %v3981_v24 }
0x1bfd   :  { %3984 = vst.msk [vmem:[#allocation6 + $0x10] sm:$0xff] %vm228_vm1, %v3980_v25 }
0x1bfe   :  { %4925 = shalt.err (!%p4922_p0)
}
0x1bff   :  { %4021 = dma.vmem_to_hbm [thread:$0]  %s4016_s4, 512, %s5903_s24, [#allocation5], %s4946_s21, %s4946_s21, %s4947_s26  }
0x1c00   :  { %4934 = dma.done.wait [#allocation3], 512  }
0x1c01   :  { %4935 = vsyncadd [#allocation3], 4294966784 }
0x1c02   :  { %4936 = dma.done.wait [#allocation5], 1024  }
0x1c03   :  { %4937 = vsyncadd [#allocation5], 4294966272 }
0x1c04   :  { %4031 = vsyncpa [#allocation3], 1 }
0x1c05   :  { %4032 = vsyncpa [#allocation5], 1 }

</bundles_post_ra>
